<compile_context>
chip_gen: v5e
topology: v5e:2x2
jax: 0.10.0
libtpu: 0.0.40
codegen_flags: <defaults>
</compile_context>

<pallas_src>
import jax
import jax.numpy as jnp
from jax.experimental import pallas as pl
from jax.experimental.pallas import tpu as pltpu

BN_EPS = 1e-5
LANE = 128


# ----------------------------------------------------------------------------
# In-kernel helpers
# ----------------------------------------------------------------------------
def _conv3x3_taps(src, w_ref, bias, rows, W, Cp):
    """src: (rows+2, >=W+2, Cp) zero-haloed activations (bf16 value or ref),
    w_ref: (9, Cp, Cp) weight slab (bf16), bias: (1, Cp) f32.
    Returns (rows*W, Cp) f32 via 9 accumulating K=Cp MXU dots (no im2col slab;
    on v7x the MRB accumulates in place, on v5e/v6e the adds are VPU filler)."""
    acc = None
    for k in range(9):
        dy, dx = divmod(k, 3)
        patch = src[dy:dy + rows, dx:dx + W, :].reshape(rows * W, Cp)
        part = jnp.dot(patch, w_ref[k], preferred_element_type=jnp.float32)
        acc = part if acc is None else acc + part
    return acc + bias


def _partial_stats(y):
    """y: (M, Cp) f32 -> (2, Cp) per-tile [sum, sum_of_squares]."""
    return jnp.concatenate(
        [jnp.sum(y, axis=0, keepdims=True),
         jnp.sum(y * y, axis=0, keepdims=True)], axis=0)


# ----------------------------------------------------------------------------
# Pass 1: conv1 on one row tile (+ per-tile BN1 statistics)
# ----------------------------------------------------------------------------
def conv1_kernel(xpad_ref, w_ref, b_ref, y_ref, stats_ref):
    TH, W, Cp = y_ref.shape
    r = pl.program_id(1)
    row0 = pl.multiple_of(r * TH, TH)
    # xpad_ref is the resident haloed image (H+2, Wp2, Cp) bf16; take TH+2 rows.
    src = xpad_ref[pl.ds(row0, TH + 2), :, :]
    y = _conv3x3_taps(src, w_ref, b_ref[...], TH, W, Cp)     # (TH*W, Cp) f32
    y_ref[...] = y.reshape(TH, W, Cp).astype(y_ref.dtype)    # bf16 store
    stats_ref[...] = _partial_stats(y)                       # f32 stats


# ----------------------------------------------------------------------------
# Pass 2: BN1 affine + ReLU + conv2 on one row tile (+ per-tile BN2 statistics)
# ----------------------------------------------------------------------------
def bn_relu_conv2_kernel(y1_ref, s1_ref, t1_ref, w_ref, b_ref,
                         y2_ref, stats_ref, hpad_ref):
    H, W, Cp = y1_ref.shape                                  # resident full image
    TH = y2_ref.shape[0]
    r = pl.program_id(1)
    row0 = r * TH
    scale = s1_ref[...]                                      # (1, Cp) f32
    shift = t1_ref[...]

    def h_rows(start, n):
        y = y1_ref[pl.ds(start, n), :, :].astype(jnp.float32)
        return jnp.maximum(y * scale + shift, 0.0)           # (n, W, Cp) f32

    dt = hpad_ref.dtype                                      # bf16 halo scratch
    # interior rows of this tile
    hpad_ref[1:TH + 1, 1:W + 1, :] = h_rows(
        pl.multiple_of(row0, TH), TH).astype(dt)
    # top / bottom halo rows come from the neighbouring tiles of y1 (zero at
    # the image border, via a clamped read + scalar-predicated select).
    top = jnp.where(row0 > 0, h_rows(jnp.maximum(row0 - 1, 0), 1), 0.0)
    hpad_ref[0:1, 1:W + 1, :] = top.astype(dt)
    bot = jnp.where(row0 + TH < H, h_rows(jnp.minimum(row0 + TH, H - 1), 1), 0.0)
    hpad_ref[TH + 1:TH + 2, 1:W + 1, :] = bot.astype(dt)
    # left/right 1-column border (cheap bf16 stores; re-done each step).
    zcol = jnp.zeros((TH + 2, 1, Cp), dt)
    hpad_ref[:, 0:1, :] = zcol
    hpad_ref[:, W + 1:W + 2, :] = zcol

    y2 = _conv3x3_taps(hpad_ref, w_ref, b_ref[...], TH, W, Cp)
    y2_ref[...] = y2.reshape(TH, W, Cp).astype(y2_ref.dtype)
    stats_ref[...] = _partial_stats(y2)


# ----------------------------------------------------------------------------
# Pass 3: BN2 affine + residual + ReLU on one row tile
# ----------------------------------------------------------------------------
def bn2_residual_relu_kernel(y2_ref, xr_ref, s2_ref, t2_ref, o_ref):
    y2 = y2_ref[...].astype(jnp.float32)
    res = xr_ref[...].astype(jnp.float32)                    # unpadded residual
    o_ref[...] = jnp.maximum(y2 * s2_ref[...] + t2_ref[...] + res, 0.0)


# ----------------------------------------------------------------------------
# Host-side glue
# ----------------------------------------------------------------------------
def _round_up(x, m):
    return ((x + m - 1) // m) * m


def _pick_row_tile(H, target=8):
    th = min(target, H)
    while th > 1 and H % th:
        th -= 1
    return max(th, 1)


def _pick_vmem_limit_bytes():
    cap = 64 * 1024 * 1024                      # conservative fallback (v7x)
    try:
        info = pltpu.get_tpu_info()
        cap = int(getattr(info, "vmem_capacity_bytes", cap))
    except Exception:
        pass
    return int(min(cap - 16 * 1024 * 1024, 100 * 1024 * 1024))


def _fold_bn(stats, gamma_p, beta_p, count):
    """stats: (N, n_tiles, 2, Cp) partial sums -> per-channel (scale, shift)."""
    tot = jnp.sum(stats, axis=(0, 1))                        # (2, Cp)
    mean = tot[0] / count
    var = jnp.maximum(tot[1] / count - mean * mean, 0.0)     # biased (training)
    scale = gamma_p[0] * jax.lax.rsqrt(var + BN_EPS)
    shift = beta_p[0] - mean * scale
    return scale[None, :], shift[None, :]                    # (1, Cp) each, f32


def resblock_forward(x_nchw, params, *, compute_dtype=jnp.bfloat16):
    """x_nchw: (N, C, H, W) like the PyTorch module.  Returns (N, C, H, W)."""
    x = jnp.transpose(x_nchw, (0, 2, 3, 1)).astype(jnp.float32)   # NHWC
    N, H, W, C = x.shape
    Cp = max(LANE, _round_up(C, LANE))                       # lane-dense channels
    Wp2 = _round_up(W + 2, 8)                                # sublane-aligned halo
    TH = _pick_row_tile(H)
    n_tiles = H // TH
    M = N * H * W

    # Haloed + channel/width-padded input (bf16) for conv1, and a channel-padded
    # but spatially-UNpadded bf16 copy for the residual read in pass 3.
    xpad = jnp.pad(x, ((0, 0), (1, 1), (1, Wp2 - (W + 1)),
                       (0, Cp - C))).astype(compute_dtype)
    x_res = jnp.pad(x, ((0, 0), (0, 0), (0, 0),
                        (0, Cp - C))).astype(compute_dtype)

    def pad_vec(v):                                          # (1, C) -> (1, Cp) f32
        return jnp.pad(v, ((0, 0), (0, Cp - C)))

    def pad_w(w9):                                           # (9, C, C) -> (9, Cp, Cp)
        w = jnp.zeros((9, Cp, Cp), jnp.float32).at[:, :C, :C].set(w9)
        return w.astype(compute_dtype)

    w1s, w2s = pad_w(params["w1"]), pad_w(params["w2"])
    b1p, b2p = pad_vec(params["b1"]), pad_vec(params["b2"])
    g1p, g2p = pad_vec(params["g1"]), pad_vec(params["g2"])
    be1p, be2p = pad_vec(params["be1"]), pad_vec(params["be2"])

    cparams = pltpu.CompilerParams(
        dimension_semantics=("parallel", "parallel"),
        vmem_limit_bytes=_pick_vmem_limit_bytes())

    # BlockSpecs: batch dim squeezed; full image stays resident across the row
    # axis (constant block index), outputs/residual are per row tile.
    img_halo = pl.BlockSpec((None, H + 2, Wp2, Cp), lambda n, r: (n, 0, 0, 0))
    img_full = pl.BlockSpec((None, H, W, Cp), lambda n, r: (n, 0, 0, 0))
    row_tile = pl.BlockSpec((None, TH, W, Cp), lambda n, r: (n, r, 0, 0))
    weights_rs = pl.BlockSpec((9, Cp, Cp), lambda n, r: (0, 0, 0))
    vec_rs = pl.BlockSpec((1, Cp), lambda n, r: (0, 0))
    stats_sp = pl.BlockSpec((None, None, 2, Cp), lambda n, r: (n, r, 0, 0))

    # ---- pass 1: conv1 + per-tile BN1 stats ---------------------------------
    y1, stats1 = pl.pallas_call(
        conv1_kernel,
        grid=(N, n_tiles),
        in_specs=[img_halo, weights_rs, vec_rs],
        out_specs=(row_tile, stats_sp),
        out_shape=(jax.ShapeDtypeStruct((N, H, W, Cp), compute_dtype),
                   jax.ShapeDtypeStruct((N, n_tiles, 2, Cp), jnp.float32)),
        compiler_params=cparams,
    )(xpad, w1s, b1p)

    scale1, shift1 = _fold_bn(stats1, g1p, be1p, M)

    # ---- pass 2: BN1 affine + ReLU + conv2 + per-tile BN2 stats -------------
    y2, stats2 = pl.pallas_call(
        bn_relu_conv2_kernel,
        grid=(N, n_tiles),
        in_specs=[img_full, vec_rs, vec_rs, weights_rs, vec_rs],
        out_specs=(row_tile, stats_sp),
        out_shape=(jax.ShapeDtypeStruct((N, H, W, Cp), compute_dtype),
                   jax.ShapeDtypeStruct((N, n_tiles, 2, Cp), jnp.float32)),
        scratch_shapes=[pltpu.VMEM((TH + 2, Wp2, Cp), compute_dtype)],
        compiler_params=cparams,
    )(y1, scale1, shift1, w2s, b2p)

    scale2, shift2 = _fold_bn(stats2, g2p, be2p, M)

    # ---- pass 3: BN2 affine + residual + ReLU -------------------------------
    out_p = pl.pallas_call(
        bn2_residual_relu_kernel,
        grid=(N, n_tiles),
        in_specs=[row_tile, row_tile, vec_rs, vec_rs],
        out_specs=row_tile,
        out_shape=jax.ShapeDtypeStruct((N, H, W, Cp), jnp.float32),
        compiler_params=cparams,
    )(y2, x_res, scale2, shift2)

    out = out_p[:, :, :, :C]
    return jnp.transpose(out, (0, 3, 1, 2))                  # back to NCHW


# ----------------------------------------------------------------------------
# Parameters + pure-JAX reference (matches PyTorch ResBlock in training mode)
# ----------------------------------------------------------------------------
def make_params(key, C):
    ks = jax.random.split(key, 6)
    w1 = jax.random.normal(ks[0], (3, 3, C, C), jnp.float32) * 0.1
    w2 = jax.random.normal(ks[1], (3, 3, C, C), jnp.float32) * 0.1
    return {
        "w1": w1.reshape(9, C, C),
        "b1": jax.random.normal(ks[2], (1, C), jnp.float32) * 0.05,
        "g1": 1.0 + 0.1 * jax.random.normal(ks[3], (1, C), jnp.float32),
        "be1": 0.05 * jax.random.normal(ks[4], (1, C), jnp.float32),
        "w2": w2.reshape(9, C, C),
        "b2": 0.05 * jax.random.normal(ks[5], (1, C), jnp.float32),
        "g2": jnp.ones((1, C), jnp.float32),
        "be2": jnp.zeros((1, C), jnp.float32),
    }


def reference_forward(x_nchw, params):
    x = jnp.transpose(x_nchw, (0, 2, 3, 1)).astype(jnp.float32)
    C = x.shape[-1]

    def conv(h, w9, b):
        w = w9.reshape(3, 3, C, C)
        y = jax.lax.conv_general_dilated(
            h, w, window_strides=(1, 1), padding="SAME",
            dimension_numbers=("NHWC", "HWIO", "NHWC"))
        return y + b.reshape(1, 1, 1, C)

    def bn(y, g, be):
        m = jnp.mean(y, axis=(0, 1, 2), keepdims=True)
        v = jnp.mean((y - m) ** 2, axis=(0, 1, 2), keepdims=True)
        return (g.reshape(1, 1, 1, C) * (y - m) * jax.lax.rsqrt(v + BN_EPS)
                + be.reshape(1, 1, 1, C))

    h = jnp.maximum(bn(conv(x, params["w1"], params["b1"]),
                       params["g1"], params["be1"]), 0.0)
    h = bn(conv(h, params["w2"], params["b2"]), params["g2"], params["be2"]) + x
    h = jnp.maximum(h, 0.0)
    return jnp.transpose(h, (0, 3, 1, 2))


if __name__ == "__main__":
    key = jax.random.PRNGKey(0)
    kx, kp = jax.random.split(key)

    N, C, H, W = 2, 4, 16, 16                # PyTorch-style NCHW input
    x = jax.random.normal(kx, (N, C, H, W), jnp.float32)
    params = make_params(kp, C)

    out = jax.jit(resblock_forward)(x, params)
    out = jax.block_until_ready(out)

    ref = jax.block_until_ready(reference_forward(x, params))
    assert out.shape == (N, C, H, W)
    # bf16 MXU operands AND bf16 HBM intermediates / residual -> compare at a
    # bf16-level tolerance (real bugs, e.g. halo off-by-one, show up as O(0.3+)).
    assert jnp.allclose(out, ref, atol=4e-2, rtol=4e-2), "mismatch vs JAX reference"

    print("KERNEL_OK")
</pallas_src>

<mosaic_0001>
module attributes {stable_mosaic.version = 11 : i64} {
  func.func @conv1_kernel(%arg0: i32, %arg1: i32, %arg2: memref<1x18x24x128xbf16, #tpu.memory_space<vmem>>, %arg3: memref<9x128x128xbf16, #tpu.memory_space<vmem>>, %arg4: memref<1x128xf32, #tpu.memory_space<vmem>>, %arg5: memref<1x8x16x128xbf16, #tpu.memory_space<vmem>>, %arg6: memref<1x1x2x128xf32, #tpu.memory_space<vmem>>) attributes {dimension_semantics = [#tpu.dimension_semantics<parallel>, #tpu.dimension_semantics<parallel>], iteration_bounds = array<i64: 2, 2>, scalar_prefetch = 0 : i64, scratch_operands = 0 : i64, tpu.core_type = #tpu.core_type<tc>, window_params = [{transform_indices = @transform_0, window_bounds = array<i64: 1, 18, 24, 128>}, {pipeline_mode = #tpu.pipeline_mode<synchronous>, transform_indices = @transform_1, window_bounds = array<i64: 9, 128, 128>}, {pipeline_mode = #tpu.pipeline_mode<synchronous>, transform_indices = @transform_2, window_bounds = array<i64: 1, 128>}, {transform_indices = @transform_3, window_bounds = array<i64: 1, 8, 16, 128>}, {transform_indices = @transform_4, window_bounds = array<i64: 1, 1, 2, 128>}]} {
    %c8_i32 = arith.constant 8 : i32
    %0 = arith.muli %arg1, %c8_i32 : i32
    %1 = tpu.assume_multiple %0, 8 : i32
    %c0 = arith.constant 0 : index
    %2 = arith.index_cast %1 : i32 to index
    %c0_0 = arith.constant 0 : index
    %c0_1 = arith.constant 0 : index
    %3 = vector.load %arg2[%c0, %2, %c0_0, %c0_1] : memref<1x18x24x128xbf16, #tpu.memory_space<vmem>>, vector<1x10x24x128xbf16>
    %4 = vector.shape_cast %3 : vector<1x10x24x128xbf16> to vector<10x24x128xbf16>
    %c0_2 = arith.constant 0 : index
    %c0_3 = arith.constant 0 : index
    %5 = vector.load %arg4[%c0_2, %c0_3] : memref<1x128xf32, #tpu.memory_space<vmem>>, vector<1x128xf32>
    %6 = vector.extract_strided_slice %4 {offsets = [0, 0, 0], sizes = [8, 16, 128], strides = [1, 1, 1]} : vector<10x24x128xbf16> to vector<8x16x128xbf16>
    %7 = vector.shape_cast %6 : vector<8x16x128xbf16> to vector<128x128xbf16>
    %c0_4 = arith.constant 0 : index
    %c0_5 = arith.constant 0 : index
    %c0_6 = arith.constant 0 : index
    %8 = vector.load %arg3[%c0_4, %c0_5, %c0_6] : memref<9x128x128xbf16, #tpu.memory_space<vmem>>, vector<1x128x128xbf16>
    %9 = vector.shape_cast %8 : vector<1x128x128xbf16> to vector<128x128xbf16>
    %cst = arith.constant dense<0.000000e+00> : vector<128x128xf32>
    %10 = tpu.matmul %7, %9, %cst {dimension_numbers = #tpu.dot_dimension_numbers<[1], [0], [0], [1], [0, 0, 1, 1], [], []>} : vector<128x128xbf16>, vector<128x128xbf16>, vector<128x128xf32> -> vector<128x128xf32>
    %11 = vector.extract_strided_slice %4 {offsets = [0, 1, 0], sizes = [8, 16, 128], strides = [1, 1, 1]} : vector<10x24x128xbf16> to vector<8x16x128xbf16>
    %12 = vector.shape_cast %11 : vector<8x16x128xbf16> to vector<128x128xbf16>
    %c1 = arith.constant 1 : index
    %c0_7 = arith.constant 0 : index
    %c0_8 = arith.constant 0 : index
    %13 = vector.load %arg3[%c1, %c0_7, %c0_8] : memref<9x128x128xbf16, #tpu.memory_space<vmem>>, vector<1x128x128xbf16>
    %14 = vector.shape_cast %13 : vector<1x128x128xbf16> to vector<128x128xbf16>
    %cst_9 = arith.constant dense<0.000000e+00> : vector<128x128xf32>
    %15 = tpu.matmul %12, %14, %cst_9 {dimension_numbers = #tpu.dot_dimension_numbers<[1], [0], [0], [1], [0, 0, 1, 1], [], []>} : vector<128x128xbf16>, vector<128x128xbf16>, vector<128x128xf32> -> vector<128x128xf32>
    %16 = arith.addf %10, %15 : vector<128x128xf32>
    %17 = vector.extract_strided_slice %4 {offsets = [0, 2, 0], sizes = [8, 16, 128], strides = [1, 1, 1]} : vector<10x24x128xbf16> to vector<8x16x128xbf16>
    %18 = vector.shape_cast %17 : vector<8x16x128xbf16> to vector<128x128xbf16>
    %c2 = arith.constant 2 : index
    %c0_10 = arith.constant 0 : index
    %c0_11 = arith.constant 0 : index
    %19 = vector.load %arg3[%c2, %c0_10, %c0_11] : memref<9x128x128xbf16, #tpu.memory_space<vmem>>, vector<1x128x128xbf16>
    %20 = vector.shape_cast %19 : vector<1x128x128xbf16> to vector<128x128xbf16>
    %cst_12 = arith.constant dense<0.000000e+00> : vector<128x128xf32>
    %21 = tpu.matmul %18, %20, %cst_12 {dimension_numbers = #tpu.dot_dimension_numbers<[1], [0], [0], [1], [0, 0, 1, 1], [], []>} : vector<128x128xbf16>, vector<128x128xbf16>, vector<128x128xf32> -> vector<128x128xf32>
    %22 = arith.addf %16, %21 : vector<128x128xf32>
    %23 = vector.extract_strided_slice %4 {offsets = [1, 0, 0], sizes = [8, 16, 128], strides = [1, 1, 1]} : vector<10x24x128xbf16> to vector<8x16x128xbf16>
    %24 = vector.shape_cast %23 : vector<8x16x128xbf16> to vector<128x128xbf16>
    %c3 = arith.constant 3 : index
    %c0_13 = arith.constant 0 : index
    %c0_14 = arith.constant 0 : index
    %25 = vector.load %arg3[%c3, %c0_13, %c0_14] : memref<9x128x128xbf16, #tpu.memory_space<vmem>>, vector<1x128x128xbf16>
    %26 = vector.shape_cast %25 : vector<1x128x128xbf16> to vector<128x128xbf16>
    %cst_15 = arith.constant dense<0.000000e+00> : vector<128x128xf32>
    %27 = tpu.matmul %24, %26, %cst_15 {dimension_numbers = #tpu.dot_dimension_numbers<[1], [0], [0], [1], [0, 0, 1, 1], [], []>} : vector<128x128xbf16>, vector<128x128xbf16>, vector<128x128xf32> -> vector<128x128xf32>
    %28 = arith.addf %22, %27 : vector<128x128xf32>
    %29 = vector.extract_strided_slice %4 {offsets = [1, 1, 0], sizes = [8, 16, 128], strides = [1, 1, 1]} : vector<10x24x128xbf16> to vector<8x16x128xbf16>
    %30 = vector.shape_cast %29 : vector<8x16x128xbf16> to vector<128x128xbf16>
    %c4 = arith.constant 4 : index
    %c0_16 = arith.constant 0 : index
    %c0_17 = arith.constant 0 : index
    %31 = vector.load %arg3[%c4, %c0_16, %c0_17] : memref<9x128x128xbf16, #tpu.memory_space<vmem>>, vector<1x128x128xbf16>
    %32 = vector.shape_cast %31 : vector<1x128x128xbf16> to vector<128x128xbf16>
    %cst_18 = arith.constant dense<0.000000e+00> : vector<128x128xf32>
    %33 = tpu.matmul %30, %32, %cst_18 {dimension_numbers = #tpu.dot_dimension_numbers<[1], [0], [0], [1], [0, 0, 1, 1], [], []>} : vector<128x128xbf16>, vector<128x128xbf16>, vector<128x128xf32> -> vector<128x128xf32>
    %34 = arith.addf %28, %33 : vector<128x128xf32>
    %35 = vector.extract_strided_slice %4 {offsets = [1, 2, 0], sizes = [8, 16, 128], strides = [1, 1, 1]} : vector<10x24x128xbf16> to vector<8x16x128xbf16>
    %36 = vector.shape_cast %35 : vector<8x16x128xbf16> to vector<128x128xbf16>
    %c5 = arith.constant 5 : index
    %c0_19 = arith.constant 0 : index
    %c0_20 = arith.constant 0 : index
    %37 = vector.load %arg3[%c5, %c0_19, %c0_20] : memref<9x128x128xbf16, #tpu.memory_space<vmem>>, vector<1x128x128xbf16>
    %38 = vector.shape_cast %37 : vector<1x128x128xbf16> to vector<128x128xbf16>
    %cst_21 = arith.constant dense<0.000000e+00> : vector<128x128xf32>
    %39 = tpu.matmul %36, %38, %cst_21 {dimension_numbers = #tpu.dot_dimension_numbers<[1], [0], [0], [1], [0, 0, 1, 1], [], []>} : vector<128x128xbf16>, vector<128x128xbf16>, vector<128x128xf32> -> vector<128x128xf32>
    %40 = arith.addf %34, %39 : vector<128x128xf32>
    %41 = vector.extract_strided_slice %4 {offsets = [2, 0, 0], sizes = [8, 16, 128], strides = [1, 1, 1]} : vector<10x24x128xbf16> to vector<8x16x128xbf16>
    %42 = vector.shape_cast %41 : vector<8x16x128xbf16> to vector<128x128xbf16>
    %c6 = arith.constant 6 : index
    %c0_22 = arith.constant 0 : index
    %c0_23 = arith.constant 0 : index
    %43 = vector.load %arg3[%c6, %c0_22, %c0_23] : memref<9x128x128xbf16, #tpu.memory_space<vmem>>, vector<1x128x128xbf16>
    %44 = vector.shape_cast %43 : vector<1x128x128xbf16> to vector<128x128xbf16>
    %cst_24 = arith.constant dense<0.000000e+00> : vector<128x128xf32>
    %45 = tpu.matmul %42, %44, %cst_24 {dimension_numbers = #tpu.dot_dimension_numbers<[1], [0], [0], [1], [0, 0, 1, 1], [], []>} : vector<128x128xbf16>, vector<128x128xbf16>, vector<128x128xf32> -> vector<128x128xf32>
    %46 = arith.addf %40, %45 : vector<128x128xf32>
    %47 = vector.extract_strided_slice %4 {offsets = [2, 1, 0], sizes = [8, 16, 128], strides = [1, 1, 1]} : vector<10x24x128xbf16> to vector<8x16x128xbf16>
    %48 = vector.shape_cast %47 : vector<8x16x128xbf16> to vector<128x128xbf16>
    %c7 = arith.constant 7 : index
    %c0_25 = arith.constant 0 : index
    %c0_26 = arith.constant 0 : index
    %49 = vector.load %arg3[%c7, %c0_25, %c0_26] : memref<9x128x128xbf16, #tpu.memory_space<vmem>>, vector<1x128x128xbf16>
    %50 = vector.shape_cast %49 : vector<1x128x128xbf16> to vector<128x128xbf16>
    %cst_27 = arith.constant dense<0.000000e+00> : vector<128x128xf32>
    %51 = tpu.matmul %48, %50, %cst_27 {dimension_numbers = #tpu.dot_dimension_numbers<[1], [0], [0], [1], [0, 0, 1, 1], [], []>} : vector<128x128xbf16>, vector<128x128xbf16>, vector<128x128xf32> -> vector<128x128xf32>
    %52 = arith.addf %46, %51 : vector<128x128xf32>
    %53 = vector.extract_strided_slice %4 {offsets = [2, 2, 0], sizes = [8, 16, 128], strides = [1, 1, 1]} : vector<10x24x128xbf16> to vector<8x16x128xbf16>
    %54 = vector.shape_cast %53 : vector<8x16x128xbf16> to vector<128x128xbf16>
    %c8 = arith.constant 8 : index
    %c0_28 = arith.constant 0 : index
    %c0_29 = arith.constant 0 : index
    %55 = vector.load %arg3[%c8, %c0_28, %c0_29] : memref<9x128x128xbf16, #tpu.memory_space<vmem>>, vector<1x128x128xbf16>
    %56 = vector.shape_cast %55 : vector<1x128x128xbf16> to vector<128x128xbf16>
    %cst_30 = arith.constant dense<0.000000e+00> : vector<128x128xf32>
    %57 = tpu.matmul %54, %56, %cst_30 {dimension_numbers = #tpu.dot_dimension_numbers<[1], [0], [0], [1], [0, 0, 1, 1], [], []>} : vector<128x128xbf16>, vector<128x128xbf16>, vector<128x128xf32> -> vector<128x128xf32>
    %58 = arith.addf %52, %57 : vector<128x128xf32>
    %59 = vector.broadcast %5 : vector<1x128xf32> to vector<128x128xf32>
    %60 = arith.addf %58, %59 : vector<128x128xf32>
    %61 = vector.shape_cast %60 : vector<128x128xf32> to vector<8x16x128xf32>
    %62 = arith.truncf %61 : vector<8x16x128xf32> to vector<8x16x128xbf16>
    %c0_31 = arith.constant 0 : index
    %c0_32 = arith.constant 0 : index
    %c0_33 = arith.constant 0 : index
    %c0_34 = arith.constant 0 : index
    %63 = vector.load %arg5[%c0_31, %c0_32, %c0_33, %c0_34] : memref<1x8x16x128xbf16, #tpu.memory_space<vmem>>, vector<1x8x16x128xbf16>
    %64 = vector.shape_cast %63 : vector<1x8x16x128xbf16> to vector<8x16x128xbf16>
    %65 = vector.shape_cast %62 : vector<8x16x128xbf16> to vector<1x8x16x128xbf16>
    tpu.vector_store %arg5[%c0_31, %c0_32, %c0_33, %c0_34], %65 {strides = array<i32>} : memref<1x8x16x128xbf16, #tpu.memory_space<vmem>>, vector<1x8x16x128xbf16>,
    %cst_35 = arith.constant dense<0.000000e+00> : vector<128xf32>
    %66 = vector.multi_reduction <add>, %60, %cst_35 [0] : vector<128x128xf32> to vector<128xf32>
    %67 = vector.shape_cast %66 : vector<128xf32> to vector<1x128xf32>
    %68 = arith.mulf %60, %60 : vector<128x128xf32>
    %cst_36 = arith.constant dense<0.000000e+00> : vector<128xf32>
    %69 = vector.multi_reduction <add>, %68, %cst_36 [0] : vector<128x128xf32> to vector<128xf32>
    %70 = vector.shape_cast %69 : vector<128xf32> to vector<1x128xf32>
    %71 = tpu.concatenate %67, %70 in 0 : vector<1x128xf32>, vector<1x128xf32> -> vector<2x128xf32>
    %c0_37 = arith.constant 0 : index
    %c0_38 = arith.constant 0 : index
    %c0_39 = arith.constant 0 : index
    %c0_40 = arith.constant 0 : index
    %72 = vector.load %arg6[%c0_37, %c0_38, %c0_39, %c0_40] : memref<1x1x2x128xf32, #tpu.memory_space<vmem>>, vector<1x1x2x128xf32>
    %73 = vector.shape_cast %72 : vector<1x1x2x128xf32> to vector<2x128xf32>
    %74 = vector.shape_cast %71 : vector<2x128xf32> to vector<1x1x2x128xf32>
    tpu.vector_store %arg6[%c0_37, %c0_38, %c0_39, %c0_40], %74 {strides = array<i32>} : memref<1x1x2x128xf32, #tpu.memory_space<vmem>>, vector<1x1x2x128xf32>,
    return
  }
  func.func @transform_0(%arg0: i32, %arg1: i32) -> (i32, i32, i32, i32) {
    %c0_i32 = arith.constant 0 : i32
    %c0_i32_0 = arith.constant 0 : i32
    %c0_i32_1 = arith.constant 0 : i32
    %c0_i32_2 = arith.constant 0 : i32
    return %arg0, %c0_i32, %c0_i32_0, %c0_i32_1 : i32, i32, i32, i32
  }
  func.func @transform_1(%arg0: i32, %arg1: i32) -> (i32, i32, i32) {
    %c0_i32 = arith.constant 0 : i32
    %c0_i32_0 = arith.constant 0 : i32
    %c0_i32_1 = arith.constant 0 : i32
    %c0_i32_2 = arith.constant 0 : i32
    return %c0_i32, %c0_i32_0, %c0_i32_1 : i32, i32, i32
  }
  func.func @transform_2(%arg0: i32, %arg1: i32) -> (i32, i32) {
    %c0_i32 = arith.constant 0 : i32
    %c0_i32_0 = arith.constant 0 : i32
    %c0_i32_1 = arith.constant 0 : i32
    return %c0_i32, %c0_i32_0 : i32, i32
  }
  func.func @transform_3(%arg0: i32, %arg1: i32) -> (i32, i32, i32, i32) {
    %c0_i32 = arith.constant 0 : i32
    %c0_i32_0 = arith.constant 0 : i32
    %c0_i32_1 = arith.constant 0 : i32
    return %arg0, %arg1, %c0_i32, %c0_i32_0 : i32, i32, i32, i32
  }
  func.func @transform_4(%arg0: i32, %arg1: i32) -> (i32, i32, i32, i32) {
    %c0_i32 = arith.constant 0 : i32
    %c0_i32_0 = arith.constant 0 : i32
    %c0_i32_1 = arith.constant 0 : i32
    return %arg0, %arg1, %c0_i32, %c0_i32_0 : i32, i32, i32, i32
  }
}

module attributes {stable_mosaic.version = 11 : i64} {
  func.func @bn_relu_conv2_kernel(%arg0: i32, %arg1: i32, %arg2: memref<1x16x16x128xbf16, #tpu.memory_space<vmem>>, %arg3: memref<1x128xf32, #tpu.memory_space<vmem>>, %arg4: memref<1x128xf32, #tpu.memory_space<vmem>>, %arg5: memref<9x128x128xbf16, #tpu.memory_space<vmem>>, %arg6: memref<1x128xf32, #tpu.memory_space<vmem>>, %arg7: memref<1x8x16x128xbf16, #tpu.memory_space<vmem>>, %arg8: memref<1x1x2x128xf32, #tpu.memory_space<vmem>>, %arg9: memref<10x24x128xbf16, #tpu.memory_space<vmem>>) attributes {dimension_semantics = [#tpu.dimension_semantics<parallel>, #tpu.dimension_semantics<parallel>], iteration_bounds = array<i64: 2, 2>, scalar_prefetch = 0 : i64, scratch_operands = 1 : i64, tpu.core_type = #tpu.core_type<tc>, window_params = [{transform_indices = @transform_0, window_bounds = array<i64: 1, 16, 16, 128>}, {pipeline_mode = #tpu.pipeline_mode<synchronous>, transform_indices = @transform_1, window_bounds = array<i64: 1, 128>}, {pipeline_mode = #tpu.pipeline_mode<synchronous>, transform_indices = @transform_2, window_bounds = array<i64: 1, 128>}, {pipeline_mode = #tpu.pipeline_mode<synchronous>, transform_indices = @transform_3, window_bounds = array<i64: 9, 128, 128>}, {pipeline_mode = #tpu.pipeline_mode<synchronous>, transform_indices = @transform_4, window_bounds = array<i64: 1, 128>}, {transform_indices = @transform_5, window_bounds = array<i64: 1, 8, 16, 128>}, {transform_indices = @transform_6, window_bounds = array<i64: 1, 1, 2, 128>}]} {
    %c8_i32 = arith.constant 8 : i32
    %0 = arith.muli %arg1, %c8_i32 : i32
    %c0 = arith.constant 0 : index
    %c0_0 = arith.constant 0 : index
    %1 = vector.load %arg3[%c0, %c0_0] : memref<1x128xf32, #tpu.memory_space<vmem>>, vector<1x128xf32>
    %c0_1 = arith.constant 0 : index
    %c0_2 = arith.constant 0 : index
    %2 = vector.load %arg4[%c0_1, %c0_2] : memref<1x128xf32, #tpu.memory_space<vmem>>, vector<1x128xf32>
    %3 = tpu.assume_multiple %0, 8 : i32
    %c0_3 = arith.constant 0 : index
    %4 = arith.index_cast %3 : i32 to index
    %c0_4 = arith.constant 0 : index
    %c0_5 = arith.constant 0 : index
    %5 = vector.load %arg2[%c0_3, %4, %c0_4, %c0_5] : memref<1x16x16x128xbf16, #tpu.memory_space<vmem>>, vector<1x8x16x128xbf16>
    %6 = vector.shape_cast %5 : vector<1x8x16x128xbf16> to vector<8x16x128xbf16>
    %7 = arith.extf %6 : vector<8x16x128xbf16> to vector<8x16x128xf32>
    %8 = vector.shape_cast %1 : vector<1x128xf32> to vector<1x1x128xf32>
    %9 = vector.broadcast %8 : vector<1x1x128xf32> to vector<8x16x128xf32>
    %10 = arith.mulf %7, %9 : vector<8x16x128xf32>
    %11 = vector.shape_cast %2 : vector<1x128xf32> to vector<1x1x128xf32>
    %12 = vector.broadcast %11 : vector<1x1x128xf32> to vector<8x16x128xf32>
    %13 = arith.addf %10, %12 : vector<8x16x128xf32>
    %cst = arith.constant 0.000000e+00 : f32
    %14 = vector.broadcast %cst : f32 to vector<8x16x128xf32>
    %15 = arith.maximumf %13, %14 : vector<8x16x128xf32>
    %16 = arith.truncf %15 : vector<8x16x128xf32> to vector<8x16x128xbf16>
    %c1 = arith.constant 1 : index
    %c1_6 = arith.constant 1 : index
    %c0_7 = arith.constant 0 : index
    %17 = vector.load %arg9[%c1, %c1_6, %c0_7] : memref<10x24x128xbf16, #tpu.memory_space<vmem>>, vector<8x16x128xbf16>
    tpu.vector_store %arg9[%c1, %c1_6, %c0_7], %16 {strides = array<i32>} : memref<10x24x128xbf16, #tpu.memory_space<vmem>>, vector<8x16x128xbf16>,
    %c0_i32 = arith.constant 0 : i32
    %18 = arith.cmpi sgt, %0, %c0_i32 : i32
    %c1_i32 = arith.constant 1 : i32
    %19 = arith.subi %0, %c1_i32 : i32
    %c0_i32_8 = arith.constant 0 : i32
    %20 = arith.maxsi %19, %c0_i32_8 : i32
    %c0_9 = arith.constant 0 : index
    %21 = arith.index_cast %20 : i32 to index
    %c0_10 = arith.constant 0 : index
    %c0_11 = arith.constant 0 : index
    %22 = vector.load %arg2[%c0_9, %21, %c0_10, %c0_11] : memref<1x16x16x128xbf16, #tpu.memory_space<vmem>>, vector<1x1x16x128xbf16>
    %23 = vector.shape_cast %22 : vector<1x1x16x128xbf16> to vector<1x16x128xbf16>
    %24 = arith.extf %23 : vector<1x16x128xbf16> to vector<1x16x128xf32>
    %25 = vector.shape_cast %1 : vector<1x128xf32> to vector<1x1x128xf32>
    %26 = vector.broadcast %25 : vector<1x1x128xf32> to vector<1x16x128xf32>
    %27 = arith.mulf %24, %26 : vector<1x16x128xf32>
    %28 = vector.shape_cast %2 : vector<1x128xf32> to vector<1x1x128xf32>
    %29 = vector.broadcast %28 : vector<1x1x128xf32> to vector<1x16x128xf32>
    %30 = arith.addf %27, %29 : vector<1x16x128xf32>
    %cst_12 = arith.constant 0.000000e+00 : f32
    %31 = vector.broadcast %cst_12 : f32 to vector<1x16x128xf32>
    %32 = arith.maximumf %30, %31 : vector<1x16x128xf32>
    %cst_13 = arith.constant 0.000000e+00 : f32
    %33 = vector.broadcast %cst_13 : f32 to vector<1x16x128xf32>
    %34 = arith.select %18, %32, %33 : vector<1x16x128xf32>
    %35 = arith.truncf %34 : vector<1x16x128xf32> to vector<1x16x128xbf16>
    %c0_14 = arith.constant 0 : index
    %c1_15 = arith.constant 1 : index
    %c0_16 = arith.constant 0 : index
    %36 = vector.load %arg9[%c0_14, %c1_15, %c0_16] : memref<10x24x128xbf16, #tpu.memory_space<vmem>>, vector<1x16x128xbf16>
    tpu.vector_store %arg9[%c0_14, %c1_15, %c0_16], %35 {strides = array<i32>} : memref<10x24x128xbf16, #tpu.memory_space<vmem>>, vector<1x16x128xbf16>,
    %c8_i32_17 = arith.constant 8 : i32
    %37 = arith.addi %0, %c8_i32_17 : i32
    %c16_i32 = arith.constant 16 : i32
    %38 = arith.cmpi slt, %37, %c16_i32 : i32
    %c8_i32_18 = arith.constant 8 : i32
    %39 = arith.addi %0, %c8_i32_18 : i32
    %c15_i32 = arith.constant 15 : i32
    %40 = arith.minsi %39, %c15_i32 : i32
    %c0_19 = arith.constant 0 : index
    %41 = arith.index_cast %40 : i32 to index
    %c0_20 = arith.constant 0 : index
    %c0_21 = arith.constant 0 : index
    %42 = vector.load %arg2[%c0_19, %41, %c0_20, %c0_21] : memref<1x16x16x128xbf16, #tpu.memory_space<vmem>>, vector<1x1x16x128xbf16>
    %43 = vector.shape_cast %42 : vector<1x1x16x128xbf16> to vector<1x16x128xbf16>
    %44 = arith.extf %43 : vector<1x16x128xbf16> to vector<1x16x128xf32>
    %45 = vector.shape_cast %1 : vector<1x128xf32> to vector<1x1x128xf32>
    %46 = vector.broadcast %45 : vector<1x1x128xf32> to vector<1x16x128xf32>
    %47 = arith.mulf %44, %46 : vector<1x16x128xf32>
    %48 = vector.shape_cast %2 : vector<1x128xf32> to vector<1x1x128xf32>
    %49 = vector.broadcast %48 : vector<1x1x128xf32> to vector<1x16x128xf32>
    %50 = arith.addf %47, %49 : vector<1x16x128xf32>
    %cst_22 = arith.constant 0.000000e+00 : f32
    %51 = vector.broadcast %cst_22 : f32 to vector<1x16x128xf32>
    %52 = arith.maximumf %50, %51 : vector<1x16x128xf32>
    %cst_23 = arith.constant 0.000000e+00 : f32
    %53 = vector.broadcast %cst_23 : f32 to vector<1x16x128xf32>
    %54 = arith.select %38, %52, %53 : vector<1x16x128xf32>
    %55 = arith.truncf %54 : vector<1x16x128xf32> to vector<1x16x128xbf16>
    %c9 = arith.constant 9 : index
    %c1_24 = arith.constant 1 : index
    %c0_25 = arith.constant 0 : index
    %56 = vector.load %arg9[%c9, %c1_24, %c0_25] : memref<10x24x128xbf16, #tpu.memory_space<vmem>>, vector<1x16x128xbf16>
    tpu.vector_store %arg9[%c9, %c1_24, %c0_25], %55 {strides = array<i32>} : memref<10x24x128xbf16, #tpu.memory_space<vmem>>, vector<1x16x128xbf16>,
    %cst_26 = arith.constant 0.000000e+00 : bf16
    %57 = vector.broadcast %cst_26 : bf16 to vector<10x1x128xbf16>
    %c0_27 = arith.constant 0 : index
    %c0_28 = arith.constant 0 : index
    %c0_29 = arith.constant 0 : index
    %58 = vector.load %arg9[%c0_27, %c0_28, %c0_29] : memref<10x24x128xbf16, #tpu.memory_space<vmem>>, vector<10x1x128xbf16>
    tpu.vector_store %arg9[%c0_27, %c0_28, %c0_29], %57 {strides = array<i32>} : memref<10x24x128xbf16, #tpu.memory_space<vmem>>, vector<10x1x128xbf16>,
    %c0_30 = arith.constant 0 : index
    %c17 = arith.constant 17 : index
    %c0_31 = arith.constant 0 : index
    %59 = vector.load %arg9[%c0_30, %c17, %c0_31] : memref<10x24x128xbf16, #tpu.memory_space<vmem>>, vector<10x1x128xbf16>
    tpu.vector_store %arg9[%c0_30, %c17, %c0_31], %57 {strides = array<i32>} : memref<10x24x128xbf16, #tpu.memory_space<vmem>>, vector<10x1x128xbf16>,
    %c0_32 = arith.constant 0 : index
    %c0_33 = arith.constant 0 : index
    %60 = vector.load %arg6[%c0_32, %c0_33] : memref<1x128xf32, #tpu.memory_space<vmem>>, vector<1x128xf32>
    %c0_34 = arith.constant 0 : index
    %c0_35 = arith.constant 0 : index
    %c0_36 = arith.constant 0 : index
    %61 = vector.load %arg9[%c0_34, %c0_35, %c0_36] : memref<10x24x128xbf16, #tpu.memory_space<vmem>>, vector<8x16x128xbf16>
    %62 = vector.shape_cast %61 : vector<8x16x128xbf16> to vector<128x128xbf16>
    %c0_37 = arith.constant 0 : index
    %c0_38 = arith.constant 0 : index
    %c0_39 = arith.constant 0 : index
    %63 = vector.load %arg5[%c0_37, %c0_38, %c0_39] : memref<9x128x128xbf16, #tpu.memory_space<vmem>>, vector<1x128x128xbf16>
    %64 = vector.shape_cast %63 : vector<1x128x128xbf16> to vector<128x128xbf16>
    %cst_40 = arith.constant dense<0.000000e+00> : vector<128x128xf32>
    %65 = tpu.matmul %62, %64, %cst_40 {dimension_numbers = #tpu.dot_dimension_numbers<[1], [0], [0], [1], [0, 0, 1, 1], [], []>} : vector<128x128xbf16>, vector<128x128xbf16>, vector<128x128xf32> -> vector<128x128xf32>
    %c0_41 = arith.constant 0 : index
    %c1_42 = arith.constant 1 : index
    %c0_43 = arith.constant 0 : index
    %66 = vector.load %arg9[%c0_41, %c1_42, %c0_43] : memref<10x24x128xbf16, #tpu.memory_space<vmem>>, vector<8x16x128xbf16>
    %67 = vector.shape_cast %66 : vector<8x16x128xbf16> to vector<128x128xbf16>
    %c1_44 = arith.constant 1 : index
    %c0_45 = arith.constant 0 : index
    %c0_46 = arith.constant 0 : index
    %68 = vector.load %arg5[%c1_44, %c0_45, %c0_46] : memref<9x128x128xbf16, #tpu.memory_space<vmem>>, vector<1x128x128xbf16>
    %69 = vector.shape_cast %68 : vector<1x128x128xbf16> to vector<128x128xbf16>
    %cst_47 = arith.constant dense<0.000000e+00> : vector<128x128xf32>
    %70 = tpu.matmul %67, %69, %cst_47 {dimension_numbers = #tpu.dot_dimension_numbers<[1], [0], [0], [1], [0, 0, 1, 1], [], []>} : vector<128x128xbf16>, vector<128x128xbf16>, vector<128x128xf32> -> vector<128x128xf32>
    %71 = arith.addf %65, %70 : vector<128x128xf32>
    %c0_48 = arith.constant 0 : index
    %c2 = arith.constant 2 : index
    %c0_49 = arith.constant 0 : index
    %72 = vector.load %arg9[%c0_48, %c2, %c0_49] : memref<10x24x128xbf16, #tpu.memory_space<vmem>>, vector<8x16x128xbf16>
    %73 = vector.shape_cast %72 : vector<8x16x128xbf16> to vector<128x128xbf16>
    %c2_50 = arith.constant 2 : index
    %c0_51 = arith.constant 0 : index
    %c0_52 = arith.constant 0 : index
    %74 = vector.load %arg5[%c2_50, %c0_51, %c0_52] : memref<9x128x128xbf16, #tpu.memory_space<vmem>>, vector<1x128x128xbf16>
    %75 = vector.shape_cast %74 : vector<1x128x128xbf16> to vector<128x128xbf16>
    %cst_53 = arith.constant dense<0.000000e+00> : vector<128x128xf32>
    %76 = tpu.matmul %73, %75, %cst_53 {dimension_numbers = #tpu.dot_dimension_numbers<[1], [0], [0], [1], [0, 0, 1, 1], [], []>} : vector<128x128xbf16>, vector<128x128xbf16>, vector<128x128xf32> -> vector<128x128xf32>
    %77 = arith.addf %71, %76 : vector<128x128xf32>
    %c1_54 = arith.constant 1 : index
    %c0_55 = arith.constant 0 : index
    %c0_56 = arith.constant 0 : index
    %78 = vector.load %arg9[%c1_54, %c0_55, %c0_56] : memref<10x24x128xbf16, #tpu.memory_space<vmem>>, vector<8x16x128xbf16>
    %79 = vector.shape_cast %78 : vector<8x16x128xbf16> to vector<128x128xbf16>
    %c3 = arith.constant 3 : index
    %c0_57 = arith.constant 0 : index
    %c0_58 = arith.constant 0 : index
    %80 = vector.load %arg5[%c3, %c0_57, %c0_58] : memref<9x128x128xbf16, #tpu.memory_space<vmem>>, vector<1x128x128xbf16>
    %81 = vector.shape_cast %80 : vector<1x128x128xbf16> to vector<128x128xbf16>
    %cst_59 = arith.constant dense<0.000000e+00> : vector<128x128xf32>
    %82 = tpu.matmul %79, %81, %cst_59 {dimension_numbers = #tpu.dot_dimension_numbers<[1], [0], [0], [1], [0, 0, 1, 1], [], []>} : vector<128x128xbf16>, vector<128x128xbf16>, vector<128x128xf32> -> vector<128x128xf32>
    %83 = arith.addf %77, %82 : vector<128x128xf32>
    %c1_60 = arith.constant 1 : index
    %c1_61 = arith.constant 1 : index
    %c0_62 = arith.constant 0 : index
    %84 = vector.load %arg9[%c1_60, %c1_61, %c0_62] : memref<10x24x128xbf16, #tpu.memory_space<vmem>>, vector<8x16x128xbf16>
    %85 = vector.shape_cast %84 : vector<8x16x128xbf16> to vector<128x128xbf16>
    %c4 = arith.constant 4 : index
    %c0_63 = arith.constant 0 : index
    %c0_64 = arith.constant 0 : index
    %86 = vector.load %arg5[%c4, %c0_63, %c0_64] : memref<9x128x128xbf16, #tpu.memory_space<vmem>>, vector<1x128x128xbf16>
    %87 = vector.shape_cast %86 : vector<1x128x128xbf16> to vector<128x128xbf16>
    %cst_65 = arith.constant dense<0.000000e+00> : vector<128x128xf32>
    %88 = tpu.matmul %85, %87, %cst_65 {dimension_numbers = #tpu.dot_dimension_numbers<[1], [0], [0], [1], [0, 0, 1, 1], [], []>} : vector<128x128xbf16>, vector<128x128xbf16>, vector<128x128xf32> -> vector<128x128xf32>
    %89 = arith.addf %83, %88 : vector<128x128xf32>
    %c1_66 = arith.constant 1 : index
    %c2_67 = arith.constant 2 : index
    %c0_68 = arith.constant 0 : index
    %90 = vector.load %arg9[%c1_66, %c2_67, %c0_68] : memref<10x24x128xbf16, #tpu.memory_space<vmem>>, vector<8x16x128xbf16>
    %91 = vector.shape_cast %90 : vector<8x16x128xbf16> to vector<128x128xbf16>
    %c5 = arith.constant 5 : index
    %c0_69 = arith.constant 0 : index
    %c0_70 = arith.constant 0 : index
    %92 = vector.load %arg5[%c5, %c0_69, %c0_70] : memref<9x128x128xbf16, #tpu.memory_space<vmem>>, vector<1x128x128xbf16>
    %93 = vector.shape_cast %92 : vector<1x128x128xbf16> to vector<128x128xbf16>
    %cst_71 = arith.constant dense<0.000000e+00> : vector<128x128xf32>
    %94 = tpu.matmul %91, %93, %cst_71 {dimension_numbers = #tpu.dot_dimension_numbers<[1], [0], [0], [1], [0, 0, 1, 1], [], []>} : vector<128x128xbf16>, vector<128x128xbf16>, vector<128x128xf32> -> vector<128x128xf32>
    %95 = arith.addf %89, %94 : vector<128x128xf32>
    %c2_72 = arith.constant 2 : index
    %c0_73 = arith.constant 0 : index
    %c0_74 = arith.constant 0 : index
    %96 = vector.load %arg9[%c2_72, %c0_73, %c0_74] : memref<10x24x128xbf16, #tpu.memory_space<vmem>>, vector<8x16x128xbf16>
    %97 = vector.shape_cast %96 : vector<8x16x128xbf16> to vector<128x128xbf16>
    %c6 = arith.constant 6 : index
    %c0_75 = arith.constant 0 : index
    %c0_76 = arith.constant 0 : index
    %98 = vector.load %arg5[%c6, %c0_75, %c0_76] : memref<9x128x128xbf16, #tpu.memory_space<vmem>>, vector<1x128x128xbf16>
    %99 = vector.shape_cast %98 : vector<1x128x128xbf16> to vector<128x128xbf16>
    %cst_77 = arith.constant dense<0.000000e+00> : vector<128x128xf32>
    %100 = tpu.matmul %97, %99, %cst_77 {dimension_numbers = #tpu.dot_dimension_numbers<[1], [0], [0], [1], [0, 0, 1, 1], [], []>} : vector<128x128xbf16>, vector<128x128xbf16>, vector<128x128xf32> -> vector<128x128xf32>
    %101 = arith.addf %95, %100 : vector<128x128xf32>
    %c2_78 = arith.constant 2 : index
    %c1_79 = arith.constant 1 : index
    %c0_80 = arith.constant 0 : index
    %102 = vector.load %arg9[%c2_78, %c1_79, %c0_80] : memref<10x24x128xbf16, #tpu.memory_space<vmem>>, vector<8x16x128xbf16>
    %103 = vector.shape_cast %102 : vector<8x16x128xbf16> to vector<128x128xbf16>
    %c7 = arith.constant 7 : index
    %c0_81 = arith.constant 0 : index
    %c0_82 = arith.constant 0 : index
    %104 = vector.load %arg5[%c7, %c0_81, %c0_82] : memref<9x128x128xbf16, #tpu.memory_space<vmem>>, vector<1x128x128xbf16>
    %105 = vector.shape_cast %104 : vector<1x128x128xbf16> to vector<128x128xbf16>
    %cst_83 = arith.constant dense<0.000000e+00> : vector<128x128xf32>
    %106 = tpu.matmul %103, %105, %cst_83 {dimension_numbers = #tpu.dot_dimension_numbers<[1], [0], [0], [1], [0, 0, 1, 1], [], []>} : vector<128x128xbf16>, vector<128x128xbf16>, vector<128x128xf32> -> vector<128x128xf32>
    %107 = arith.addf %101, %106 : vector<128x128xf32>
    %c2_84 = arith.constant 2 : index
    %c2_85 = arith.constant 2 : index
    %c0_86 = arith.constant 0 : index
    %108 = vector.load %arg9[%c2_84, %c2_85, %c0_86] : memref<10x24x128xbf16, #tpu.memory_space<vmem>>, vector<8x16x128xbf16>
    %109 = vector.shape_cast %108 : vector<8x16x128xbf16> to vector<128x128xbf16>
    %c8 = arith.constant 8 : index
    %c0_87 = arith.constant 0 : index
    %c0_88 = arith.constant 0 : index
    %110 = vector.load %arg5[%c8, %c0_87, %c0_88] : memref<9x128x128xbf16, #tpu.memory_space<vmem>>, vector<1x128x128xbf16>
    %111 = vector.shape_cast %110 : vector<1x128x128xbf16> to vector<128x128xbf16>
    %cst_89 = arith.constant dense<0.000000e+00> : vector<128x128xf32>
    %112 = tpu.matmul %109, %111, %cst_89 {dimension_numbers = #tpu.dot_dimension_numbers<[1], [0], [0], [1], [0, 0, 1, 1], [], []>} : vector<128x128xbf16>, vector<128x128xbf16>, vector<128x128xf32> -> vector<128x128xf32>
    %113 = arith.addf %107, %112 : vector<128x128xf32>
    %114 = vector.broadcast %60 : vector<1x128xf32> to vector<128x128xf32>
    %115 = arith.addf %113, %114 : vector<128x128xf32>
    %116 = vector.shape_cast %115 : vector<128x128xf32> to vector<8x16x128xf32>
    %117 = arith.truncf %116 : vector<8x16x128xf32> to vector<8x16x128xbf16>
    %c0_90 = arith.constant 0 : index
    %c0_91 = arith.constant 0 : index
    %c0_92 = arith.constant 0 : index
    %c0_93 = arith.constant 0 : index
    %118 = vector.load %arg7[%c0_90, %c0_91, %c0_92, %c0_93] : memref<1x8x16x128xbf16, #tpu.memory_space<vmem>>, vector<1x8x16x128xbf16>
    %119 = vector.shape_cast %118 : vector<1x8x16x128xbf16> to vector<8x16x128xbf16>
    %120 = vector.shape_cast %117 : vector<8x16x128xbf16> to vector<1x8x16x128xbf16>
    tpu.vector_store %arg7[%c0_90, %c0_91, %c0_92, %c0_93], %120 {strides = array<i32>} : memref<1x8x16x128xbf16, #tpu.memory_space<vmem>>, vector<1x8x16x128xbf16>,
    %cst_94 = arith.constant dense<0.000000e+00> : vector<128xf32>
    %121 = vector.multi_reduction <add>, %115, %cst_94 [0] : vector<128x128xf32> to vector<128xf32>
    %122 = vector.shape_cast %121 : vector<128xf32> to vector<1x128xf32>
    %123 = arith.mulf %115, %115 : vector<128x128xf32>
    %cst_95 = arith.constant dense<0.000000e+00> : vector<128xf32>
    %124 = vector.multi_reduction <add>, %123, %cst_95 [0] : vector<128x128xf32> to vector<128xf32>
    %125 = vector.shape_cast %124 : vector<128xf32> to vector<1x128xf32>
    %126 = tpu.concatenate %122, %125 in 0 : vector<1x128xf32>, vector<1x128xf32> -> vector<2x128xf32>
    %c0_96 = arith.constant 0 : index
    %c0_97 = arith.constant 0 : index
    %c0_98 = arith.constant 0 : index
    %c0_99 = arith.constant 0 : index
    %127 = vector.load %arg8[%c0_96, %c0_97, %c0_98, %c0_99] : memref<1x1x2x128xf32, #tpu.memory_space<vmem>>, vector<1x1x2x128xf32>
    %128 = vector.shape_cast %127 : vector<1x1x2x128xf32> to vector<2x128xf32>
    %129 = vector.shape_cast %126 : vector<2x128xf32> to vector<1x1x2x128xf32>
    tpu.vector_store %arg8[%c0_96, %c0_97, %c0_98, %c0_99], %129 {strides = array<i32>} : memref<1x1x2x128xf32, #tpu.memory_space<vmem>>, vector<1x1x2x128xf32>,
    return
  }
  func.func @transform_0(%arg0: i32, %arg1: i32) -> (i32, i32, i32, i32) {
    %c0_i32 = arith.constant 0 : i32
    %c0_i32_0 = arith.constant 0 : i32
    %c0_i32_1 = arith.constant 0 : i32
    %c0_i32_2 = arith.constant 0 : i32
    return %arg0, %c0_i32, %c0_i32_0, %c0_i32_1 : i32, i32, i32, i32
  }
  func.func @transform_1(%arg0: i32, %arg1: i32) -> (i32, i32) {
    %c0_i32 = arith.constant 0 : i32
    %c0_i32_0 = arith.constant 0 : i32
    %c0_i32_1 = arith.constant 0 : i32
    return %c0_i32, %c0_i32_0 : i32, i32
  }
  func.func @transform_2(%arg0: i32, %arg1: i32) -> (i32, i32) {
    %c0_i32 = arith.constant 0 : i32
    %c0_i32_0 = arith.constant 0 : i32
    %c0_i32_1 = arith.constant 0 : i32
    return %c0_i32, %c0_i32_0 : i32, i32
  }
  func.func @transform_3(%arg0: i32, %arg1: i32) -> (i32, i32, i32) {
    %c0_i32 = arith.constant 0 : i32
    %c0_i32_0 = arith.constant 0 : i32
    %c0_i32_1 = arith.constant 0 : i32
    %c0_i32_2 = arith.constant 0 : i32
    return %c0_i32, %c0_i32_0, %c0_i32_1 : i32, i32, i32
  }
  func.func @transform_4(%arg0: i32, %arg1: i32) -> (i32, i32) {
    %c0_i32 = arith.constant 0 : i32
    %c0_i32_0 = arith.constant 0 : i32
    %c0_i32_1 = arith.constant 0 : i32
    return %c0_i32, %c0_i32_0 : i32, i32
  }
  func.func @transform_5(%arg0: i32, %arg1: i32) -> (i32, i32, i32, i32) {
    %c0_i32 = arith.constant 0 : i32
    %c0_i32_0 = arith.constant 0 : i32
    %c0_i32_1 = arith.constant 0 : i32
    return %arg0, %arg1, %c0_i32, %c0_i32_0 : i32, i32, i32, i32
  }
  func.func @transform_6(%arg0: i32, %arg1: i32) -> (i32, i32, i32, i32) {
    %c0_i32 = arith.constant 0 : i32
    %c0_i32_0 = arith.constant 0 : i32
    %c0_i32_1 = arith.constant 0 : i32
    return %arg0, %arg1, %c0_i32, %c0_i32_0 : i32, i32, i32, i32
  }
}

module attributes {stable_mosaic.version = 11 : i64} {
  func.func @bn2_residual_relu_kernel(%arg0: i32, %arg1: i32, %arg2: memref<1x8x16x128xbf16, #tpu.memory_space<vmem>>, %arg3: memref<1x8x16x128xbf16, #tpu.memory_space<vmem>>, %arg4: memref<1x128xf32, #tpu.memory_space<vmem>>, %arg5: memref<1x128xf32, #tpu.memory_space<vmem>>, %arg6: memref<1x8x16x128xf32, #tpu.memory_space<vmem>>) attributes {dimension_semantics = [#tpu.dimension_semantics<parallel>, #tpu.dimension_semantics<parallel>], iteration_bounds = array<i64: 2, 2>, scalar_prefetch = 0 : i64, scratch_operands = 0 : i64, tpu.core_type = #tpu.core_type<tc>, window_params = [{transform_indices = @transform_0, window_bounds = array<i64: 1, 8, 16, 128>}, {transform_indices = @transform_1, window_bounds = array<i64: 1, 8, 16, 128>}, {pipeline_mode = #tpu.pipeline_mode<synchronous>, transform_indices = @transform_2, window_bounds = array<i64: 1, 128>}, {pipeline_mode = #tpu.pipeline_mode<synchronous>, transform_indices = @transform_3, window_bounds = array<i64: 1, 128>}, {transform_indices = @transform_4, window_bounds = array<i64: 1, 8, 16, 128>}]} {
    %c0 = arith.constant 0 : index
    %c0_0 = arith.constant 0 : index
    %c0_1 = arith.constant 0 : index
    %c0_2 = arith.constant 0 : index
    %0 = vector.load %arg2[%c0, %c0_0, %c0_1, %c0_2] : memref<1x8x16x128xbf16, #tpu.memory_space<vmem>>, vector<1x8x16x128xbf16>
    %1 = vector.shape_cast %0 : vector<1x8x16x128xbf16> to vector<8x16x128xbf16>
    %2 = arith.extf %1 : vector<8x16x128xbf16> to vector<8x16x128xf32>
    %c0_3 = arith.constant 0 : index
    %c0_4 = arith.constant 0 : index
    %c0_5 = arith.constant 0 : index
    %c0_6 = arith.constant 0 : index
    %3 = vector.load %arg3[%c0_3, %c0_4, %c0_5, %c0_6] : memref<1x8x16x128xbf16, #tpu.memory_space<vmem>>, vector<1x8x16x128xbf16>
    %4 = vector.shape_cast %3 : vector<1x8x16x128xbf16> to vector<8x16x128xbf16>
    %5 = arith.extf %4 : vector<8x16x128xbf16> to vector<8x16x128xf32>
    %c0_7 = arith.constant 0 : index
    %c0_8 = arith.constant 0 : index
    %6 = vector.load %arg4[%c0_7, %c0_8] : memref<1x128xf32, #tpu.memory_space<vmem>>, vector<1x128xf32>
    %7 = vector.shape_cast %6 : vector<1x128xf32> to vector<1x1x128xf32>
    %8 = vector.broadcast %7 : vector<1x1x128xf32> to vector<8x16x128xf32>
    %9 = arith.mulf %2, %8 : vector<8x16x128xf32>
    %c0_9 = arith.constant 0 : index
    %c0_10 = arith.constant 0 : index
    %10 = vector.load %arg5[%c0_9, %c0_10] : memref<1x128xf32, #tpu.memory_space<vmem>>, vector<1x128xf32>
    %11 = vector.shape_cast %10 : vector<1x128xf32> to vector<1x1x128xf32>
    %12 = vector.broadcast %11 : vector<1x1x128xf32> to vector<8x16x128xf32>
    %13 = arith.addf %9, %12 : vector<8x16x128xf32>
    %14 = arith.addf %13, %5 : vector<8x16x128xf32>
    %cst = arith.constant 0.000000e+00 : f32
    %15 = vector.broadcast %cst : f32 to vector<8x16x128xf32>
    %16 = arith.maximumf %14, %15 : vector<8x16x128xf32>
    %c0_11 = arith.constant 0 : index
    %c0_12 = arith.constant 0 : index
    %c0_13 = arith.constant 0 : index
    %c0_14 = arith.constant 0 : index
    %17 = vector.load %arg6[%c0_11, %c0_12, %c0_13, %c0_14] : memref<1x8x16x128xf32, #tpu.memory_space<vmem>>, vector<1x8x16x128xf32>
    %18 = vector.shape_cast %17 : vector<1x8x16x128xf32> to vector<8x16x128xf32>
    %19 = vector.shape_cast %16 : vector<8x16x128xf32> to vector<1x8x16x128xf32>
    tpu.vector_store %arg6[%c0_11, %c0_12, %c0_13, %c0_14], %19 {strides = array<i32>} : memref<1x8x16x128xf32, #tpu.memory_space<vmem>>, vector<1x8x16x128xf32>,
    return
  }
  func.func @transform_0(%arg0: i32, %arg1: i32) -> (i32, i32, i32, i32) {
    %c0_i32 = arith.constant 0 : i32
    %c0_i32_0 = arith.constant 0 : i32
    %c0_i32_1 = arith.constant 0 : i32
    return %arg0, %arg1, %c0_i32, %c0_i32_0 : i32, i32, i32, i32
  }
  func.func @transform_1(%arg0: i32, %arg1: i32) -> (i32, i32, i32, i32) {
    %c0_i32 = arith.constant 0 : i32
    %c0_i32_0 = arith.constant 0 : i32
    %c0_i32_1 = arith.constant 0 : i32
    return %arg0, %arg1, %c0_i32, %c0_i32_0 : i32, i32, i32, i32
  }
  func.func @transform_2(%arg0: i32, %arg1: i32) -> (i32, i32) {
    %c0_i32 = arith.constant 0 : i32
    %c0_i32_0 = arith.constant 0 : i32
    %c0_i32_1 = arith.constant 0 : i32
    return %c0_i32, %c0_i32_0 : i32, i32
  }
  func.func @transform_3(%arg0: i32, %arg1: i32) -> (i32, i32) {
    %c0_i32 = arith.constant 0 : i32
    %c0_i32_0 = arith.constant 0 : i32
    %c0_i32_1 = arith.constant 0 : i32
    return %c0_i32, %c0_i32_0 : i32, i32
  }
  func.func @transform_4(%arg0: i32, %arg1: i32) -> (i32, i32, i32, i32) {
    %c0_i32 = arith.constant 0 : i32
    %c0_i32_0 = arith.constant 0 : i32
    %c0_i32_1 = arith.constant 0 : i32
    return %arg0, %arg1, %c0_i32, %c0_i32_0 : i32, i32, i32, i32
  }
}

</mosaic_0001>

<bundles_post_ra>
// kernel: resblock_forward.5
= control target key start
LH: loop header
LB: loop body
LE: loop exit
PB: predicated region body
PF: predicated region fallthrough
CT: control target
= control target key end

     0   :  { %s757_s15 = smov 0   ;;  %s759_s16 = smov 0   ;;  %s895_s0 = inlined_call_operand.vmem [shape: bf16[2,16,16,128], index: 0, kind: input, shape index: {}]   ;;  %s896_s1 = inlined_call_operand.vmem [shape: bf16[2,16,16,128], index: 1, kind: input, shape index: {}]   ;;  %s897_s2 = inlined_call_operand.vmem [shape: f32[1,128], index: 2, kind: input, shape index: {}]   ;;  %s898_s3 = inlined_call_operand.vmem [shape: f32[1,128], index: 3, kind: input, shape index: {}]   ;;  %s899_s4 = inlined_call_operand.vmem [shape: f32[2,16,16,128], index: 4, kind: output, shape index: {}]  }
   0x1   :  { %s761_s17 = smov 0   ;;  %s763_s18 = smov 0  }
   0x2   :  { %s765_s19 = smov 0  }
   0x3 LB: > { %s23_s20 = sadd.s32 1, %s722_s17  ;;  %s26_s21 = sadd.s32 1, %s726_s18  ;;  %s730_s19 = sphi %s765_s19, %s14_s19   ;;  %s726_s18 = sphi %s763_s18, %s903_s18   ;;  %s722_s17 = sphi %s761_s17, %s902_s17   ;;  %s718_s16 = sphi %s759_s16, %s901_s16   ;;  %s714_s15 = sphi %s757_s15, %s900_s15  }
   0x4   : > { %p24_p0 = scmp.ge.s32.totalorder %s23_s20, 2  ;;  %p557_p1 = scmp.ge.s32.totalorder %s730_s19, 1 }
   0x5   : > { %p202_p2 = scmp.lt.s32.totalorder %s730_s19, 5 }
   0x6   : > { %s905_s20 = smov (%p24_p0, %s23_s20), 0  ;;  %s907_s21 = smov (!%p24_p0, %s26_s21), %s726_s18 }
   0x7   : > { %p203_p3 = pnand %p557_p1, %p202_p2  ;;  %p28_p4 = scmp.ge.s32.totalorder %s907_s21, 2 }
   0x8   : > { %s558_s22 = sshll.u32 (!%p203_p3), %s714_s15, 3  ;;  %p249_p5 = scmp.lt.s32.totalorder (!%p203_p3), %s718_s16, 1 }
   0x9   : > { %s909_s21 = smov (%p28_p4, %s907_s21), 0  ;;  %206 = sbr.rel (%p203_p3) target bundleno = 51 (0x33), region = 36 }
   0xa   : > { %p251_p6 = scmp.lt.s32.totalorder (!%p203_p3), %s558_s22, 15 }
   0xe   : > { %s911_s16 = smov (!%p249_p5, %s718_s16), 1  ;;  %s913_s22 = smov (!%p251_p6, %s558_s22), 15  ;;  %v803_v0 = vld [vmem:[%s897_s2] ss:$0 sm:$0xff] }
   0xf   : > { %s560_s23 = sshll.u32 %s911_s16, 5  ;;  %s559_s24 = sshll.u32 %s913_s22, 1  ;;  %v808_v1 = vld [vmem:[%s898_s3] ss:$0 sm:$0xff] }
  0x10   : > { %s787_s25 = sadd.s32 %s560_s23, %s559_s24 }
  0x11   : > { %s561_s26 = sshll.u32 %s787_s25, 2  ;;  %s569_s11 = sshll.u32 %s787_s25, 3 }
  0x12   : > { %s793_s29 = scalar_lea.vmem %s895_s0, %s561_s26  ;;  %s798_s6 = scalar_lea.vmem %s896_s1, %s561_s26 }
  0x13   : > { %v573_v2 = vld [vmem:[%s793_s29] sm:$0xff]   ;;  %v636_v4 = vld [vmem:[%s793_s29 + $0x8] sm:$0xff]   ;;  %v637_v10 = vld [vmem:[%s793_s29 + $0x10] sm:$0xff]   ;;  %s834_s14 = scalar_lea.vmem %s899_s4, %s569_s11 }
  0x14   : > { %v605_v3 = vld [vmem:[%s798_s6] sm:$0xff]   ;;  %v574_v5 = vunpack.c.l.bf16 %v573_v2  ;;  %v575_v7 = vunpack.c.h.bf16 %v573_v2  ;;  %v643_v9 = vld [vmem:[%s798_s6 + $0x8] sm:$0xff]   ;;  %v644_v11 = vld [vmem:[%s798_s6 + $0x10] sm:$0xff]   ;;  %v578_v12 = vunpack.c.l.bf16 %v636_v4  ;;  %v579_v14 = vunpack.c.h.bf16 %v636_v4 }
  0x15   : > { %v606_v6 = vunpack.c.l.bf16 %v605_v3  ;;  %v607_v8 = vunpack.c.h.bf16 %v605_v3  ;;  %v610_v13 = vunpack.c.l.bf16 %v643_v9  ;;  %v611_v15 = vunpack.c.h.bf16 %v643_v9  ;;  %v638_v16 = vld [vmem:[%s793_s29 + $0x18] sm:$0xff]   ;;  %v639_v42 = vld [vmem:[%s793_s29 + $0x20] sm:$0xff]   ;;  %v640_v52 = vld [vmem:[%s793_s29 + $0x28] sm:$0xff]  }
  0x16   : > { %v349_v17 = vmul.f32 %v803_v0, %v574_v5  ;;  %v350_v18 = vmul.f32 %v803_v0, %v575_v7  ;;  %v582_v19 = vunpack.c.l.bf16 %v637_v10  ;;  %v614_v20 = vunpack.c.l.bf16 %v644_v11  ;;  %v645_v21 = vld [vmem:[%s798_s6 + $0x18] sm:$0xff]   ;;  %v646_v47 = vld [vmem:[%s798_s6 + $0x20] sm:$0xff]   ;;  %v647_v57 = vld [vmem:[%s798_s6 + $0x28] sm:$0xff]  }
  0x17   : > { %v351_v22 = vmul.f32 %v803_v0, %v578_v12  ;;  %v352_v23 = vmul.f32 %v803_v0, %v579_v14  ;;  %v583_v24 = vunpack.c.h.bf16 %v637_v10  ;;  %v615_v25 = vunpack.c.h.bf16 %v644_v11  ;;  %v641_v62 = vld [vmem:[%s793_s29 + $0x30] sm:$0xff]  }
  0x18   : > { %v369_v26 = vadd.f32 %v808_v1, %v349_v17  ;;  %v370_v27 = vadd.f32 %v808_v1, %v350_v18  ;;  %v353_v28 = vmul.f32 %v803_v0, %v582_v19  ;;  %v586_v29 = vunpack.c.l.bf16 %v638_v16  ;;  %v648_v5 = vld [vmem:[%s798_s6 + $0x30] sm:$0xff]   ;;  %v642_v18 = vld [vmem:[%s793_s29 + $0x38] sm:$0xff]  }
  0x19   : > { %v371_v30 = vadd.f32 %v808_v1, %v351_v22  ;;  %v372_v31 = vadd.f32 %v808_v1, %v352_v23  ;;  %v354_v32 = vmul.f32 %v803_v0, %v583_v24  ;;  %v618_v33 = vunpack.c.l.bf16 %v645_v21  ;;  %v649_v23 = vld [vmem:[%s798_s6 + $0x38] sm:$0xff]  }
  0x1a   : > { %v385_v34 = vadd.f32 %v606_v6, %v369_v26  ;;  %v386_v35 = vadd.f32 %v607_v8, %v370_v27  ;;  %v373_v36 = vadd.f32 %v808_v1, %v353_v28  ;;  %v355_v37 = vmul.f32 %v803_v0, %v586_v29 }
  0x1b   : > { %v387_v38 = vadd.f32 %v610_v13, %v371_v30  ;;  %v388_v39 = vadd.f32 %v611_v15, %v372_v31  ;;  %v374_v40 = vadd.f32 %v808_v1, %v354_v32  ;;  %v587_v41 = vunpack.c.h.bf16 %v638_v16 }
  0x1c   : > { %v401_v43 = vmax.f32 %v385_v34, 0.0  ;;  %v402_v44 = vmax.f32 %v386_v35, 0.0  ;;  %v389_v45 = vadd.f32 %v614_v20, %v373_v36  ;;  %v375_v46 = vadd.f32 %v808_v1, %v355_v37 }
  0x1d   : > { %v403_v48 = vmax.f32 %v387_v38, 0.0  ;;  %v404_v49 = vmax.f32 %v388_v39, 0.0  ;;  %v390_v50 = vadd.f32 %v615_v25, %v374_v40  ;;  %v619_v51 = vunpack.c.h.bf16 %v645_v21 }
  0x1e   : > { %417 = vst [vmem:[%s834_s14] sm:$0xff] %v401_v43  ;;  %v405_v53 = vmax.f32 %v389_v45, 0.0  ;;  %v391_v54 = vadd.f32 %v618_v33, %v375_v46  ;;  %v356_v55 = vmul.f32 %v803_v0, %v587_v41  ;;  %v590_v56 = vunpack.c.l.bf16 %v639_v42 }
  0x1f   : > { %418 = vst [vmem:[%s834_s14 + $0x8] sm:$0xff] %v402_v44  ;;  %v406_v58 = vmax.f32 %v390_v50, 0.0  ;;  %v622_v59 = vunpack.c.l.bf16 %v646_v47  ;;  %v591_v60 = vunpack.c.h.bf16 %v639_v42  ;;  %v623_v61 = vunpack.c.h.bf16 %v646_v47 }
  0x20   : > { %419 = vst [vmem:[%s834_s14 + $0x10] sm:$0xff] %v403_v48  ;;  %v407_v63 = vmax.f32 %v391_v54, 0.0  ;;  %v376_v2 = vadd.f32 %v808_v1, %v356_v55  ;;  %v357_v3 = vmul.f32 %v803_v0, %v590_v56  ;;  %v594_v4 = vunpack.c.l.bf16 %v640_v52 }
  0x21   : > { %420 = vst [vmem:[%s834_s14 + $0x18] sm:$0xff] %v404_v49  ;;  %v358_v6 = vmul.f32 %v803_v0, %v591_v60  ;;  %v626_v7 = vunpack.c.l.bf16 %v647_v57  ;;  %v595_v8 = vunpack.c.h.bf16 %v640_v52  ;;  %v627_v9 = vunpack.c.h.bf16 %v647_v57 }
  0x22   : > { %421 = vst [vmem:[%s834_s14 + $0x20] sm:$0xff] %v405_v53  ;;  %v392_v10 = vadd.f32 %v619_v51, %v376_v2  ;;  %v377_v11 = vadd.f32 %v808_v1, %v357_v3  ;;  %v359_v12 = vmul.f32 %v803_v0, %v594_v4  ;;  %v598_v13 = vunpack.c.l.bf16 %v641_v62 }
  0x23   : > { %422 = vst [vmem:[%s834_s14 + $0x28] sm:$0xff] %v406_v58  ;;  %v378_v14 = vadd.f32 %v808_v1, %v358_v6  ;;  %v360_v15 = vmul.f32 %v803_v0, %v595_v8  ;;  %v630_v16 = vunpack.c.l.bf16 %v648_v5  ;;  %v599_v17 = vunpack.c.h.bf16 %v641_v62 }
  0x24   : > { %423 = vst [vmem:[%s834_s14 + $0x30] sm:$0xff] %v407_v63  ;;  %v408_v19 = vmax.f32 %v392_v10, 0.0  ;;  %v393_v20 = vadd.f32 %v622_v59, %v377_v11  ;;  %v379_v21 = vadd.f32 %v808_v1, %v359_v12  ;;  %v361_v22 = vmul.f32 %v803_v0, %v598_v13 }
  0x25   : > { %v394_v24 = vadd.f32 %v623_v61, %v378_v14  ;;  %v380_v25 = vadd.f32 %v808_v1, %v360_v15  ;;  %v631_v26 = vunpack.c.h.bf16 %v648_v5  ;;  %v362_v27 = vmul.f32 %v803_v0, %v599_v17 }
  0x26   : > { %424 = vst [vmem:[%s834_s14 + $0x38] sm:$0xff] %v408_v19  ;;  %v409_v28 = vmax.f32 %v393_v20, 0.0  ;;  %v395_v29 = vadd.f32 %v626_v7, %v379_v21  ;;  %v381_v30 = vadd.f32 %v808_v1, %v361_v22  ;;  %v602_v31 = vunpack.c.l.bf16 %v642_v18 }
  0x27   : > { %v410_v32 = vmax.f32 %v394_v24, 0.0  ;;  %v396_v33 = vadd.f32 %v627_v9, %v380_v25  ;;  %v382_v34 = vadd.f32 %v808_v1, %v362_v27  ;;  %v634_v35 = vunpack.c.l.bf16 %v649_v23 }
  0x28   : > { %425 = vst [vmem:[%s834_s14 + $0x40] sm:$0xff] %v409_v28  ;;  %v411_v36 = vmax.f32 %v395_v29, 0.0  ;;  %v397_v37 = vadd.f32 %v630_v16, %v381_v30  ;;  %v363_v38 = vmul.f32 %v803_v0, %v602_v31  ;;  %v603_v39 = vunpack.c.h.bf16 %v642_v18 }
  0x29   : > { %426 = vst [vmem:[%s834_s14 + $0x48] sm:$0xff] %v410_v32  ;;  %v412_v40 = vmax.f32 %v396_v33, 0.0  ;;  %v398_v41 = vadd.f32 %v631_v26, %v382_v34  ;;  %v635_v44 = vunpack.c.h.bf16 %v649_v23 }
  0x2a   : > { %427 = vst [vmem:[%s834_s14 + $0x50] sm:$0xff] %v411_v36  ;;  %v413_v42 = vmax.f32 %v397_v37, 0.0  ;;  %v383_v43 = vadd.f32 %v808_v1, %v363_v38  ;;  %v364_v45 = vmul.f32 %v803_v0, %v603_v39 }
  0x2b   : > { %428 = vst [vmem:[%s834_s14 + $0x58] sm:$0xff] %v412_v40  ;;  %v414_v46 = vmax.f32 %v398_v41, 0.0 }
  0x2c   : > { %429 = vst [vmem:[%s834_s14 + $0x60] sm:$0xff] %v413_v42  ;;  %v399_v47 = vadd.f32 %v634_v35, %v383_v43  ;;  %v384_v48 = vadd.f32 %v808_v1, %v364_v45 }
  0x2d   : > { %430 = vst [vmem:[%s834_s14 + $0x68] sm:$0xff] %v414_v46 }
  0x2e   : > { %v415_v49 = vmax.f32 %v399_v47, 0.0  ;;  %v400_v50 = vadd.f32 %v635_v44, %v384_v48 }
  0x30   : > { %431 = vst [vmem:[%s834_s14 + $0x70] sm:$0xff] %v415_v49  ;;  %v416_v51 = vmax.f32 %v400_v50, 0.0 }
  0x32   : > { %432 = vst [vmem:[%s834_s14 + $0x78] sm:$0xff] %v416_v51 }
  0x33 PF: > { %s14_s19 = sadd.s32 1, %s730_s19   ;;  %s900_s15 = smov %s722_s17 }
  0x34   : > { %p11_p7 = scmp.ge.s32.totalorder %s14_s19, 6   ;;  %s901_s16 = smov %s726_s18 }
  0x35   : > { %s902_s17 = smov %s905_s20  ;;  %s903_s18 = smov %s909_s21 }
  0x36   :  { %13 = sbr.rel (!%p11_p7) target bundleno = 3 (0x3), region = 69 }

// kernel: resblock_forward.3
= control target key start
LH: loop header
LB: loop body
LE: loop exit
PB: predicated region body
PF: predicated region fallthrough
CT: control target
= control target key end

     0   :  { %s2877_s15 = smov 0   ;;  %s2879_s16 = smov 0   ;;  %s3640_s0 = inlined_call_operand.vmem [shape: bf16[2,18,24,128], index: 0, kind: input, shape index: {}]   ;;  %s3641_s1 = inlined_call_operand.vmem [shape: bf16[9,128,128], index: 1, kind: input, shape index: {}]   ;;  %s3642_s2 = inlined_call_operand.vmem [shape: f32[1,128], index: 2, kind: input, shape index: {}]   ;;  %s3643_s3 = inlined_call_operand.vmem [shape: bf16[2,16,16,128], index: 3, kind: output, shape index: {0}]   ;;  %s3644_s4 = inlined_call_operand.vmem [shape: f32[2,2,2,128], index: 4, kind: output, shape index: {1}]  }
   0x1   :  { %s2881_s17 = smov 0   ;;  %s2883_s18 = smov 0  }
   0x2   :  { %s2885_s19 = smov 0  }
   0x3 LB: > { %s24_s20 = sadd.s32 1, %s2842_s17  ;;  %s27_s21 = sadd.s32 1, %s2846_s18  ;;  %s2850_s19 = sphi %s2885_s19, %s15_s19   ;;  %s2846_s18 = sphi %s2883_s18, %s3652_s18   ;;  %s2842_s17 = sphi %s2881_s17, %s3651_s17   ;;  %s2838_s16 = sphi %s2879_s16, %s3650_s16   ;;  %s2834_s15 = sphi %s2877_s15, %s3649_s15  }
   0x4   : > { %p25_p0 = scmp.ge.s32.totalorder %s24_s20, 2  ;;  %p2137_p1 = scmp.ge.s32.totalorder %s2850_s19, 1 }
   0x5   : > { %p181_p2 = scmp.lt.s32.totalorder %s2850_s19, 5 }
   0x6   : > { %s3654_s20 = smov (%p25_p0, %s24_s20), 0  ;;  %s3656_s21 = smov (!%p25_p0, %s27_s21), %s2846_s18 }
   0x7   : > { %p182_p3 = pnand %p2137_p1, %p181_p2  ;;  %p29_p4 = scmp.ge.s32.totalorder %s3656_s21, 2 }
   0x8   : > { %p220_p5 = scmp.lt.s32.totalorder (!%p182_p3), %s2838_s16, 1  ;;  %s2616_s26 = smul.u32 (!%p182_p3), 96, %s2834_s15 }
   0x9   : > { %s3658_s21 = smov (%p29_p4, %s3656_s21), 0  ;;  %185 = sbr.rel (%p182_p3) target bundleno = 484 (0x1e4), region = 32 }
   0xa   : > { %p238_p7 = scmp.lt.s32.totalorder (!%p182_p3), %s2834_s15, 1 }
   0xe   : > { %v2642_v0 = vld [vmem:[%s3641_s1 + $0x78] sm:$0xff]  ;;  %v2641_v1 = vld [vmem:[%s3641_s1 + $0x70] sm:$0xff]  ;;  %s3660_s16 = smov (!%p220_p5, %s2838_s16), 1  ;;  %v2640_v2 = vld [vmem:[%s3641_s1 + $0x68] sm:$0xff]  ;;  %vm295_vm0 = vsmask.f32 3328 }
   0xf   : > { %2746 = vmatpush.bf16.msra.mxu1 %v2642_v0  ;;  %2747 = vmatpush.bf16.msra.mxu2 %v2642_v0  ;;  %s2770_s27 = smul.u32 216, %s3660_s16  ;;  %vm296_vm1 = vsmask.f32 7440  ;;  %v2639_v3 = vld [vmem:[%s3641_s1 + $0x60] sm:$0xff]  ;;  %v2638_v30 = vld [vmem:[%s3641_s1 + $0x58] sm:$0xff]  ;;  %v2637_v50 = vld [vmem:[%s3641_s1 + $0x50] sm:$0xff] }
  0x10   : > { %2748 = vmatpush.bf16.msra.mxu3 %v2642_v0  ;;  %587 = vmatpush.bf16.msra.mxu0 %v2642_v0  ;;  %vm2969_vm2 = vmor %vm295_vm0, %vm296_vm1  ;;  %vm789_vm3 = vcmask 1042432   ;;  %vm790_vm4 = vcmask 1046532   ;;  %s2141_s28 = sshll.u32 %s3660_s16, 5  ;;  %s2143_s11 = sshll.u32 %s3660_s16, 1  ;;  %vm1991_vm6 = vcmask 1040384  }
  0x11   : > { %s224_s6 = scalar_lea.vmem %s3640_s0, %s2770_s27  ;;  %vm3187_vm5 = vmor %vm789_vm3, %vm790_vm4 }
  0x12   : > { %s2925_s7 = scalar_lea.vmem %s224_s6, %s2616_s26 }
  0x13   : > { %2749 = vmatpush.bf16.msra.mxu1 %v2641_v1  ;;  %2750 = vmatpush.bf16.msra.mxu2 %v2641_v1  ;;  %v2931_v4 = vld [vmem:[%s2925_s7 + $0x18] sm:$0xf]  ;;  %v2934_v5 = vld [vmem:[%s2925_s7 + $0x1c] sm:$0xf]  ;;  %v2937_v6 = vld [vmem:[%s2925_s7 + $0x20] sm:$0xf] }
  0x14   : > { %2751 = vmatpush.bf16.msra.mxu3 %v2641_v1  ;;  %588 = vmatpush.bf16.msra.mxu0 %v2641_v1  ;;  %v347_v7 = vshrl.u32 %v2931_v4, 16  ;;  %v350_v8 = vshll.u32 %v2931_v4, 16  ;;  %v356_v9 = vshll.u32 %v2934_v5, 16  ;;  %v360_v10 = vshrl.u32 %v2934_v5, 16  ;;  %v2944_v11 = vld [vmem:[%s2925_s7 + $0x30] sm:$0xf] }
  0x15   : > { %v366_v12 = vshll.u32 %v2937_v6, 16  ;;  %v2948_v13 = vld [vmem:[%s2925_s7 + $0x34] sm:$0xf]  ;;  %v2951_v14 = vld [vmem:[%s2925_s7 + $0x38] sm:$0xf]  ;;  %v395_v15 = vshrl.u32 %v2944_v11, 16 }
  0x16   : > { %v349_v16 = vrot.slane %v347_v7, 4  ;;  %v352_v17 = vrot.slane %v350_v8, 5  ;;  %v358_v18 = vrot.slane %v356_v9, 5  ;;  %v362_v19 = vrot.slane %v360_v10, 4  ;;  %v2955_v20 = vld [vmem:[%s2925_s7 + $0x48] sm:$0xf] }
  0x17   : > { %2752 = vmatpush.bf16.msra.mxu1 %v2640_v2  ;;  %2753 = vmatpush.bf16.msra.mxu2 %v2640_v2  ;;  %v368_v21 = vrot.slane %v366_v12, 5  ;;  %v397_v22 = vrot.slane %v395_v15, 4  ;;  %v398_v23 = vshll.u32 %v2944_v11, 16  ;;  %v404_v24 = vshll.u32 %v2948_v13, 16  ;;  %v2962_v29 = vld [vmem:[%s2925_s7 + $0x4c] sm:$0xf] }
  0x18   : > { %2754 = vmatpush.bf16.msra.mxu3 %v2640_v2  ;;  %589 = vmatpush.bf16.msra.mxu0 %v2640_v2  ;;  %v353_v25 = vor.u32 %v352_v17, %v349_v16  ;;  %v363_v26 = vor.u32 %v362_v19, %v358_v18  ;;  %v408_v27 = vshrl.u32 %v2948_v13, 16  ;;  %v414_v28 = vshll.u32 %v2951_v14, 16  ;;  %v2976_v41 = vld [vmem:[%s2925_s7 + $0x50] sm:$0xf]  ;;  %v2985_v49 = vld [vmem:[%s2925_s7] sm:$0xf] }
  0x19   : > { %v400_v32 = vrot.slane %v398_v23, 5  ;;  %v406_v33 = vrot.slane %v404_v24, 5  ;;  %v443_v34 = vshrl.u32 %v2955_v20, 16  ;;  %v446_v35 = vshll.u32 %v2955_v20, 16  ;;  %v2996_v62 = vld [vmem:[%s2925_s7 + $0x4] sm:$0xf] }
  0x1a   : > { %v354_v36 = vrot.slane %v353_v25, 4  ;;  %v364_v37 = vrot.slane %v363_v26, 4  ;;  %v410_v38 = vrot.slane %v408_v27, 4  ;;  %v416_v39 = vrot.slane %v414_v28, 5  ;;  %v3002_v7 = vld [vmem:[%s2925_s7 + $0x8] sm:$0xf] }
  0x1b   : > { %2755 = vmatpush.bf16.msra.mxu1 %v2639_v3  ;;  %2756 = vmatpush.bf16.msra.mxu2 %v2639_v3  ;;  %v401_v40 = vor.u32 %v400_v32, %v397_v22  ;;  %v445_v42 = vrot.slane %v443_v34, 4  ;;  %v448_v43 = vrot.slane %v446_v35, 5  ;;  %v452_v44 = vshll.u32 %v2962_v29, 16  ;;  %v3005_v8 = vld [vmem:[%s2925_s7 + $0x24] sm:$0xf]  ;;  %v2636_v9 = vld [vmem:[%s3641_s1 + $0x48] sm:$0xff] }
  0x1c   : > { %2757 = vmatpush.bf16.msra.mxu3 %v2639_v3  ;;  %590 = vmatpush.bf16.msra.mxu0 %v2639_v3  ;;  %v359_v45 = vsel %vm2969_vm2, %v354_v36, %v358_v18  ;;  %v369_v46 = vsel %vm2969_vm2, %v364_v37, %v368_v21  ;;  %v411_v47 = vor.u32 %v410_v38, %v406_v33  ;;  %v456_v48 = vshrl.u32 %v2962_v29, 16  ;;  %v3016_v22 = vld [vmem:[%s2925_s7 + $0x28] sm:$0xf]  ;;  %v3022_v26 = vld [vmem:[%s2925_s7 + $0x2c] sm:$0xf]  ;;  %v2635_v35 = vld [vmem:[%s3641_s1 + $0x40] sm:$0xff] }
  0x1d   : > { %v511_v51 = vunpack.c.l.b16 %v359_v45  ;;  %v512_v52 = vunpack.c.l.b16 %v369_v46  ;;  %v402_v53 = vrot.slane %v401_v40, 4  ;;  %v449_v54 = vor.u32 %v448_v43, %v445_v42  ;;  %v3029_v34 = vld [vmem:[%s2925_s7 + $0x3c] sm:$0xf]  ;;  %v2626_v31 = vld [vmem:[%s2925_s7 + $0x6c] sm:$0xff] }
  0x1e   : > { %v412_v55 = vrot.slane %v411_v47, 4  ;;  %v454_v56 = vrot.slane %v452_v44, 5  ;;  %v458_v57 = vrot.slane %v456_v48, 4  ;;  %v462_v58 = vshll.u32 %v2976_v41, 16  ;;  %v2650_v40 = vld [vmem:[%s3641_s1 + $0xb8] sm:$0xff] }
  0x1f   : > { %2758 = vmatpush.bf16.msra.mxu1 %v2638_v30  ;;  %2759 = vmatpush.bf16.msra.mxu2 %v2638_v30  ;;  %v2991_v59 = vpack.c.b16 %v512_v52, %v511_v51  ;;  %v407_v60 = vsel %vm2969_vm2, %v402_v53, %v406_v33  ;;  %v450_v61 = vrot.slane %v449_v54, 4  ;;  %v299_v63 = vshrl.u32 %v2985_v49, 16  ;;  %v2634_v47 = vld [vmem:[%s3641_s1 + $0x38] sm:$0xff]  ;;  %v3046_v51 = vld [vmem:[%s2925_s7 + $0x40] sm:$0xf] }
  0x20   : > { %2760 = vmatpush.bf16.msra.mxu3 %v2638_v30  ;;  %591 = vmatpush.bf16.msra.mxu0 %v2638_v30  ;;  %v417_v0 = vsel %vm2969_vm2, %v412_v55, %v416_v39  ;;  %v515_v1 = vunpack.c.l.b16 %v407_v60  ;;  %v459_v2 = vor.u32 %v458_v57, %v454_v56  ;;  %v464_v3 = vrot.slane %v462_v58, 5  ;;  %v3050_v57 = vld [vmem:[%s2925_s7 + $0x44] sm:$0xf]  ;;  %v2666_v60 = vld [vmem:[%s3641_s1 + $0x138] sm:$0xff] }
  0x21   : > { %v516_v10 = vunpack.c.l.b16 %v417_v0  ;;  %v455_v12 = vsel %vm2969_vm2, %v450_v61, %v454_v56  ;;  %v301_v15 = vrot.slane %v299_v63, 4  ;;  %v302_v16 = vshll.u32 %v2985_v49, 16 }
  0x22   : > { %v460_v17 = vrot.slane %v459_v2, 4  ;;  %v519_v18 = vunpack.c.l.b16 %v455_v12  ;;  %v308_v19 = vshll.u32 %v2996_v62, 16  ;;  %v312_v21 = vshrl.u32 %v2996_v62, 16  ;;  %v2658_v2 = vld [vmem:[%s3641_s1 + $0xf8] sm:$0xff] }
  0x23   : > { %2761 = vmatpush.bf16.msra.mxu1 %v2637_v50  ;;  %2762 = vmatpush.bf16.msra.mxu2 %v2637_v50  ;;  %v3018_v23 = vpack.c.b16 %v516_v10, %v515_v1  ;;  %v304_v24 = vrot.slane %v302_v16, 5  ;;  %v318_v25 = vshll.u32 %v3002_v7, 16  ;;  %v371_v27 = vshrl.u32 %v3005_v8, 16  ;;  %v3059_v1 = vld [vmem:[%s2925_s7 + $0x54] sm:$0xf] }
  0x24   : > { %2763 = vmatpush.bf16.msra.mxu3 %v2637_v50  ;;  %592 = vmatpush.bf16.msra.mxu0 %v2637_v50  ;;  %v465_v28 = vsel %vm2969_vm2, %v460_v17, %v464_v3  ;;  %v310_v30 = vrot.slane %v308_v19, 5  ;;  %v314_v32 = vrot.slane %v312_v21, 4  ;;  %v374_v33 = vshll.u32 %v3005_v8, 16  ;;  %v2649_v16 = vld [vmem:[%s3641_s1 + $0xb0] sm:$0xff] }
  0x25   : > { %v520_v36 = vunpack.c.l.b16 %v465_v28  ;;  %v305_v37 = vor.u32 %v304_v24, %v301_v15  ;;  %v320_v38 = vrot.slane %v318_v25, 5  ;;  %v373_v39 = vrot.slane %v371_v27, 4  ;;  %v2633_v21 = vld [vmem:[%s3641_s1 + $0x30] sm:$0xff]  ;;  %v3080_v28 = vld [vmem:[%s2925_s7 + $0x58] sm:$0xf] }
  0x26   : > { %v315_v42 = vor.u32 %v314_v32, %v310_v30  ;;  %v376_v43 = vrot.slane %v374_v33, 5  ;;  %v380_v44 = vshll.u32 %v3016_v22, 16  ;;  %v384_v45 = vshrl.u32 %v3016_v22, 16  ;;  %v2665_v33 = vld [vmem:[%s3641_s1 + $0x130] sm:$0xff] }
  0x27   : > { %2764 = vmatpush.bf16.msra.mxu1 %v2636_v9  ;;  %2765 = vmatpush.bf16.msra.mxu2 %v2636_v9  ;;  %v3039_v46 = vpack.c.b16 %v520_v36, %v519_v18  ;;  %v306_v48 = vrot.slane %v305_v37, 4  ;;  %v390_v50 = vshll.u32 %v3022_v26, 16  ;;  %v419_v52 = vshrl.u32 %v3029_v34, 16  ;;  %v3088_v37 = vld [vmem:[%s2925_s7 + $0x5c] sm:$0xf] }
  0x28   : > { %2766 = vmatpush.bf16.msra.mxu3 %v2636_v9  ;;  %593 = vmatpush.bf16.msra.mxu0 %v2636_v9  ;;  %v316_v53 = vrot.slane %v315_v42, 4  ;;  %v377_v54 = vor.u32 %v376_v43, %v373_v39  ;;  %v382_v55 = vrot.slane %v380_v44, 5  ;;  %v386_v56 = vrot.slane %v384_v45, 4  ;;  %v2657_v39 = vld [vmem:[%s3641_s1 + $0xf0] sm:$0xff]  ;;  %v2648_v45 = vld [vmem:[%s3641_s1 + $0xa8] sm:$0xff] }
  0x29   : > { %v311_v58 = vsel %vm2969_vm2, %v306_v48, %v310_v30  ;;  %v392_v61 = vrot.slane %v390_v50, 5  ;;  %v421_v63 = vrot.slane %v419_v52, 4  ;;  %v422_v0 = vshll.u32 %v3029_v34, 16 }
  0x2a   : > { %v321_v3 = vsel %vm2969_vm2, %v316_v53, %v320_v38  ;;  %v507_v9 = vunpack.c.l.b16 %v311_v58  ;;  %v378_v10 = vrot.slane %v377_v54, 4  ;;  %v387_v12 = vor.u32 %v386_v56, %v382_v55  ;;  %v3091_v38 = vld [vmem:[%s2925_s7 + $0xc] sm:$0xf]  ;;  %v3109_v58 = vld [vmem:[%s2925_s7 + $0x10] sm:$0xf] }
  0x2b   : > { %2767 = vmatpush.bf16.msra.mxu1 %v2635_v35  ;;  %2768 = vmatpush.bf16.msra.mxu2 %v2635_v35  ;;  %v508_v15 = vunpack.c.l.b16 %v321_v3  ;;  %v424_v17 = vrot.slane %v422_v0, 5  ;;  %v428_v18 = vshll.u32 %v3046_v51, 16  ;;  %v432_v19 = vshrl.u32 %v3046_v51, 16  ;;  %v2632_v53 = vld [vmem:[%s3641_s1 + $0x28] sm:$0xff] }
  0x2c   : > { %2769 = vmatpush.bf16.msra.mxu3 %v2635_v35  ;;  %594 = vmatpush.bf16.msra.mxu0 %v2635_v35  ;;  %v383_v24 = vsel %vm2969_vm2, %v378_v10, %v382_v55  ;;  %v388_v25 = vrot.slane %v387_v12, 4  ;;  %v438_v27 = vshll.u32 %v3050_v57, 16  ;;  %v467_v30 = vshrl.u32 %v3059_v1, 16  ;;  %v2656_v10 = vld [vmem:[%s3641_s1 + $0xe8] sm:$0xff] }
  0x2d   : > { %v523_v32 = vpack.c.b16 %v508_v15, %v507_v9  ;;  %v425_v35 = vor.u32 %v424_v17, %v421_v63  ;;  %v430_v36 = vrot.slane %v428_v18, 5  ;;  %v513_v42 = vunpack.c.l.b16 %v383_v24  ;;  %v3118_v9 = vld [vmem:[%s2925_s7 + $0x14] sm:$0xf]  ;;  %v2647_v18 = vld [vmem:[%s3641_s1 + $0xa0] sm:$0xff] }
  0x2e   : > { %605 = vmatmul.bf16.vlgmr.msra.gmra.mxu1 %v2991_v59  ;;  %615 = vmatmul.bf16.vlgmr.msra.gmra.mxu2 %v3018_v23  ;;  %v434_v43 = vrot.slane %v432_v19, 4  ;;  %v440_v44 = vrot.slane %v438_v27, 5  ;;  %v469_v48 = vrot.slane %v467_v30, 4  ;;  %v470_v50 = vshll.u32 %v3059_v1, 16  ;;  %v2631_v27 = vld [vmem:[%s3641_s1 + $0x20] sm:$0xff] }
  0x2f   : > { %945 = vmatpush.bf16.msrb.mxu2 %v2650_v40  ;;  %732 = vmatpush.bf16.msrb.mxu1 %v2634_v47  ;;  %v393_v40 = vsel %vm2969_vm2, %v388_v25, %v392_v61  ;;  %v426_v47 = vrot.slane %v425_v35, 4  ;;  %v476_v52 = vshll.u32 %v3080_v28, 16  ;;  %v480_v55 = vshrl.u32 %v3080_v28, 16  ;;  %v2664_v61 = vld [vmem:[%s3641_s1 + $0x128] sm:$0xff] }
  0x30   : > { %625 = vmatmul.bf16.vlgmr.msra.gmra.mxu3 %v3039_v46  ;;  %1239 = vmatpush.bf16.msrb.mxu0 %v2666_v60  ;;  %v435_v54 = vor.u32 %v434_v43, %v430_v36  ;;  %v486_v56 = vshll.u32 %v3088_v37, 16  ;;  %v323_v60 = vshrl.u32 %v3091_v38, 16  ;;  %v514_v63 = vunpack.c.l.b16 %v393_v40 }
  0x31   : > { %1081 = vmatpush.bf16.msrb.mxu3 %v2658_v2  ;;  %595 = vmatmul.bf16.vlgmr.msra.gmra.mxu0 %v523_v32  ;;  %v431_v0 = vsel %vm2969_vm2, %v426_v47, %v430_v36  ;;  %v472_v2 = vrot.slane %v470_v50, 5  ;;  %v478_v3 = vrot.slane %v476_v52, 5  ;;  %v326_v24 = vshll.u32 %v3091_v38, 16  ;;  %v2663_v36 = vld [vmem:[%s3641_s1 + $0x120] sm:$0xff] }
  0x32   : > { %v436_v12 = vrot.slane %v435_v54, 4  ;;  %v517_v15 = vunpack.c.l.b16 %v431_v0  ;;  %v488_v17 = vrot.slane %v486_v56, 5  ;;  %v332_v25 = vshll.u32 %v3109_v58, 16  ;;  %v2655_v47 = vld [vmem:[%s3641_s1 + $0xe0] sm:$0xff] }
  0x33   : > { %946 = vmatpush.bf16.msrb.mxu2 %v2649_v16  ;;  %733 = vmatpush.bf16.msrb.mxu1 %v2633_v21  ;;  %v482_v16 = vrot.slane %v480_v55, 4  ;;  %v473_v19 = vor.u32 %v472_v2, %v469_v48  ;;  %v325_v21 = vrot.slane %v323_v60, 4  ;;  %v342_v35 = vshll.u32 %v3118_v9, 16 }
  0x34   : > { %1240 = vmatpush.bf16.msrb.mxu0 %v2665_v33  ;;  %v441_v30 = vsel %vm2969_vm2, %v436_v12, %v440_v44  ;;  %v336_v33 = vshrl.u32 %v3109_v58, 16  ;;  %v328_v43 = vrot.slane %v326_v24, 5  ;;  %v3141_v50 = vpack.c.b16 %v514_v63, %v513_v42  ;;  %v2630_v63 = vld [vmem:[%s3641_s1 + $0x18] sm:$0xff]  ;;  %v2629_v24 = vld [vmem:[%s3641_s1 + $0x10] sm:$0xff] }
  0x35   : > { %1082 = vmatpush.bf16.msrb.mxu3 %v2657_v39  ;;  %v483_v32 = vor.u32 %v482_v16, %v478_v3  ;;  %v518_v39 = vunpack.c.l.b16 %v441_v30  ;;  %v474_v40 = vrot.slane %v473_v19, 4  ;;  %v344_v55 = vrot.slane %v342_v35, 5 }
  0x36   : > { %v338_v48 = vrot.slane %v336_v33, 4  ;;  %v329_v54 = vor.u32 %v328_v43, %v325_v21  ;;  %v797_v30 = vrot.slane %v3002_v7, 5  ;;  %v2661_v33 = vld [vmem:[%s3641_s1 + $0x110] sm:$0xff]  ;;  %v2644_v7 = vld [vmem:[%s3641_s1 + $0x88] sm:$0xff] }
  0x37   : > { %947 = vmatpush.bf16.msrb.mxu2 %v2648_v45  ;;  %734 = vmatpush.bf16.msrb.mxu1 %v2632_v53  ;;  %v334_v45 = vrot.slane %v332_v25, 5  ;;  %v484_v44 = vrot.slane %v483_v32, 4  ;;  %v479_v52 = vsel %vm2969_vm2, %v474_v40, %v478_v3  ;;  %v2646_v53 = vld [vmem:[%s3641_s1 + $0x98] sm:$0xff]  ;;  %v3148_v56 = vpack.c.b16 %v518_v39, %v517_v15  ;;  %v2653_v32 = vld [vmem:[%s3641_s1 + $0xd0] sm:$0xff]  ;;  %v2652_v43 = vld [vmem:[%s3641_s1 + $0xc8] sm:$0xff] }
  0x38   : > { %1241 = vmatpush.bf16.msrb.mxu0 %v2664_v61  ;;  %v521_v61 = vunpack.c.l.b16 %v479_v52  ;;  %v330_v2 = vrot.slane %v329_v54, 4  ;;  %v794_v3 = vrot.slane %v2996_v62, 5  ;;  %v2662_v15 = vld [vmem:[%s3641_s1 + $0x118] sm:$0xff]  ;;  %v2645_v62 = vld [vmem:[%s3641_s1 + $0x90] sm:$0xff]  ;;  %v2260_v25 = vrot.slane %v2985_v49, 9  ;;  %v2651_v54 = vld [vmem:[%s3641_s1 + $0xc0] sm:$0xff] }
  0x39   : > { %1083 = vmatpush.bf16.msrb.mxu3 %v2656_v10  ;;  %v489_v60 = vsel %vm2969_vm2, %v484_v44, %v488_v17  ;;  %v339_v0 = vor.u32 %v338_v48, %v334_v45  ;;  %v2654_v10 = vld [vmem:[%s3641_s1 + $0xd8] sm:$0xff] }
  0x3a   : > { %v522_v42 = vunpack.c.l.b16 %v489_v60  ;;  %v335_v17 = vsel %vm2969_vm2, %v330_v2, %v334_v45  ;;  %v795_v39 = vsel %vm3187_vm5, %v2260_v25, %v794_v3  ;;  %v2660_v45 = vld [vmem:[%s3641_s1 + $0x108] sm:$0xff]  ;;  %v2682_v52 = vld [vmem:[%s3641_s1 + $0x1b8] sm:$0xff]  ;;  %v808_v60 = vrot.slane %v2934_v5, 5 }
  0x3b   : > { %948 = vmatpush.bf16.msrb.mxu2 %v2647_v18  ;;  %735 = vmatpush.bf16.msrb.mxu1 %v2631_v27  ;;  %v340_v12 = vrot.slane %v339_v0, 4  ;;  %v509_v19 = vunpack.c.l.b16 %v335_v17  ;;  %v796_v27 = vrot.slane %v794_v3, 4  ;;  %v865_v44 = vunpack.c.l.b16 %v795_v39  ;;  %v2674_v0 = vld [vmem:[%s3641_s1 + $0x178] sm:$0xff]  ;;  %v2681_v17 = vld [vmem:[%s3641_s1 + $0x1b0] sm:$0xff] }
  0x3c   : > { %1242 = vmatpush.bf16.msrb.mxu0 %v2663_v36  ;;  %v3162_v16 = vpack.c.b16 %v522_v42, %v521_v61  ;;  %v2628_v36 = vld [vmem:[%s3641_s1 + $0x8] sm:$0xff]  ;;  %v2690_v61 = vld [vmem:[%s3641_s1 + $0x1f8] sm:$0xff]  ;;  %v2617_v42 = vld [vmem:[%s2925_s7] sm:$0xff]  ;;  %v2262_v2 = vrot.slane %v2931_v4, 9  ;;  %v810_v3 = vrot.slane %v808_v60, 4  ;;  %v804_v25 = vrot.slane %v3118_v9, 5 }
  0x3d   : > { %1084 = vmatpush.bf16.msrb.mxu3 %v2655_v47  ;;  %v345_v18 = vsel %vm2969_vm2, %v340_v12, %v344_v55  ;;  %v798_v40 = vsel %vm3187_vm5, %v796_v27, %v797_v30  ;;  %v2643_v47 = vld [vmem:[%s3641_s1 + $0x80] sm:$0xff]  ;;  %v2618_v12 = vld [vmem:[%s2925_s7 + $0xc] sm:$0xff]  ;;  %v2698_v5 = vld [vmem:[%s3641_s1 + $0x238] sm:$0xff] }
  0x3e   : > { %610 = vmatmul.bf16.gmra.mxu1 %v3141_v50  ;;  %620 = vmatmul.bf16.gmra.mxu2 %v3148_v56  ;;  %v510_v21 = vunpack.c.l.b16 %v345_v18  ;;  %v866_v48 = vunpack.c.l.b16 %v798_v40  ;;  %v2659_v55 = vld [vmem:[%s3641_s1 + $0x100] sm:$0xff]  ;;  %v809_v4 = vsel %vm3187_vm5, %v2262_v2, %v808_v60  ;;  %v2697_v30 = vld [vmem:[%s3641_s1 + $0x230] sm:$0xff]  ;;  %v815_v40 = vrot.slane %v3016_v22, 5  ;;  %v2670_v2 = vld [vmem:[%s3641_s1 + $0x158] sm:$0xff] }
  0x3f   : > { %949 = vmatpush.bf16.msrb.mxu2 %v2646_v53  ;;  %736 = vmatpush.bf16.msrb.mxu1 %v2630_v63  ;;  %v2627_v53 = vld [vmem:[%s3641_s1] sm:$0xff]  ;;  %v869_v18 = vunpack.c.l.b16 %v809_v4  ;;  %v2677_v4 = vld [vmem:[%s3641_s1 + $0x190] sm:$0xff] }
  0x40   : > { %630 = vmatmul.bf16.gmra.mxu3 %v3162_v16  ;;  %1243 = vmatpush.bf16.msrb.mxu0 %v2662_v15  ;;  %v524_v49 = vpack.c.b16 %v510_v21, %v509_v19  ;;  %v881_v63 = vpack.c.b16 %v866_v48, %v865_v44  ;;  %v801_v15 = vrot.slane %v3109_v58, 5  ;;  %v2673_v58 = vld [vmem:[%s3641_s1 + $0x170] sm:$0xff]  ;;  %v2261_v21 = vrot.slane %v3091_v38, 9  ;;  %v3279_v48 = vld [vmem:[%s2925_s7 + $0x18] sm:$0xff]  ;;  %v2679_v22 = vld [vmem:[%s3641_s1 + $0x1a0] sm:$0xff] }
  0x41   : > { %1085 = vmatpush.bf16.msrb.mxu3 %v2654_v10  ;;  %v811_v10 = vrot.slane %v2937_v6, 5  ;;  %v818_v44 = vrot.slane %v3022_v26, 5  ;;  %v2687_v26 = vld [vmem:[%s3641_s1 + $0x1e0] sm:$0xff] }
  0x42   : > { %600 = vmatmul.bf16.gmra.mxu0 %v524_v49  ;;  %v802_v38 = vsel %vm3187_vm5, %v2261_v21, %v801_v15  ;;  %v2671_v60 = vld [vmem:[%s3641_s1 + $0x160] sm:$0xff] }
  0x43   : > { %950 = vmatpush.bf16.msrb.mxu2 %v2645_v62  ;;  %737 = vmatpush.bf16.msrb.mxu1 %v2629_v24  ;;  %v812_v6 = vsel %vm3187_vm5, %v810_v3, %v811_v10  ;;  %v2689_v62 = vld [vmem:[%s3641_s1 + $0x1f0] sm:$0xff]  ;;  %v803_v24 = vrot.slane %v801_v15, 4  ;;  %v2694_v3 = vld [vmem:[%s3641_s1 + $0x218] sm:$0xff] }
  0x44   : > { %1244 = vmatpush.bf16.msrb.mxu0 %v2661_v33  ;;  %v870_v19 = vunpack.c.l.b16 %v812_v6  ;;  %v2688_v33 = vld [vmem:[%s3641_s1 + $0x1e8] sm:$0xff]  ;;  %v3322_v10 = vld [vmem:[%s2925_s7 + $0x30] sm:$0xff]  ;;  %v3350_v21 = vld [vmem:[%s2925_s7 + $0x3c] sm:$0xff] }
  0x45   : > { %1086 = vmatpush.bf16.msrb.mxu3 %v2653_v32  ;;  %v2680_v32 = vld [vmem:[%s3641_s1 + $0x1a8] sm:$0xff]  ;;  %v805_v9 = vsel %vm3187_vm5, %v803_v24, %v804_v25  ;;  %v829_v24 = vrot.slane %v3046_v51, 5  ;;  %v2265_v25 = vrot.slane %v3029_v34, 9 }
  0x46   : > { %v3252_v27 = vpack.c.b16 %v870_v19, %v869_v18  ;;  %v868_v39 = vunpack.c.l.b16 %v805_v9  ;;  %v2684_v34 = vld [vmem:[%s3641_s1 + $0x1c8] sm:$0xff] }
  0x47   : > { %951 = vmatpush.bf16.msrb.mxu2 %v2644_v7  ;;  %738 = vmatpush.bf16.msrb.mxu1 %v2628_v36  ;;  %v2672_v7 = vld [vmem:[%s3641_s1 + $0x168] sm:$0xff]  ;;  %v867_v36 = vunpack.c.l.b16 %v802_v38  ;;  %v830_v51 = vsel %vm3187_vm5, %v2265_v25, %v829_v24 }
  0x48   : > { %1245 = vmatpush.bf16.msrb.mxu0 %v2660_v45  ;;  %v2263_v45 = vrot.slane %v3005_v8, 9  ;;  %v2676_v38 = vld [vmem:[%s3641_s1 + $0x188] sm:$0xff] }
  0x49   : > { %1087 = vmatpush.bf16.msrb.mxu3 %v2652_v43  ;;  %v3274_v43 = vpack.c.b16 %v868_v39, %v867_v36  ;;  %v3378_v39 = vld [vmem:[%s2925_s7 + $0x48] sm:$0xff] }
  0x4b   : > { %952 = vmatpush.bf16.msrb.mxu2 %v2643_v47  ;;  %739 = vmatpush.bf16.msrb.mxu1 %v2627_v53  ;;  %v817_v47 = vrot.slane %v815_v40, 4 }
  0x4c   : > { %1246 = vmatpush.bf16.msrb.mxu0 %v2659_v55 }
  0x4d   : > { %1088 = vmatpush.bf16.msrb.mxu3 %v2651_v54  ;;  %v819_v53 = vsel %vm3187_vm5, %v817_v47, %v818_v44  ;;  %v839_v44 = vrot.slane %v2976_v41, 5  ;;  %v2667_v41 = vld [vmem:[%s3641_s1 + $0x140] sm:$0xff] }
  0x4e   : > { %740 = vmatmul.bf16.vlgmr.msrb.gmra.mxu1 %v2617_v42  ;;  %953 = vmatmul.bf16.vlgmr.msrb.gmra.mxu2 %v881_v63  ;;  %v872_v55 = vunpack.c.l.b16 %v819_v53  ;;  %v2678_v42 = vld [vmem:[%s3641_s1 + $0x198] sm:$0xff] }
  0x4f   : > { %1517 = vmatpush.bf16.msra.mxu2 %v2682_v52  ;;  %1381 = vmatpush.bf16.msra.mxu1 %v2674_v0  ;;  %v816_v52 = vsel %vm3187_vm5, %v2263_v45, %v815_v40  ;;  %v3303_v0 = vld [vmem:[%s2925_s7 + $0x24] sm:$0xff]  ;;  %v2686_v63 = vld [vmem:[%s3641_s1 + $0x1d8] sm:$0xff]  ;;  %v836_v40 = vrot.slane %v2962_v29, 5  ;;  %v2266_v45 = vrot.slane %v2955_v20, 9 }
  0x50   : > { %1089 = vmatmul.bf16.vlgmr.msrb.gmra.mxu3 %v2618_v12  ;;  %1817 = vmatpush.bf16.msra.mxu0 %v2698_v5  ;;  %v871_v54 = vunpack.c.l.b16 %v816_v52  ;;  %v2264_v5 = vrot.slane %v2944_v11, 9  ;;  %v2685_v11 = vld [vmem:[%s3641_s1 + $0x1d0] sm:$0xff]  ;;  %v2675_v52 = vld [vmem:[%s3641_s1 + $0x180] sm:$0xff] }
  0x51   : > { %1675 = vmatpush.bf16.msra.mxu3 %v2690_v61  ;;  %v2695_v61 = vld [vmem:[%s3641_s1 + $0x220] sm:$0xff]  ;;  %v838_v47 = vrot.slane %v836_v40, 4  ;;  %v837_v29 = vsel %vm3187_vm5, %v2266_v45, %v836_v40 }
  0x52   : > { %1247 = vmatmul.bf16.vlgmr.msrb.gmra.mxu0 %v524_v49  ;;  %v2696_v49 = vld [vmem:[%s3641_s1 + $0x228] sm:$0xff]  ;;  %v3287_v8 = vpack.c.b16 %v872_v55, %v871_v54  ;;  %v2683_v20 = vld [vmem:[%s3641_s1 + $0x1c0] sm:$0xff] }
  0x53   : > { %1518 = vmatpush.bf16.msra.mxu2 %v2681_v17  ;;  %1382 = vmatpush.bf16.msra.mxu1 %v2673_v58  ;;  %v825_v17 = vrot.slane %v2951_v14, 5  ;;  %v2669_v14 = vld [vmem:[%s3641_s1 + $0x150] sm:$0xff]  ;;  %v840_v53 = vsel %vm3187_vm5, %v838_v47, %v839_v44  ;;  %v3401_v54 = vld [vmem:[%s2925_s7 + $0x60] sm:$0xf]  ;;  %v3404_v55 = vld [vmem:[%s2925_s7 + $0x64] sm:$0xf] }
  0x54   : > { %1818 = vmatpush.bf16.msra.mxu0 %v2697_v30  ;;  %v831_v30 = vrot.slane %v829_v24, 4 }
  0x55   : > { %1676 = vmatpush.bf16.msra.mxu3 %v2689_v62  ;;  %v2693_v62 = vld [vmem:[%s3641_s1 + $0x210] sm:$0xff] }
  0x57   : > { %1519 = vmatpush.bf16.msra.mxu2 %v2680_v32  ;;  %1383 = vmatpush.bf16.msra.mxu1 %v2672_v7  ;;  %v832_v32 = vrot.slane %v3050_v57, 5  ;;  %v2668_v57 = vld [vmem:[%s3641_s1 + $0x148] sm:$0xff] }
  0x58   : > { %1819 = vmatpush.bf16.msra.mxu0 %v2696_v49  ;;  %v2692_v49 = vld [vmem:[%s3641_s1 + $0x208] sm:$0xff] }
  0x59   : > { %1677 = vmatpush.bf16.msra.mxu3 %v2688_v33  ;;  %v833_v9 = vsel %vm3187_vm5, %v831_v30, %v832_v32  ;;  %v875_v33 = vunpack.c.l.b16 %v830_v51 }
  0x5a   : > { %v876_v7 = vunpack.c.l.b16 %v833_v9 }
  0x5b   : > { %1520 = vmatpush.bf16.msra.mxu2 %v2679_v22  ;;  %1384 = vmatpush.bf16.msra.mxu1 %v2671_v60  ;;  %v877_v22 = vunpack.c.l.b16 %v837_v29  ;;  %v1147_v60 = vshrl.u32 %v3401_v54, 16  ;;  %v3454_v29 = vld [vmem:[%s2925_s7 + $0x60] sm:$0xff] }
  0x5c   : > { %1820 = vmatpush.bf16.msra.mxu0 %v2695_v61  ;;  %v3375_v36 = vpack.c.b16 %v876_v7, %v875_v33  ;;  %v1150_v61 = vshll.u32 %v3401_v54, 16 }
  0x5d   : > { %1678 = vmatpush.bf16.msra.mxu3 %v2687_v26  ;;  %v878_v26 = vunpack.c.l.b16 %v840_v53 }
  0x5e   : > { %745 = vmatmul.bf16.gmra.mxu1 %v2618_v12  ;;  %958 = vmatmul.bf16.gmra.mxu2 %v3274_v43  ;;  %v822_v12 = vrot.slane %v2948_v13, 5 }
  0x5f   : > { %1521 = vmatpush.bf16.msra.mxu2 %v2678_v42  ;;  %1385 = vmatpush.bf16.msra.mxu1 %v2670_v2  ;;  %v1156_v42 = vshll.u32 %v3404_v55, 16  ;;  %v2691_v2 = vld [vmem:[%s3641_s1 + $0x200] sm:$0xff] }
  0x60   : > { %1094 = vmatmul.bf16.gmra.mxu3 %v3279_v48  ;;  %1821 = vmatpush.bf16.msra.mxu0 %v2694_v3  ;;  %v824_v15 = vrot.slane %v822_v12, 4  ;;  %v823_v13 = vsel %vm3187_vm5, %v2264_v5, %v822_v12  ;;  %v3413_v3 = vpack.c.b16 %v878_v26, %v877_v22  ;;  %v3418_v5 = vld [vmem:[%s2925_s7 + $0x54] sm:$0xff] }
  0x61   : > { %1679 = vmatpush.bf16.msra.mxu3 %v2686_v63  ;;  %v873_v58 = vunpack.c.l.b16 %v823_v13  ;;  %v1160_v63 = vshrl.u32 %v3404_v55, 16  ;;  %v1158_v13 = vrot.slane %v1156_v42, 5 }
  0x62   : > { %1252 = vmatmul.bf16.gmra.mxu0 %v2991_v59  ;;  %v826_v6 = vsel %vm3187_vm5, %v824_v15, %v825_v17  ;;  %v843_v15 = vrot.slane %v3080_v28, 5  ;;  %v1149_v17 = vrot.slane %v1147_v60, 4 }
  0x63   : > { %1522 = vmatpush.bf16.msra.mxu2 %v2677_v4  ;;  %1386 = vmatpush.bf16.msra.mxu1 %v2669_v14  ;;  %v874_v18 = vunpack.c.l.b16 %v826_v6  ;;  %v1152_v4 = vrot.slane %v1150_v61, 5  ;;  %v1162_v6 = vrot.slane %v1160_v63, 4 }
  0x64   : > { %1822 = vmatpush.bf16.msra.mxu0 %v2693_v62  ;;  %v2267_v62 = vrot.slane %v3059_v1, 9 }
  0x65   : > { %1680 = vmatpush.bf16.msra.mxu3 %v2685_v11  ;;  %v3347_v19 = vpack.c.b16 %v874_v18, %v873_v58  ;;  %v3422_v11 = vld [vmem:[%s2925_s7 + $0x68] sm:$0xf]  ;;  %v845_v58 = vrot.slane %v843_v15, 4  ;;  %v846_v18 = vrot.slane %v3088_v37, 5  ;;  %v1153_v24 = vor.u32 %v1152_v4, %v1149_v17 }
  0x66   : > { %v1163_v28 = vor.u32 %v1162_v6, %v1158_v13  ;;  %v1166_v25 = vshll.u32 %v3422_v11, 16  ;;  %v844_v51 = vsel %vm3187_vm5, %v2267_v62, %v843_v15 }
  0x67   : > { %1523 = vmatpush.bf16.msra.mxu2 %v2676_v38  ;;  %1387 = vmatpush.bf16.msra.mxu1 %v2668_v57  ;;  %v847_v1 = vsel %vm3187_vm5, %v845_v58, %v846_v18  ;;  %v1154_v37 = vrot.slane %v1153_v24, 4  ;;  %v879_v33 = vunpack.c.l.b16 %v844_v51 }
  0x68   : > { %1823 = vmatpush.bf16.msra.mxu0 %v2692_v49  ;;  %v1164_v9 = vrot.slane %v1163_v28, 4  ;;  %v880_v7 = vunpack.c.l.b16 %v847_v1 }
  0x69   : > { %1681 = vmatpush.bf16.msra.mxu3 %v2684_v34  ;;  %v1168_v34 = vrot.slane %v1166_v25, 5  ;;  %v1159_v49 = vsel %vm2969_vm2, %v1154_v37, %v1158_v13 }
  0x6a   : > { %v3449_v44 = vpack.c.b16 %v880_v7, %v879_v33  ;;  %v1187_v53 = vunpack.c.l.b16 %v1159_v49 }
  0x6b   : > { %1524 = vmatpush.bf16.msra.mxu2 %v2675_v52  ;;  %1388 = vmatpush.bf16.msra.mxu1 %v2667_v41  ;;  %v1169_v40 = vsel %vm2969_vm2, %v1164_v9, %v1168_v34 }
  0x6c   : > { %1824 = vmatpush.bf16.msra.mxu0 %v2691_v2 }
  0x6d   : > { %1682 = vmatpush.bf16.msra.mxu3 %v2683_v20  ;;  %v1188_v20 = vunpack.c.l.b16 %v1169_v40 }
  0x6e   : > { %750 = vmatmul.bf16.gmra.mxu1 %v3279_v48  ;;  %963 = vmatmul.bf16.gmra.mxu2 %v3252_v27 }
  0x6f   : > { %v3459_v41 = vpack.c.b16 %v1188_v20, %v1187_v53 }
  0x70   : > { %1099 = vmatmul.bf16.gmra.mxu3 %v3303_v0 }
  0x72   : > { %1257 = vmatmul.bf16.gmra.mxu0 %v3141_v50 }
  0x7e   : > { %755 = vmatmul.bf16.gmra.mxu1 %v3303_v0  ;;  %968 = vmatmul.bf16.gmra.mxu2 %v3287_v8 }
  0x80   : > { %1104 = vmatmul.bf16.gmra.mxu3 %v3322_v10 }
  0x82   : > { %1262 = vmatmul.bf16.gmra.mxu0 %v3018_v23 }
  0x8e   : > { %760 = vmatmul.bf16.gmra.mxu1 %v3322_v10  ;;  %973 = vmatmul.bf16.gmra.mxu2 %v3347_v19 }
  0x90   : > { %1109 = vmatmul.bf16.gmra.mxu3 %v3350_v21 }
  0x92   : > { %1267 = vmatmul.bf16.gmra.mxu0 %v3148_v56 }
  0x9e   : > { %765 = vmatmul.bf16.gmra.mxu1 %v3350_v21  ;;  %978 = vmatmul.bf16.gmra.mxu2 %v3375_v36 }
  0xa0   : > { %1114 = vmatmul.bf16.gmra.mxu3 %v3378_v39 }
  0xa2   : > { %1272 = vmatmul.bf16.gmra.mxu0 %v3039_v46 }
  0xab   : > { %v3415_v12 = vpop.f32.mrf.mxu1 }
  0xae   : > { %v596_v14 = vpop.f32.mrf.mxu0  ;;  %770 = vmatmul.bf16.gmra.mxu1 %v3378_v39  ;;  %983 = vmatmul.bf16.gmra.mxu2 %v3413_v3 }
  0xb0   : > { %1119 = vmatmul.bf16.gmra.mxu3 %v3418_v5 }
  0xb1   : > { %v3430_v30 = vpop.f32.mrf.mxu2 }
  0xb2   : > { %1277 = vmatmul.bf16.gmra.mxu0 %v3162_v16 }
  0xb3   : > { %v3432_v32 = vpop.f32.mrf.mxu3  ;;  %v3435_v38 = vpop.f32.mrf.mxu1 }
  0xb6   : > { %v598_v57 = vpop.f32.mrf.mxu0 }
  0xb9   : > { %v3445_v45 = vpop.f32.mrf.mxu2 }
  0xbb   : > { %v3447_v47 = vpop.f32.mrf.mxu3  ;;  %v3451_v52 = vpop.f32.mrf.mxu1 }
  0xbe   : > { %775 = vmatmul.bf16.gmra.mxu1 %v3418_v5  ;;  %988 = vmatmul.bf16.gmra.mxu2 %v3449_v44 }
  0xbf   : > { %v601_v22 = vpop.f32.mrf.mxu0 }
  0xc0   : > { %1124 = vmatmul.bf16.gmra.mxu3 %v3454_v29 }
  0xc1   : > { %v3461_v26 = vpop.f32.mrf.mxu2 }
  0xc2   : > { %1282 = vmatmul.bf16.gmra.mxu0 %v3459_v41 }
  0xc3   : > { %v3463_v60 = vpop.f32.mrf.mxu3  ;;  %v3466_v61 = vpop.f32.mrf.mxu1 }
  0xc7   : > { %v603_v42 = vpop.f32.mrf.mxu0 }
  0xc9   : > { %v3468_v63 = vpop.f32.mrf.mxu2 }
  0xcb   : > { %v3470_v2 = vpop.f32.mrf.mxu3  ;;  %v741_v15 = vpop.f32.mrf.mxu1 }
  0xcc   : > { %v742_v17 = vadd.f32 %v741_v15, %v596_v14 }
  0xce   : > { %1389 = vmatmul.bf16.vlgmr.msra.gmra.mxu1 %v3274_v43  ;;  %1525 = vmatmul.bf16.vlgmr.msra.gmra.mxu2 %v3279_v48 }
  0xcf   : > { %v1248_v4 = vpop.f32.mrf.mxu0 }
  0xd0   : > { %1683 = vmatmul.bf16.vlgmr.msra.gmra.mxu3 %v2991_v59 }
  0xd1   : > { %v954_v13 = vpop.f32.mrf.mxu2 }
  0xd2   : > { %v994_v6 = vadd.f32 %v954_v13, %v742_v17  ;;  %1825 = vmatmul.bf16.vlgmr.msra.gmra.mxu0 %v3252_v27 }
  0xd3   : > { %v1090_v62 = vpop.f32.mrf.mxu3  ;;  %v743_v58 = vpop.f32.mrf.mxu1 }
  0xd4   : > { %v1130_v18 = vadd.f32 %v1090_v62, %v994_v6  ;;  %v744_v24 = vadd.f32 %v743_v58, %v598_v57 }
  0xd6   : > { %v3476_v28 = vadd.f32 %v1248_v4, %v1130_v18 }
  0xd7   : > { %v1250_v25 = vpop.f32.mrf.mxu0 }
  0xd9   : > { %v956_v51 = vpop.f32.mrf.mxu2 }
  0xda   : > { %v995_v14 = vadd.f32 %v956_v51, %v744_v24 }
  0xdb   : > { %v1092_v1 = vpop.f32.mrf.mxu3  ;;  %v746_v43 = vpop.f32.mrf.mxu1 }
  0xdc   : > { %v1131_v37 = vadd.f32 %v1092_v1, %v995_v14  ;;  %v747_v48 = vadd.f32 %v746_v43, %v601_v22 }
  0xde   : > { %1394 = vmatmul.bf16.gmra.mxu1 %v3252_v27  ;;  %1530 = vmatmul.bf16.gmra.mxu2 %v3303_v0  ;;  %v3480_v59 = vadd.f32 %v1250_v25, %v1131_v37 }
  0xdf   : > { %v1253_v9 = vpop.f32.mrf.mxu0 }
  0xe0   : > { %1688 = vmatmul.bf16.gmra.mxu3 %v3141_v50 }
  0xe1   : > { %v959_v34 = vpop.f32.mrf.mxu2 }
  0xe2   : > { %v996_v57 = vadd.f32 %v959_v34, %v747_v48  ;;  %1830 = vmatmul.bf16.gmra.mxu0 %v3287_v8 }
  0xe3   : > { %v1095_v33 = vpop.f32.mrf.mxu3  ;;  %v748_v7 = vpop.f32.mrf.mxu1 }
  0xe4   : > { %v1132_v49 = vadd.f32 %v1095_v33, %v996_v57  ;;  %v749_v40 = vadd.f32 %v748_v7, %v603_v42 }
  0xe6   : > { %v3484_v53 = vadd.f32 %v1253_v9, %v1132_v49 }
  0xe7   : > { %v1255_v20 = vpop.f32.mrf.mxu0 }
  0xe9   : > { %v961_v22 = vpop.f32.mrf.mxu2 }
  0xea   : > { %v997_v27 = vadd.f32 %v961_v22, %v749_v40 }
  0xeb   : > { %v1097_v15 = vpop.f32.mrf.mxu3  ;;  %v751_v0 = vpop.f32.mrf.mxu1 }
  0xec   : > { %v1133_v17 = vadd.f32 %v1097_v15, %v997_v27  ;;  %v752_v4 = vadd.f32 %v751_v0, %v3415_v12 }
  0xee   : > { %1399 = vmatmul.bf16.gmra.mxu1 %v3287_v8  ;;  %1535 = vmatmul.bf16.gmra.mxu2 %v3322_v10  ;;  %v3489_v50 = vadd.f32 %v1255_v20, %v1133_v17 }
  0xef   : > { %v1258_v13 = vpop.f32.mrf.mxu0 }
  0xf0   : > { %1693 = vmatmul.bf16.gmra.mxu3 %v3018_v23 }
  0xf1   : > { %v964_v42 = vpop.f32.mrf.mxu2 }
  0xf2   : > { %v998_v6 = vadd.f32 %v964_v42, %v752_v4  ;;  %1835 = vmatmul.bf16.gmra.mxu0 %v3347_v19 }
  0xf3   : > { %v1100_v62 = vpop.f32.mrf.mxu3  ;;  %v753_v58 = vpop.f32.mrf.mxu1 }
  0xf4   : > { %v1134_v18 = vadd.f32 %v1100_v62, %v998_v6  ;;  %v754_v24 = vadd.f32 %v753_v58, %v3435_v38 }
  0xf6   : > { %v3494_v25 = vadd.f32 %v1258_v13, %v1134_v18  ;;  %v1307_v18 = vrot.slane %v3404_v55, 5 }
  0xf7   : > { %v1260_v12 = vpop.f32.mrf.mxu0 }
  0xf9   : > { %v966_v8 = vpop.f32.mrf.mxu2 }
  0xfa   : > { %v999_v51 = vadd.f32 %v966_v8, %v754_v24 }
  0xfb   : > { %v1102_v10 = vpop.f32.mrf.mxu3  ;;  %v756_v14 = vpop.f32.mrf.mxu1 }
  0xfc   : > { %v1135_v1 = vadd.f32 %v1102_v10, %v999_v51  ;;  %v757_v23 = vadd.f32 %v756_v14, %v3451_v52  ;;  %v276_v51 = vld [vmem:[%s2925_s7 + $0x70] sm:$0xf] }
  0xfe   : > { %1404 = vmatmul.bf16.gmra.mxu1 %v3347_v19  ;;  %1540 = vmatmul.bf16.gmra.mxu2 %v3350_v21  ;;  %v3499_v43 = vadd.f32 %v1260_v12, %v1135_v1  ;;  %v3524_v12 = vld [vmem:[%s2925_s7 + $0x6c] sm:$0xf]  ;;  %v1309_v1 = vrot.slane %v1307_v18, 4 }
  0xff   : > { %v1263_v37 = vpop.f32.mrf.mxu0 }
 0x100   : > { %1698 = vmatmul.bf16.gmra.mxu3 %v3148_v56 }
 0x101   : > { %v969_v38 = vpop.f32.mrf.mxu2 }
 0x102   : > { %v1000_v48 = vadd.f32 %v969_v38, %v757_v23  ;;  %1840 = vmatmul.bf16.gmra.mxu0 %v3375_v36  ;;  %v1583_v23 = vshrl.u32 %v3524_v12, 16  ;;  %v1596_v38 = vshrl.u32 %v276_v51, 16 }
 0x103   : > { %v1105_v9 = vpop.f32.mrf.mxu3  ;;  %v758_v34 = vpop.f32.mrf.mxu1 }
 0x104   : > { %v1136_v57 = vadd.f32 %v1105_v9, %v1000_v48  ;;  %v759_v33 = vadd.f32 %v758_v34, %v3466_v61  ;;  %v1585_v34 = vrot.slane %v1583_v23, 4 }
 0x106   : > { %v3504_v7 = vadd.f32 %v1263_v37, %v1136_v57  ;;  %v1592_v37 = vshll.u32 %v276_v51, 16 }
 0x107   : > { %v1265_v52 = vpop.f32.mrf.mxu0 }
 0x109   : > { %v971_v19 = vpop.f32.mrf.mxu2 }
 0x10a   : > { %v1001_v49 = vadd.f32 %v971_v19, %v759_v33  ;;  %v1594_v19 = vrot.slane %v1592_v37, 5 }
 0x10b   : > { %v1107_v21 = vpop.f32.mrf.mxu3  ;;  %v761_v40 = vpop.f32.mrf.mxu1 }
 0x10c   : > { %v1137_v20 = vadd.f32 %v1107_v21, %v1001_v49  ;;  %v762_v22 = vadd.f32 %v761_v40, %v3430_v30  ;;  %v1598_v49 = vrot.slane %v1596_v38, 4  ;;  %v277_v40 = vld [vmem:[%s2925_s7 + $0x74] sm:$0xf]  ;;  %s2139_s7 = sshll.u32 %s2834_s15, 3  ;;  %s3664_s15 = smov (!%p238_p7, %s2834_s15), 1 }
 0x10d   : > { %p228_p6 = scmp.lt.s32.totalorder %s2139_s7, 15  ;;  %s241_s12 = sadd.s32 %s2143_s11, %s3664_s15 }
 0x10e   : > { %1409 = vmatmul.bf16.gmra.mxu1 %v3375_v36  ;;  %1545 = vmatmul.bf16.gmra.mxu2 %v3378_v39  ;;  %v3508_v56 = vadd.f32 %v1265_v52, %v1137_v20  ;;  %s2144_s13 = sshll.u32 %s241_s12, 1 }
 0x10f   : > { %v1268_v27 = vpop.f32.mrf.mxu0  ;;  %s3662_s7 = smov (!%p228_p6, %s2139_s7), 15  ;;  %s243_s23 = scalar_lea.vmem %s3644_s4, %s2144_s13 }
 0x110   : > { %1703 = vmatmul.bf16.gmra.mxu3 %v3039_v46  ;;  %s2140_s27 = sshll.u32 %s3662_s7, 1 }
 0x111   : > { %v974_v61 = vpop.f32.mrf.mxu2  ;;  %s232_s5 = sadd.s32 %s2141_s28, %s2140_s27 }
 0x112   : > { %v1002_v15 = vadd.f32 %v974_v61, %v762_v22  ;;  %1845 = vmatmul.bf16.gmra.mxu0 %v3413_v3  ;;  %s2142_s6 = sshll.u32 %s232_s5, 2 }
 0x113   : > { %v1110_v0 = vpop.f32.mrf.mxu3  ;;  %v763_v17 = vpop.f32.mrf.mxu1  ;;  %s3582_s10 = scalar_lea.vmem %s3643_s3, %s2142_s6 }
 0x114   : > { %v1138_v4 = vadd.f32 %v1110_v0, %v1002_v15  ;;  %v764_v36 = vadd.f32 %v763_v17, %v3445_v45  ;;  %v1599_v17 = vor.u32 %v1598_v49, %v1594_v19 }
 0x116   : > { %v3513_v13 = vadd.f32 %v1268_v27, %v1138_v4  ;;  %v1602_v4 = vshll.u32 %v277_v40, 16 }
 0x117   : > { %v1270_v39 = vpop.f32.mrf.mxu0 }
 0x119   : > { %v976_v42 = vpop.f32.mrf.mxu2 }
 0x11a   : > { %v1003_v6 = vadd.f32 %v976_v42, %v764_v36 }
 0x11b   : > { %v1112_v46 = vpop.f32.mrf.mxu3  ;;  %v766_v62 = vpop.f32.mrf.mxu1 }
 0x11c   : > { %v1139_v30 = vadd.f32 %v1112_v46, %v1003_v6  ;;  %v767_v24 = vadd.f32 %v766_v62, %v3461_v26  ;;  %v1310_v26 = vrot.slane %v3422_v11, 5  ;;  %v1600_v46 = vrot.slane %v1599_v17, 4 }
 0x11d   : > { %v1604_v62 = vrot.slane %v1602_v4, 5 }
 0x11e   : > { %1414 = vmatmul.bf16.gmra.mxu1 %v3413_v3  ;;  %1550 = vmatmul.bf16.gmra.mxu2 %v3418_v5  ;;  %v3518_v58 = vadd.f32 %v1270_v39, %v1139_v30  ;;  %v2416_v5 = vrot.slane %v3401_v54, 9  ;;  %v1311_v52 = vsel %vm3187_vm5, %v1309_v1, %v1310_v26  ;;  %v1743_v30 = vrot.slane %v276_v51, 5 }
 0x11f   : > { %v1273_v45 = vpop.f32.mrf.mxu0  ;;  %v1330_v61 = vunpack.c.l.b16 %v1311_v52 }
 0x120   : > { %1708 = vmatmul.bf16.gmra.mxu3 %v3162_v16  ;;  %v1586_v16 = vshll.u32 %v3524_v12, 16  ;;  %v1308_v9 = vsel %vm3187_vm5, %v2416_v5, %v1307_v18 }
 0x121   : > { %v979_v8 = vpop.f32.mrf.mxu2  ;;  %v1329_v27 = vunpack.c.l.b16 %v1308_v9 }
 0x122   : > { %v1004_v10 = vadd.f32 %v979_v8, %v767_v24  ;;  %1850 = vmatmul.bf16.gmra.mxu0 %v3449_v44  ;;  %v1588_v57 = vrot.slane %v1586_v16, 5 }
 0x123   : > { %v1115_v14 = vpop.f32.mrf.mxu3  ;;  %v768_v3 = vpop.f32.mrf.mxu1  ;;  %v1331_v36 = vpack.c.b16 %v1330_v61, %v1329_v27 }
 0x124   : > { %v1140_v55 = vadd.f32 %v1115_v14, %v1004_v10  ;;  %v769_v54 = vadd.f32 %v768_v3, %v3468_v63  ;;  %v1589_v15 = vor.u32 %v1588_v57, %v1585_v34  ;;  %v1605_v10 = vsel %vm2969_vm2, %v1600_v46, %v1604_v62 }
 0x125   : > { %v1746_v14 = vrot.slane %v277_v40, 5  ;;  %v1624_v5 = vunpack.c.l.b16 %v1605_v10 }
 0x126   : > { %v3532_v48 = vadd.f32 %v1273_v45, %v1140_v55  ;;  %v1590_v39 = vrot.slane %v1589_v15, 4 }
 0x127   : > { %v1275_v33 = vpop.f32.mrf.mxu0 }
 0x129   : > { %v981_v21 = vpop.f32.mrf.mxu2 }
 0x12a   : > { %v1005_v11 = vadd.f32 %v981_v21, %v769_v54 }
 0x12b   : > { %v1117_v20 = vpop.f32.mrf.mxu3  ;;  %v771_v22 = vpop.f32.mrf.mxu1 }
 0x12c   : > { %v1141_v0 = vadd.f32 %v1117_v20, %v1005_v11  ;;  %v772_v42 = vadd.f32 %v771_v22, %v3432_v32  ;;  %v1745_v32 = vrot.slane %v1743_v30, 4 }
 0x12e   : > { %1419 = vmatmul.bf16.gmra.mxu1 %v3449_v44  ;;  %1555 = vmatmul.bf16.gmra.mxu2 %v3454_v29  ;;  %v3542_v63 = vadd.f32 %v1275_v33, %v1141_v0  ;;  %v1595_v44 = vsel %vm2969_vm2, %v1590_v39, %v1594_v19  ;;  %v2565_v29 = vrot.slane %v3524_v12, 9  ;;  %v1747_v55 = vsel %vm3187_vm5, %v1745_v32, %v1746_v14 }
 0x12f   : > { %v1278_v6 = vpop.f32.mrf.mxu0  ;;  %v1623_v51 = vunpack.c.l.b16 %v1595_v44  ;;  %v1766_v57 = vunpack.c.l.b16 %v1747_v55 }
 0x130   : > { %1713 = vmatmul.bf16.gmra.mxu3 %v3459_v41  ;;  %v1744_v16 = vsel %vm3187_vm5, %v2565_v29, %v1743_v30 }
 0x131   : > { %v984_v18 = vpop.f32.mrf.mxu2  ;;  %v1625_v9 = vpack.c.b16 %v1624_v5, %v1623_v51  ;;  %v1765_v34 = vunpack.c.l.b16 %v1744_v16 }
 0x132   : > { %v1006_v24 = vadd.f32 %v984_v18, %v772_v42  ;;  %1855 = vmatmul.bf16.gmra.mxu0 %v1331_v36 }
 0x133   : > { %v1120_v45 = vpop.f32.mrf.mxu3  ;;  %v773_v8 = vpop.f32.mrf.mxu1 }
 0x134   : > { %v1142_v41 = vadd.f32 %v1120_v45, %v1006_v24  ;;  %v774_v1 = vadd.f32 %v773_v8, %v3447_v47  ;;  %v1767_v47 = vpack.c.b16 %v1766_v57, %v1765_v34  ;;  %v3574_v45 = vld [vmem:[%s3642_s2] ss:$0 sm:$0xff] }
 0x136   : > { %v3551_v3 = vadd.f32 %v1278_v6, %v1142_v41 }
 0x137   : > { %v1280_v23 = vpop.f32.mrf.mxu0 }
 0x139   : > { %v986_v12 = vpop.f32.mrf.mxu2 }
 0x13a   : > { %v1007_v26 = vadd.f32 %v986_v12, %v774_v1 }
 0x13b   : > { %v1122_v37 = vpop.f32.mrf.mxu3  ;;  %v776_v38 = vpop.f32.mrf.mxu1 }
 0x13c   : > { %v1143_v54 = vadd.f32 %v1122_v37, %v1007_v26  ;;  %v777_v52 = vadd.f32 %v776_v38, %v3463_v60 }
 0x13e   : > { %1424 = vmatmul.bf16.gmra.mxu1 %v1331_v36  ;;  %1560 = vmatmul.bf16.gmra.mxu2 %v2626_v31  ;;  %v3559_v33 = vadd.f32 %v1280_v23, %v1143_v54 }
 0x13f   : > { %v1283_v35 = vpop.f32.mrf.mxu0 }
 0x140   : > { %1718 = vmatmul.bf16.gmra.mxu3 %v1625_v9 }
 0x141   : > { %v989_v19 = vpop.f32.mrf.mxu2 }
 0x142   : > { %v1008_v49 = vadd.f32 %v989_v19, %v777_v52  ;;  %1860 = vmatmul.bf16.gmra.mxu0 %v1767_v47 }
 0x143   : > { %v1125_v21 = vpop.f32.mrf.mxu3  ;;  %v778_v40 = vpop.f32.mrf.mxu1 }
 0x144   : > { %v1144_v11 = vadd.f32 %v1125_v21, %v1008_v49  ;;  %v779_v22 = vadd.f32 %v778_v40, %v3470_v2 }
 0x146   : > { %v3562_v20 = vadd.f32 %v1283_v35, %v1144_v11 }
 0x147   : > { %v1285_v27 = vpop.f32.mrf.mxu0 }
 0x149   : > { %v991_v61 = vpop.f32.mrf.mxu2 }
 0x14a   : > { %v1009_v15 = vadd.f32 %v991_v61, %v779_v22 }
 0x14b   : > { %v1127_v0 = vpop.f32.mrf.mxu3  ;;  %v1390_v17 = vpop.f32.mrf.mxu1 }
 0x14c   : > { %v1145_v4 = vadd.f32 %v1127_v0, %v1009_v15  ;;  %v1430_v36 = vadd.f32 %v1390_v17, %v3476_v28 }
 0x14e   : > { %v3566_v60 = vadd.f32 %v1285_v27, %v1145_v4 }
 0x14f   : > { %v1826_v39 = vpop.f32.mrf.mxu0 }
 0x151   : > { %v1526_v42 = vpop.f32.mrf.mxu2 }
 0x152   : > { %v1566_v6 = vadd.f32 %v1526_v42, %v1430_v36 }
 0x153   : > { %v1684_v46 = vpop.f32.mrf.mxu3  ;;  %v1392_v62 = vpop.f32.mrf.mxu1 }
 0x154   : > { %v1724_v2 = vadd.f32 %v1684_v46, %v1566_v6  ;;  %v1431_v30 = vadd.f32 %v1392_v62, %v3480_v59 }
 0x156   : > { %v1866_v24 = vadd.f32 %v1826_v39, %v1724_v2 }
 0x157   : > { %v1828_v18 = vpop.f32.mrf.mxu0 }
 0x158   : > { %v1885_v10 = vadd.f32 %v3574_v45, %v1866_v24 }
 0x159   : > { %v1528_v28 = vpop.f32.mrf.mxu2 }
 0x15a   : > { %v1567_v8 = vadd.f32 %v1528_v28, %v1431_v30  ;;  %v1954_v5 = vmul.f32 %v1885_v10, %v1885_v10 }
 0x15b   : > { %v1686_v44 = vpop.f32.mrf.mxu3  ;;  %v1395_v29 = vpop.f32.mrf.mxu1 }
 0x15c   : > { %v1725_v41 = vadd.f32 %v1686_v44, %v1567_v8  ;;  %v1432_v14 = vadd.f32 %v1395_v29, %v3484_v53 }
 0x15e   : > { %v1867_v32 = vadd.f32 %v1828_v18, %v1725_v41 }
 0x15f   : > { %v1831_v51 = vpop.f32.mrf.mxu0 }
 0x160   : > { %v1886_v59 = vadd.f32 %v3574_v45, %v1867_v32 }
 0x161   : > { %v1531_v1 = vpop.f32.mrf.mxu2 }
 0x162   : > { %v2702_v23 = vpack.c.bf16 %v1886_v59, %v1885_v10  ;;  %v1933_v16 = vadd.f32 %v1886_v59, %v1885_v10  ;;  %v1955_v55 = vmul.f32 %v1886_v59, %v1886_v59  ;;  %v1568_v12 = vadd.f32 %v1531_v1, %v1432_v14 }
 0x163   : > { %v1689_v26 = vpop.f32.mrf.mxu3  ;;  %v1397_v37 = vpop.f32.mrf.mxu1 }
 0x164   : > { %2703 = vst [vmem:[%s3582_s10] sm:$0xff] %v2702_v23   ;;  %v1970_v31 = vadd.f32 %v1955_v55, %v1954_v5  ;;  %v1726_v38 = vadd.f32 %v1689_v26, %v1568_v12  ;;  %v1433_v34 = vadd.f32 %v1397_v37, %v3489_v50 }
 0x166   : > { %v1868_v9 = vadd.f32 %v1831_v51, %v1726_v38 }
 0x167   : > { %v1833_v57 = vpop.f32.mrf.mxu0 }
 0x168   : > { %v1887_v53 = vadd.f32 %v3574_v45, %v1868_v9 }
 0x169   : > { %v1533_v54 = vpop.f32.mrf.mxu2 }
 0x16a   : > { %v1934_v47 = vadd.f32 %v1933_v16, %v1887_v53  ;;  %v1956_v52 = vmul.f32 %v1887_v53, %v1887_v53  ;;  %v1569_v35 = vadd.f32 %v1533_v54, %v1433_v34 }
 0x16b   : > { %v1691_v19 = vpop.f32.mrf.mxu3  ;;  %v1400_v49 = vpop.f32.mrf.mxu1 }
 0x16c   : > { %v1971_v21 = vadd.f32 %v1970_v31, %v1956_v52  ;;  %v1727_v40 = vadd.f32 %v1691_v19, %v1569_v35  ;;  %v1434_v27 = vadd.f32 %v1400_v49, %v3494_v25 }
 0x16e   : > { %v1869_v11 = vadd.f32 %v1833_v57, %v1727_v40 }
 0x16f   : > { %v1836_v61 = vpop.f32.mrf.mxu0 }
 0x170   : > { %v1888_v22 = vadd.f32 %v3574_v45, %v1869_v11 }
 0x171   : > { %v1536_v15 = vpop.f32.mrf.mxu2 }
 0x172   : > { %v2707_v0 = vpack.c.bf16 %v1888_v22, %v1887_v53  ;;  %v1935_v17 = vadd.f32 %v1934_v47, %v1888_v22  ;;  %v1957_v50 = vmul.f32 %v1888_v22, %v1888_v22  ;;  %v1570_v4 = vadd.f32 %v1536_v15, %v1434_v27 }
 0x173   : > { %v1694_v36 = vpop.f32.mrf.mxu3  ;;  %v1402_v39 = vpop.f32.mrf.mxu1 }
 0x174   : > { %2739 = vst [vmem:[%s3582_s10 + $0x8] sm:$0xff] %v2707_v0   ;;  %v1972_v42 = vadd.f32 %v1971_v21, %v1957_v50  ;;  %v1728_v6 = vadd.f32 %v1694_v36, %v1570_v4  ;;  %v1435_v2 = vadd.f32 %v1402_v39, %v3499_v43 }
 0x176   : > { %v1870_v46 = vadd.f32 %v1836_v61, %v1728_v6 }
 0x177   : > { %v1838_v30 = vpop.f32.mrf.mxu0 }
 0x178   : > { %v1889_v62 = vadd.f32 %v3574_v45, %v1870_v46 }
 0x179   : > { %v1538_v18 = vpop.f32.mrf.mxu2 }
 0x17a   : > { %v1936_v24 = vadd.f32 %v1935_v17, %v1889_v62  ;;  %v1958_v25 = vmul.f32 %v1889_v62, %v1889_v62  ;;  %v1571_v28 = vadd.f32 %v1538_v18, %v1435_v2 }
 0x17b   : > { %v1696_v8 = vpop.f32.mrf.mxu3  ;;  %v1405_v44 = vpop.f32.mrf.mxu1 }
 0x17c   : > { %v1973_v29 = vadd.f32 %v1972_v42, %v1958_v25  ;;  %v1729_v41 = vadd.f32 %v1696_v8, %v1571_v28  ;;  %v1436_v59 = vadd.f32 %v1405_v44, %v3504_v7 }
 0x17e   : > { %v1871_v10 = vadd.f32 %v1838_v30, %v1729_v41 }
 0x17f   : > { %v1841_v14 = vpop.f32.mrf.mxu0 }
 0x180   : > { %v1890_v32 = vadd.f32 %v3574_v45, %v1871_v10 }
 0x181   : > { %v1541_v51 = vpop.f32.mrf.mxu2 }
 0x182   : > { %v2712_v5 = vpack.c.bf16 %v1890_v32, %v1889_v62  ;;  %v1937_v1 = vadd.f32 %v1936_v24, %v1890_v32  ;;  %v1959_v43 = vmul.f32 %v1890_v32, %v1890_v32  ;;  %v1572_v23 = vadd.f32 %v1541_v51, %v1436_v59 }
 0x183   : > { %v1699_v16 = vpop.f32.mrf.mxu3  ;;  %v1407_v55 = vpop.f32.mrf.mxu1 }
 0x184   : > { %2740 = vst [vmem:[%s3582_s10 + $0x10] sm:$0xff] %v2712_v5   ;;  %v1974_v12 = vadd.f32 %v1973_v29, %v1959_v43  ;;  %v1730_v26 = vadd.f32 %v1699_v16, %v1572_v23  ;;  %v1437_v38 = vadd.f32 %v1407_v55, %v3508_v56 }
 0x186   : > { %v1872_v37 = vadd.f32 %v1841_v14, %v1730_v26 }
 0x187   : > { %v1843_v9 = vpop.f32.mrf.mxu0 }
 0x188   : > { %v1891_v31 = vadd.f32 %v3574_v45, %v1872_v37 }
 0x189   : > { %v1543_v53 = vpop.f32.mrf.mxu2 }
 0x18a   : > { %v1938_v34 = vadd.f32 %v1937_v1, %v1891_v31  ;;  %v1960_v7 = vmul.f32 %v1891_v31, %v1891_v31  ;;  %v1573_v57 = vadd.f32 %v1543_v53, %v1437_v38 }
 0x18b   : > { %v1701_v54 = vpop.f32.mrf.mxu3  ;;  %v1410_v47 = vpop.f32.mrf.mxu1 }
 0x18c   : > { %v1975_v52 = vadd.f32 %v1974_v12, %v1960_v7  ;;  %v1731_v35 = vadd.f32 %v1701_v54, %v1573_v57  ;;  %v1438_v21 = vadd.f32 %v1410_v47, %v3513_v13 }
 0x18e   : > { %v1873_v19 = vadd.f32 %v1843_v9, %v1731_v35 }
 0x18f   : > { %v1846_v40 = vpop.f32.mrf.mxu0 }
 0x190   : > { %v1892_v49 = vadd.f32 %v3574_v45, %v1873_v19 }
 0x191   : > { %v1546_v11 = vpop.f32.mrf.mxu2 }
 0x192   : > { %v2717_v22 = vpack.c.bf16 %v1892_v49, %v1891_v31  ;;  %v1939_v27 = vadd.f32 %v1938_v34, %v1892_v49  ;;  %v1961_v56 = vmul.f32 %v1892_v49, %v1892_v49  ;;  %v1574_v61 = vadd.f32 %v1546_v11, %v1438_v21 }
 0x193   : > { %v1704_v15 = vpop.f32.mrf.mxu3  ;;  %v1412_v0 = vpop.f32.mrf.mxu1 }
 0x194   : > { %2741 = vst [vmem:[%s3582_s10 + $0x18] sm:$0xff] %v2717_v22   ;;  %v1976_v17 = vadd.f32 %v1975_v52, %v1961_v56  ;;  %v1732_v50 = vadd.f32 %v1704_v15, %v1574_v61  ;;  %v1439_v39 = vadd.f32 %v1412_v0, %v3518_v58 }
 0x196   : > { %v1874_v4 = vadd.f32 %v1846_v40, %v1732_v50 }
 0x197   : > { %v1848_v42 = vpop.f32.mrf.mxu0 }
 0x198   : > { %v1893_v36 = vadd.f32 %v3574_v45, %v1874_v4 }
 0x199   : > { %v1548_v6 = vpop.f32.mrf.mxu2 }
 0x19a   : > { %v1940_v46 = vadd.f32 %v1939_v27, %v1893_v36  ;;  %v1962_v13 = vmul.f32 %v1893_v36, %v1893_v36  ;;  %v1575_v62 = vadd.f32 %v1548_v6, %v1439_v39 }
 0x19b   : > { %v1706_v2 = vpop.f32.mrf.mxu3  ;;  %v1415_v30 = vpop.f32.mrf.mxu1 }
 0x19c   : > { %v1977_v18 = vadd.f32 %v1976_v17, %v1962_v13  ;;  %v1733_v24 = vadd.f32 %v1706_v2, %v1575_v62  ;;  %v1440_v8 = vadd.f32 %v1415_v30, %v3532_v48 }
 0x19e   : > { %v1875_v25 = vadd.f32 %v1848_v42, %v1733_v24 }
 0x19f   : > { %v1851_v44 = vpop.f32.mrf.mxu0 }
 0x1a0   : > { %v1894_v28 = vadd.f32 %v3574_v45, %v1875_v25 }
 0x1a1   : > { %v1551_v29 = vpop.f32.mrf.mxu2 }
 0x1a2   : > { %v2722_v41 = vpack.c.bf16 %v1894_v28, %v1893_v36  ;;  %v1941_v10 = vadd.f32 %v1940_v46, %v1894_v28  ;;  %v1963_v58 = vmul.f32 %v1894_v28, %v1894_v28  ;;  %v1576_v32 = vadd.f32 %v1551_v29, %v1440_v8 }
 0x1a3   : > { %v1709_v59 = vpop.f32.mrf.mxu3  ;;  %v1417_v14 = vpop.f32.mrf.mxu1 }
 0x1a4   : > { %2742 = vst [vmem:[%s3582_s10 + $0x20] sm:$0xff] %v2722_v41   ;;  %v1978_v51 = vadd.f32 %v1977_v18, %v1963_v58  ;;  %v1734_v5 = vadd.f32 %v1709_v59, %v1576_v32  ;;  %v1441_v23 = vadd.f32 %v1417_v14, %v3542_v63 }
 0x1a6   : > { %v1876_v1 = vadd.f32 %v1851_v44, %v1734_v5 }
 0x1a7   : > { %v1853_v16 = vpop.f32.mrf.mxu0 }
 0x1a8   : > { %v1895_v43 = vadd.f32 %v3574_v45, %v1876_v1 }
 0x1a9   : > { %v1553_v55 = vpop.f32.mrf.mxu2 }
 0x1aa   : > { %v1942_v12 = vadd.f32 %v1941_v10, %v1895_v43  ;;  %v1964_v48 = vmul.f32 %v1895_v43, %v1895_v43  ;;  %v1577_v26 = vadd.f32 %v1553_v55, %v1441_v23 }
 0x1ab   : > { %v1711_v37 = vpop.f32.mrf.mxu3  ;;  %v1420_v31 = vpop.f32.mrf.mxu1 }
 0x1ac   : > { %v1979_v38 = vadd.f32 %v1978_v51, %v1964_v48  ;;  %v1735_v9 = vadd.f32 %v1711_v37, %v1577_v26  ;;  %v1442_v7 = vadd.f32 %v1420_v31, %v3551_v3 }
 0x1ae   : > { %v1877_v53 = vadd.f32 %v1853_v16, %v1735_v9 }
 0x1af   : > { %v1856_v57 = vpop.f32.mrf.mxu0 }
 0x1b0   : > { %v1896_v34 = vadd.f32 %v3574_v45, %v1877_v53 }
 0x1b1   : > { %v1556_v54 = vpop.f32.mrf.mxu2 }
 0x1b2   : > { %v2727_v47 = vpack.c.bf16 %v1896_v34, %v1895_v43  ;;  %v1943_v52 = vadd.f32 %v1942_v12, %v1896_v34  ;;  %v1965_v63 = vmul.f32 %v1896_v34, %v1896_v34  ;;  %v1578_v35 = vadd.f32 %v1556_v54, %v1442_v7 }
 0x1b3   : > { %v1714_v19 = vpop.f32.mrf.mxu3  ;;  %v1422_v49 = vpop.f32.mrf.mxu1 }
 0x1b4   : > { %2743 = vst [vmem:[%s3582_s10 + $0x28] sm:$0xff] %v2727_v47   ;;  %v1980_v21 = vadd.f32 %v1979_v38, %v1965_v63  ;;  %v1736_v40 = vadd.f32 %v1714_v19, %v1578_v35  ;;  %v1443_v27 = vadd.f32 %v1422_v49, %v3559_v33 }
 0x1b6   : > { %v1878_v11 = vadd.f32 %v1856_v57, %v1736_v40 }
 0x1b7   : > { %v1858_v56 = vpop.f32.mrf.mxu0 }
 0x1b8   : > { %v1897_v22 = vadd.f32 %v3574_v45, %v1878_v11 }
 0x1b9   : > { %v1558_v61 = vpop.f32.mrf.mxu2 }
 0x1ba   : > { %v1944_v15 = vadd.f32 %v1943_v52, %v1897_v22  ;;  %v1966_v3 = vmul.f32 %v1897_v22, %v1897_v22  ;;  %v1579_v0 = vadd.f32 %v1558_v61, %v1443_v27 }
 0x1bb   : > { %v1716_v17 = vpop.f32.mrf.mxu3  ;;  %v1425_v50 = vpop.f32.mrf.mxu1 }
 0x1bc   : > { %v1981_v4 = vadd.f32 %v1980_v21, %v1966_v3  ;;  %v1737_v36 = vadd.f32 %v1716_v17, %v1579_v0  ;;  %v1444_v6 = vadd.f32 %v1425_v50, %v3562_v20 }
 0x1be   : > { %v1879_v39 = vadd.f32 %v1858_v56, %v1737_v36 }
 0x1bf   : > { %v1861_v18 = vpop.f32.mrf.mxu0 }
 0x1c0   : > { %v1898_v42 = vadd.f32 %v3574_v45, %v1879_v39 }
 0x1c1   : > { %v1561_v46 = vpop.f32.mrf.mxu2 }
 0x1c2   : > { %v2732_v13 = vpack.c.bf16 %v1898_v42, %v1897_v22  ;;  %v1945_v62 = vadd.f32 %v1944_v15, %v1898_v42  ;;  %v1967_v2 = vmul.f32 %v1898_v42, %v1898_v42  ;;  %v1580_v33 = vadd.f32 %v1561_v46, %v1444_v6 }
 0x1c3   : > { %v1719_v30 = vpop.f32.mrf.mxu3  ;;  %v1427_v28 = vpop.f32.mrf.mxu1 }
 0x1c4   : > { %2744 = vst [vmem:[%s3582_s10 + $0x30] sm:$0xff] %v2732_v13   ;;  %v1982_v24 = vadd.f32 %v1981_v4, %v1967_v2  ;;  %v1738_v25 = vadd.f32 %v1719_v30, %v1580_v33  ;;  %v1445_v29 = vadd.f32 %v1427_v28, %v3566_v60 }
 0x1c6   : > { %v1880_v8 = vadd.f32 %v1861_v18, %v1738_v25 }
 0x1c7   : > { %v1863_v51 = vpop.f32.mrf.mxu0 }
 0x1c8   : > { %v1899_v44 = vadd.f32 %v3574_v45, %v1880_v8 }
 0x1c9   : > { %v1563_v41 = vpop.f32.mrf.mxu2 }
 0x1ca   : > { %v1946_v20 = vadd.f32 %v1945_v62, %v1899_v44  ;;  %v1968_v10 = vmul.f32 %v1899_v44, %v1899_v44  ;;  %v1581_v58 = vadd.f32 %v1563_v41, %v1445_v29 }
 0x1cb   : > { %v1721_v32 = vpop.f32.mrf.mxu3 }
 0x1cc   : > { %v1983_v59 = vadd.f32 %v1982_v24, %v1968_v10  ;;  %v1739_v14 = vadd.f32 %v1721_v32, %v1581_v58 }
 0x1ce   : > { %v1881_v5 = vadd.f32 %v1863_v51, %v1739_v14 }
 0x1d0   : > { %v1900_v1 = vadd.f32 %v3574_v45, %v1881_v5 }
 0x1d2   : > { %v2737_v43 = vpack.c.bf16 %v1900_v1, %v1899_v44  ;;  %v1947_v23 = vadd.f32 %v1946_v20, %v1900_v1  ;;  %v1969_v16 = vmul.f32 %v1900_v1, %v1900_v1 }
 0x1d4   : > { %2745 = vst [vmem:[%s3582_s10 + $0x38] sm:$0xff] %v2737_v43   ;;  %v1948_v55 = vrot.slane %v1947_v23, 4  ;;  %v1984_v60 = vadd.f32 %v1983_v59, %v1969_v16 }
 0x1d6   : > { %v1949_v12 = vadd.f32 %v1948_v55, %v1947_v23  ;;  %v1985_v48 = vrot.slane %v1984_v60, 4 }
 0x1d8   : > { %v1950_v26 = vrot.slane %v1949_v12, 2  ;;  %v1986_v37 = vadd.f32 %v1985_v48, %v1984_v60 }
 0x1da   : > { %v1951_v31 = vadd.f32 %v1950_v26, %v1949_v12  ;;  %v1987_v38 = vrot.slane %v1986_v37, 2 }
 0x1dc   : > { %v1952_v9 = vrot.slane %v1951_v31, 1  ;;  %v1988_v53 = vadd.f32 %v1987_v38, %v1986_v37 }
 0x1de   : > { %v1989_v45 = vrot.slane %v1988_v53, 1  ;;  %v1953_v34 = vadd.f32 %v1952_v9, %v1951_v31 }
 0x1e0   : > { %v1990_v7 = vadd.f32 %v1989_v45, %v1988_v53 }
 0x1e2   : > { %v1992_v57 = vsel %vm1991_vm6, %v1953_v34, %v1990_v7 }
 0x1e3   : > { %1993 = vst [vmem:[%s243_s23] sm:$0x3] %v1992_v57 }
 0x1e4 PF: > { %s15_s19 = sadd.s32 1, %s2850_s19   ;;  %s3649_s15 = smov %s2842_s17 }
 0x1e5   : > { %p12_p8 = scmp.ge.s32.totalorder %s15_s19, 6   ;;  %s3650_s16 = smov %s2846_s18 }
 0x1e6   : > { %s3651_s17 = smov %s3654_s20  ;;  %s3652_s18 = smov %s3658_s21 }
 0x1e7   :  { %14 = sbr.rel (!%p12_p8) target bundleno = 3 (0x3), region = 83 }

// kernel: resblock_forward.4
= control target key start
LH: loop header
LB: loop body
LE: loop exit
PB: predicated region body
PF: predicated region fallthrough
CT: control target
= control target key end

     0   :  { %s4369_s21 = smov 0   ;;  %s4371_s22 = smov 0   ;;  %s5502_s0 = inlined_call_operand.vmem [shape: bf16[2,16,16,128], index: 0, kind: input, shape index: {}]   ;;  %s5503_s1 = inlined_call_operand.vmem [shape: f32[1,128], index: 1, kind: input, shape index: {}]   ;;  %s5504_s2 = inlined_call_operand.vmem [shape: f32[1,128], index: 2, kind: input, shape index: {}]   ;;  %s5505_s3 = inlined_call_operand.vmem [shape: bf16[9,128,128], index: 3, kind: input, shape index: {}]   ;;  %s5506_s4 = inlined_call_operand.vmem [shape: f32[1,128], index: 4, kind: input, shape index: {}]   ;;  %s5507_s5 = inlined_call_operand.vmem [shape: bf16[2,16,16,128], index: 5, kind: output, shape index: {0}]   ;;  %s5508_s6 = inlined_call_operand.vmem [shape: f32[2,2,2,128], index: 6, kind: output, shape index: {1}]  }
   0x1   :  { %s4373_s23 = smov 0   ;;  %s4375_s24 = smov 0  }
   0x2   :  { %s4377_s25 = smov 0  }
   0x3 LB: > { %s26_s26 = sadd.s32 1, %s4324_s23  ;;  %s29_s27 = sadd.s32 1, %s4328_s24  ;;  %s4332_s25 = sphi %s4377_s25, %s17_s25   ;;  %s4328_s24 = sphi %s4375_s24, %s5530_s24   ;;  %s4324_s23 = sphi %s4373_s23, %s5529_s23   ;;  %s4320_s22 = sphi %s4371_s22, %s5528_s22   ;;  %s4316_s21 = sphi %s4369_s21, %s5527_s21  }
   0x4   : > { %p27_p0 = scmp.ge.s32.totalorder %s26_s26, 2  ;;  %p3472_p1 = scmp.ge.s32.totalorder %s4332_s25, 1 }
   0x5   : > { %p231_p2 = scmp.lt.s32.totalorder %s4332_s25, 5 }
   0x6   : > { %s5532_s26 = smov (%p27_p0, %s26_s26), 0  ;;  %s5534_s27 = smov (!%p27_p0, %s29_s27), %s4328_s24 }
   0x7   : > { %p232_p3 = pnand %p3472_p1, %p231_p2  ;;  %p31_p4 = scmp.ge.s32.totalorder %s5534_s27, 2 }
   0x9   : > { %s5536_s27 = smov (%p31_p4, %s5534_s27), 0  ;;  %235 = sbr.rel (%p232_p3) target bundleno = 546 (0x222), region = 40 }
   0xe   : > { %v4055_v0 = vld [vmem:[%s5505_s3 + $0x78] sm:$0xff]  ;;  %p274_p5 = scmp.lt.s32.totalorder %s4320_s22, 1  ;;  %v4054_v1 = vld [vmem:[%s5505_s3 + $0x70] sm:$0xff]  ;;  %s4029_s8 = sshll.u32 %s4316_s21, 6  ;;  %v4053_v2 = vld [vmem:[%s5505_s3 + $0x68] sm:$0xff]  ;;  %vm578_vm1 = vcmask 1040384  }
   0xf   : > { %4222 = vmatpush.bf16.msra.mxu1 %v4055_v0  ;;  %4223 = vmatpush.bf16.msra.mxu2 %v4055_v0  ;;  %s4412_s10 = sshll.u32 %s4316_s21, 3  ;;  %v4429_v3 = vld [vmem:[%s5503_s1] ss:$0 sm:$0xff]  ;;  %vm407_vm0 = vsmask.f32 256  ;;  %vm571_vm3 = vcmask 1043456  }
  0x10   : > { %s5538_s22 = smov (!%p274_p5, %s4320_s22), 1  ;;  %4224 = vmatpush.bf16.msra.mxu3 %v4055_v0  ;;  %1129 = vmatpush.bf16.msra.mxu0 %v4055_v0  ;;  %p632_p6 = scmp.gt.s32.totalorder %s4412_s10, 0  ;;  %v4437_v8 = vld [vmem:[%s5504_s2] ss:$0 sm:$0xff]  ;;  %vm408_vm2 = vsmask.f32 4368  ;;  %vm4476_vm5 = vmand %vm578_vm1, %vm407_vm0 }
  0x11   : > { %s4027_s9 = sshll.u32 %s5538_s22, 7  ;;  %s3484_s19 = sadd.s32 4294967295, %s4412_s10  ;;  %v4052_v15 = vld [vmem:[%s5505_s3 + $0x60] sm:$0xff]  ;;  %vm572_vm4 = vsmask.f32 7938  ;;  %v4051_v31 = vld [vmem:[%s5505_s3 + $0x58] sm:$0xff]  ;;  %vm4482_vm6 = vmor %vm407_vm0, %vm408_vm2 }
  0x12   : > { %s4417_s13 = scalar_lea.vmem %s5502_s0, %s4027_s9  ;;  %p634_p7 = scmp.gt.s32.totalorder %s3484_s19, 0  ;;  %v4050_v48 = vld [vmem:[%s5505_s3 + $0x50] sm:$0xff]  ;;  %v583_v61 = vld [vmem:[#allocation2 + $0x18] sm:$0xf]  ;;  %v4049_v0 = vld [vmem:[%s5505_s3 + $0x48] sm:$0xff]  ;;  %vm1347_vm13 = vcmask 1042432  }
  0x13   : > { %4225 = vmatpush.bf16.msra.mxu1 %v4054_v1  ;;  %4226 = vmatpush.bf16.msra.mxu2 %v4054_v1  ;;  %s4424_s16 = scalar_lea.vmem %s4417_s13, %s4029_s8  ;;  %vm4491_vm7 = vmand %vm571_vm3, %vm572_vm4  ;;  %vm837_vm10 = vsmask.f32 3328  ;;  %vm838_vm11 = vsmask.f32 7440  ;;  %vm1348_vm14 = vcmask 1046532   ;;  %p282_p10 = scmp.lt.s32.totalorder %s4412_s10, 15 }
  0x14   : > { %4227 = vmatpush.bf16.msra.mxu3 %v4054_v1  ;;  %1130 = vmatpush.bf16.msra.mxu0 %v4054_v1  ;;  %v4208_v4 = vld [vmem:[%s4424_s16 + $0x8] sm:$0xff]   ;;  %v4210_v5 = vld [vmem:[%s4424_s16 + $0x18] sm:$0xff]   ;;  %s5540_s19 = smov (!%p634_p7, %s3484_s19), 0  ;;  %v4441_v14 = vld [vmem:[%s4424_s16 + $0x10] sm:$0xff]   ;;  %s3477_s14 = sshll.u32 %s5538_s22, 5 }
  0x15   : > { %v4134_v6 = vunpack.c.l.bf16 %v4208_v4  ;;  %v4135_v7 = vunpack.c.h.bf16 %v4208_v4  ;;  %v4142_v9 = vunpack.c.l.bf16 %v4210_v5  ;;  %v4143_v10 = vunpack.c.h.bf16 %v4210_v5  ;;  %v4212_v11 = vld [vmem:[%s4424_s16 + $0x28] sm:$0xff]   ;;  %s4451_s7 = scalar_select %p632_p6, 1, 0  ;;  %vm4550_vm9 = vmand %vm578_vm1, %vm572_vm4 }
  0x16   : > { %v4150_v12 = vunpack.c.l.bf16 %v4212_v11  ;;  %v4151_v13 = vunpack.c.h.bf16 %v4212_v11  ;;  %s4030_s8 = sshll.u32 %s5540_s19, 3  ;;  %v4138_v21 = vunpack.c.l.bf16 %v4441_v14  ;;  %v4139_v30 = vunpack.c.h.bf16 %v4441_v14  ;;  %vm4614_vm12 = vmor %vm837_vm10, %vm838_vm11  ;;  %p292_p11 = scmp.lt.s32.totalorder %s4316_s21, 1 }
  0x17   : > { %4228 = vmatpush.bf16.msra.mxu1 %v4053_v2  ;;  %4229 = vmatpush.bf16.msra.mxu2 %v4053_v2  ;;  %v342_v16 = vmul.f32 %v4429_v3, %v4134_v6  ;;  %v343_v17 = vmul.f32 %v4429_v3, %v4135_v7  ;;  %v346_v18 = vmul.f32 %v4429_v3, %v4142_v9  ;;  %s638_s9 = scalar_lea.vmem %s4417_s13, %s4030_s8  ;;  %v650_v29 = vstv %s4451_s7  ;;  %vm4852_vm15 = vmor %vm1347_vm13, %vm1348_vm14  ;;  %s5221_s7 = sadd.s32 8, %s4412_s10 }
  0x18   : > { %4230 = vmatpush.bf16.msra.mxu3 %v4053_v2  ;;  %1131 = vmatpush.bf16.msra.mxu0 %v4053_v2  ;;  %v347_v19 = vmul.f32 %v4429_v3, %v4143_v10  ;;  %v350_v20 = vmul.f32 %v4429_v3, %v4150_v12  ;;  %v351_v25 = vmul.f32 %v4429_v3, %v4151_v13  ;;  %v4161_v28 = vld [vmem:[%s638_s9] sm:$0xff]   ;;  %v597_v13 = vld [vmem:[#allocation2 + $0x30] sm:$0xf]  ;;  %vm4515_vm8 = vcmp.eq.s32.totalorder %v650_v29, 1  ;;  %p685_p8 = scmp.lt.s32.totalorder %s5221_s7, 15  ;;  %p684_p9 = scmp.lt.s32.totalorder %s5221_s7, 16 }
  0x19   : > { %v361_v22 = vadd.f32 %v4437_v8, %v342_v16  ;;  %v362_v23 = vadd.f32 %v4437_v8, %v343_v17  ;;  %v365_v24 = vadd.f32 %v4437_v8, %v346_v18  ;;  %v4162_v38 = vunpack.c.l.bf16 %v4161_v28  ;;  %v587_v2 = vld [vmem:[#allocation2 + $0x20] sm:$0x1]  ;;  %s5542_s10 = smov (!%p282_p10, %s4412_s10), 15  ;;  %s5544_s21 = smov (!%p292_p11, %s4316_s21), 1 }
  0x1a   : > { %v366_v26 = vadd.f32 %v4437_v8, %v347_v19  ;;  %v369_v27 = vadd.f32 %v4437_v8, %v350_v20  ;;  %v370_v35 = vadd.f32 %v4437_v8, %v351_v25  ;;  %v4163_v39 = vunpack.c.h.bf16 %v4161_v28  ;;  %v4048_v20 = vld [vmem:[%s5505_s3 + $0x40] sm:$0xff]  ;;  %s5241_s9 = scalar_select %p685_p8, %s5221_s7, 15 }
  0x1b   : > { %4231 = vmatpush.bf16.msra.mxu1 %v4052_v15  ;;  %4232 = vmatpush.bf16.msra.mxu2 %v4052_v15  ;;  %v377_v32 = vmax.f32 %v361_v22, 0.0  ;;  %v378_v33 = vmax.f32 %v362_v23, 0.0  ;;  %v381_v34 = vmax.f32 %v365_v24, 0.0  ;;  %v643_v46 = vmul.f32 %v4429_v3, %v4162_v38  ;;  %s3479_s29 = sshll.u32 %s5538_s22, 1 }
  0x1c   : > { %4233 = vmatpush.bf16.msra.mxu3 %v4052_v15  ;;  %1132 = vmatpush.bf16.msra.mxu0 %v4052_v15  ;;  %v382_v36 = vmax.f32 %v366_v26, 0.0  ;;  %v385_v37 = vmax.f32 %v369_v27, 0.0  ;;  %v386_v43 = vmax.f32 %v370_v35, 0.0  ;;  %v644_v47 = vmul.f32 %v4429_v3, %v4163_v39  ;;  %v601_v15 = vld [vmem:[#allocation2 + $0x38] sm:$0x1]  ;;  %s4031_s11 = sshll.u32 %s5241_s9, 3  ;;  %s295_s30 = sadd.s32 %s3479_s29, %s5544_s21 }
  0x1d   : > { %v393_v40 = vpack.c.bf16 %v377_v32, %v377_v32  ;;  %v394_v41 = vpack.c.bf16 %v378_v33, %v378_v33  ;;  %v397_v42 = vpack.c.bf16 %v381_v34, %v381_v34  ;;  %v645_v7 = vadd.f32 %v4437_v8, %v643_v46  ;;  %v611_v32 = vld [vmem:[#allocation2 + $0x48] sm:$0xf]  ;;  %v4211_v33 = vld [vmem:[%s4424_s16 + $0x20] sm:$0xff]   ;;  %s689_s12 = scalar_lea.vmem %s4417_s13, %s4031_s11  ;;  %s3480_s8 = sshll.u32 %s295_s30, 1 }
  0x1e   : > { %v398_v44 = vpack.c.bf16 %v382_v36, %v382_v36  ;;  %v401_v45 = vpack.c.bf16 %v385_v37, %v385_v37  ;;  %v402_v62 = vpack.c.bf16 %v386_v43, %v386_v43  ;;  %v615_v37 = vld [vmem:[#allocation2 + $0x50] sm:$0x1]  ;;  %v646_v38 = vadd.f32 %v4437_v8, %v644_v47  ;;  %s5288_s13 = scalar_select %p684_p9, 1, 0 }
  0x1f   : > { %4234 = vmatpush.bf16.msra.mxu1 %v4051_v31  ;;  %4235 = vmatpush.bf16.msra.mxu2 %v4051_v31  ;;  %v428_v49 = vshrl.u32 %v393_v40, 16  ;;  %v431_v50 = vshll.u32 %v393_v40, 16  ;;  %v436_v51 = vshrl.u32 %v394_v41, 16  ;;  %v439_v52 = vshll.u32 %v394_v41, 16  ;;  %s297_s11 = scalar_lea.vmem %s5508_s6, %s3480_s8 }
  0x20   : > { %4236 = vmatpush.bf16.msra.mxu3 %v4051_v31  ;;  %1133 = vmatpush.bf16.msra.mxu0 %v4051_v31  ;;  %v462_v54 = vshrl.u32 %v397_v42, 16  ;;  %v465_v55 = vshll.u32 %v397_v42, 16  ;;  %v470_v56 = vshrl.u32 %v398_v44, 16  ;;  %v473_v57 = vshll.u32 %v398_v44, 16  ;;  %v4063_v44 = vld [vmem:[%s5505_s3 + $0xb8] sm:$0xff] }
  0x21   : > { %v430_v59 = vrot.slane %v428_v49, 7  ;;  %v438_v60 = vrot.slane %v436_v51, 7  ;;  %v496_v63 = vshrl.u32 %v401_v45, 16  ;;  %v499_v6 = vshll.u32 %v401_v45, 16  ;;  %v4047_v45 = vld [vmem:[%s5505_s3 + $0x38] sm:$0xff] }
  0x22   : > { %v464_v4 = vrot.slane %v462_v54, 7  ;;  %v472_v5 = vrot.slane %v470_v56, 7  ;;  %v504_v31 = vshrl.u32 %v402_v62, 16  ;;  %v507_v36 = vshll.u32 %v402_v62, 16  ;;  %v4079_v49 = vld [vmem:[%s5505_s3 + $0xf8] sm:$0xff]  ;;  %v4213_v54 = vld [vmem:[%s4424_s16 + $0x30] sm:$0xff]  }
  0x23   : > { %4237 = vmatpush.bf16.msra.mxu1 %v4050_v48  ;;  %4238 = vmatpush.bf16.msra.mxu2 %v4050_v48  ;;  %v433_v9 = vor.u32 %v431_v50, %v430_v59  ;;  %v434_v10 = vrot.slane %v430_v59, 4  ;;  %v441_v11 = vor.u32 %v439_v52, %v438_v60  ;;  %v443_v12 = vrot.slane %v438_v60, 4 }
  0x24   : > { %4239 = vmatpush.bf16.msra.mxu3 %v4050_v48  ;;  %1134 = vmatpush.bf16.msra.mxu0 %v4050_v48  ;;  %v467_v16 = vor.u32 %v465_v55, %v464_v4  ;;  %v468_v17 = vrot.slane %v464_v4, 4  ;;  %v475_v18 = vor.u32 %v473_v57, %v472_v5  ;;  %v477_v19 = vrot.slane %v472_v5, 4 }
  0x25   : > { %v442_v22 = vsel %vm4482_vm6, %v434_v10, %v441_v11  ;;  %v584_v23 = vsel %vm4491_vm7, %v433_v9, %v583_v61  ;;  %v588_v24 = vsel %vm4476_vm5, %v443_v12, %v587_v2  ;;  %v498_v25 = vrot.slane %v496_v63, 7  ;;  %v676_v12 = vld [vmem:[#allocation2] sm:$0xf] }
  0x26   : > { %585 = vst [vmem:[#allocation2 + $0x18] sm:$0xf] %v584_v23  ;;  %v476_v26 = vsel %vm4482_vm6, %v468_v17, %v475_v18  ;;  %v598_v27 = vsel %vm4491_vm7, %v467_v16, %v597_v13  ;;  %v602_v28 = vsel %vm4476_vm5, %v477_v19, %v601_v15  ;;  %v506_v39 = vrot.slane %v504_v31, 7 }
  0x27   : > { %4240 = vmatpush.bf16.msra.mxu1 %v4049_v0  ;;  %4241 = vmatpush.bf16.msra.mxu2 %v4049_v0  ;;  %586 = vst [vmem:[#allocation2 + $0x1c] sm:$0xf] %v442_v22  ;;  %v501_v34 = vor.u32 %v499_v6, %v498_v25  ;;  %v502_v35 = vrot.slane %v498_v25, 4  ;;  %v647_v40 = vmax.f32 %v645_v7, 0.0  ;;  %v344_v42 = vmul.f32 %v4429_v3, %v4138_v21 }
  0x28   : > { %4242 = vmatpush.bf16.msra.mxu3 %v4049_v0  ;;  %1135 = vmatpush.bf16.msra.mxu0 %v4049_v0  ;;  %589 = vst [vmem:[#allocation2 + $0x20] sm:$0x1] %v588_v24  ;;  %v648_v29 = vmax.f32 %v646_v38, 0.0  ;;  %v345_v46 = vmul.f32 %v4429_v3, %v4139_v30  ;;  %v4146_v47 = vunpack.c.l.bf16 %v4211_v33  ;;  %v509_v21 = vor.u32 %v507_v36, %v506_v39 }
  0x29   : > { %599 = vst [vmem:[#allocation2 + $0x30] sm:$0xf] %v598_v27  ;;  %v612_v43 = vsel %vm4491_vm7, %v501_v34, %v611_v32  ;;  %v511_v48 = vrot.slane %v506_v39, 4  ;;  %v652_v50 = vsel %vm4515_vm8, %v647_v40, 0.0  ;;  %v4541_v30 = vadd.f32 %v4437_v8, %v344_v42  ;;  %v680_v39 = vld [vmem:[#allocation2 + $0x8] sm:$0x1] }
  0x2a   : > { %600 = vst [vmem:[#allocation2 + $0x34] sm:$0xf] %v476_v26  ;;  %v653_v51 = vsel %vm4515_vm8, %v648_v29, 0.0  ;;  %v654_v14 = vpack.c.bf16 %v652_v50, %v652_v50  ;;  %v4147_v52 = vunpack.c.h.bf16 %v4211_v33  ;;  %v510_v55 = vsel %vm4482_vm6, %v502_v35, %v509_v21 }
  0x2b   : > { %4243 = vmatpush.bf16.msra.mxu1 %v4048_v20  ;;  %4244 = vmatpush.bf16.msra.mxu2 %v4048_v20  ;;  %603 = vst [vmem:[#allocation2 + $0x38] sm:$0x1] %v602_v28  ;;  %v616_v56 = vsel %vm4476_vm5, %v511_v48, %v615_v37  ;;  %v655_v57 = vpack.c.bf16 %v653_v51, %v653_v51  ;;  %v4154_v7 = vunpack.c.l.bf16 %v4213_v54  ;;  %v4155_v15 = vunpack.c.h.bf16 %v4213_v54 }
  0x2c   : > { %4245 = vmatpush.bf16.msra.mxu3 %v4048_v20  ;;  %1136 = vmatpush.bf16.msra.mxu0 %v4048_v20  ;;  %613 = vst [vmem:[#allocation2 + $0x48] sm:$0xf] %v612_v43  ;;  %v657_v61 = vshrl.u32 %v654_v14, 16  ;;  %v660_v62 = vshll.u32 %v654_v14, 16  ;;  %v4555_v63 = vadd.f32 %v4437_v8, %v345_v46  ;;  %v348_v0 = vmul.f32 %v4429_v3, %v4146_v47 }
  0x2d   : > { %v741_v59 = vld [vmem:[#allocation2 + $0x18] sm:$0x1]  ;;  %614 = vst [vmem:[#allocation2 + $0x4c] sm:$0xf] %v510_v55  ;;  %v665_v5 = vshrl.u32 %v655_v57, 16  ;;  %v349_v6 = vmul.f32 %v4429_v3, %v4147_v52  ;;  %v668_v20 = vshll.u32 %v655_v57, 16  ;;  %v352_v33 = vmul.f32 %v4429_v3, %v4154_v7 }
  0x2e   : > { %v742_v2 = vsel %vm4476_vm5, 0, %v741_v59  ;;  %v4560_v4 = vld [vmem:[#allocation2 + $0x1c] sm:$0xf]  ;;  %617 = vst [vmem:[#allocation2 + $0x50] sm:$0x1] %v616_v56  ;;  %v4566_v13 = vadd.f32 %v4437_v8, %v348_v0  ;;  %v659_v18 = vrot.slane %v657_v61, 7 }
  0x2f   : > { %1503 = vmatpush.bf16.msrb.mxu2 %v4063_v44  ;;  %1274 = vmatpush.bf16.msrb.mxu1 %v4047_v45  ;;  %743 = vst [vmem:[#allocation2 + $0x18] sm:$0x1] %v742_v2  ;;  %v772_v9 = vld [vmem:[#allocation2 + $0x20] sm:$0x1]  ;;  %v898_v10 = vshll.u32 %v4560_v4, 16  ;;  %v902_v11 = vshrl.u32 %v4560_v4, 16  ;;  %v4576_v32 = vadd.f32 %v4437_v8, %v349_v6  ;;  %v353_v44 = vmul.f32 %v4429_v3, %v4155_v15 }
  0x30   : > { %1697 = vmatpush.bf16.msrb.mxu3 %v4079_v49  ;;  %v773_v16 = vsel %vm4550_vm9, 0, %v772_v9  ;;  %v747_v17 = vld [vmem:[#allocation2 + $0x30] sm:$0x1]  ;;  %v667_v19 = vrot.slane %v665_v5, 7  ;;  %v379_v25 = vmax.f32 %v4541_v30, 0.0  ;;  %v662_v28 = vor.u32 %v660_v62, %v659_v18  ;;  %v4594_v30 = vld [vmem:[%s4424_s16] sm:$0xff]  }
  0x31   : > { %774 = vst [vmem:[#allocation2 + $0x20] sm:$0x1] %v773_v16  ;;  %v4570_v22 = vrot.slane %v898_v10, 5  ;;  %v904_v23 = vrot.slane %v902_v11, 4  ;;  %v748_v24 = vsel %vm4476_vm5, 0, %v747_v17  ;;  %v663_v42 = vrot.slane %v659_v18, 4 }
  0x32   : > { %749 = vst [vmem:[#allocation2 + $0x30] sm:$0x1] %v748_v24  ;;  %v778_v26 = vld [vmem:[#allocation2 + $0x38] sm:$0x1]  ;;  %v806_v27 = vld [vmem:[#allocation2 + $0x34] sm:$0xf]  ;;  %v670_v31 = vor.u32 %v668_v20, %v667_v19  ;;  %v677_v43 = vsel %vm4491_vm7, %v662_v28, %v676_v12  ;;  %v4591_v14 = vpack.c.bf16 %v379_v25, %v379_v25  ;;  %v4609_v2 = vadd.f32 %v4437_v8, %v352_v33 }
  0x33   : > { %v905_v34 = vor.u32 %v904_v23, %v4570_v22  ;;  %v779_v35 = vsel %vm4550_vm9, 0, %v778_v26  ;;  %v946_v36 = vshll.u32 %v806_v27, 16  ;;  %v950_v37 = vshrl.u32 %v806_v27, 16  ;;  %v753_v38 = vld [vmem:[#allocation2 + $0x48] sm:$0x1]  ;;  %v4087_v57 = vld [vmem:[%s5505_s3 + $0x138] sm:$0xff] }
  0x34   : > { %780 = vst [vmem:[#allocation2 + $0x38] sm:$0x1] %v779_v35  ;;  %v754_v40 = vsel %vm4476_vm5, 0, %v753_v38  ;;  %v810_v41 = vld [vmem:[#allocation2 + $0x4c] sm:$0xf]  ;;  %v671_v50 = vsel %vm4482_vm6, %v663_v42, %v670_v31  ;;  %v672_v51 = vrot.slane %v667_v19, 4  ;;  %2075 = vmatpush.bf16.msrb.mxu0 %v4087_v57  ;;  %v4626_v19 = vadd.f32 %v4437_v8, %v353_v44 }
  0x35   : > { %v906_v45 = vrot.slane %v905_v34, 4  ;;  %v4587_v29 = vrot.slane %v946_v36, 5  ;;  %v952_v46 = vrot.slane %v950_v37, 4  ;;  %755 = vst [vmem:[#allocation2 + $0x48] sm:$0x1] %v754_v40  ;;  %v994_v47 = vshll.u32 %v810_v41, 16 }
  0x36   : > { %v801_v21 = vld [vmem:[#allocation2 + $0x18] sm:$0xf]  ;;  %v784_v48 = vld [vmem:[#allocation2 + $0x50] sm:$0x1]  ;;  %v998_v49 = vshrl.u32 %v810_v41, 16  ;;  %v681_v0 = vsel %vm4476_vm5, %v672_v51, %v680_v39  ;;  %v4130_v26 = vunpack.c.l.bf16 %v4594_v30  ;;  %v4131_v27 = vunpack.c.h.bf16 %v4594_v30  ;;  %v4061_v41 = vld [vmem:[%s5505_s3 + $0xa8] sm:$0xff] }
  0x37   : > { %v889_v52 = vshrl.u32 %v801_v21, 16  ;;  %v892_v54 = vshll.u32 %v801_v21, 16  ;;  %v953_v55 = vor.u32 %v952_v46, %v4587_v29  ;;  %v785_v56 = vsel %vm4550_vm9, 0, %v784_v48  ;;  %678 = vst [vmem:[#allocation2] sm:$0xf] %v677_v43  ;;  %v4062_v17 = vld [vmem:[%s5505_s3 + $0xb0] sm:$0xff] }
  0x38   : > { %v4602_v59 = vld [vmem:[#allocation2 + $0x20] sm:$0x1]  ;;  %786 = vst [vmem:[#allocation2 + $0x50] sm:$0x1] %v785_v56  ;;  %v4604_v61 = vrot.slane %v994_v47, 5  ;;  %v1000_v62 = vrot.slane %v998_v49, 4  ;;  %1504 = vmatpush.bf16.msrb.mxu2 %v4062_v17 }
  0x39   : > { %v891_v5 = vrot.slane %v889_v52, 4  ;;  %v894_v6 = vrot.slane %v892_v54, 5  ;;  %v908_v7 = vshll.u32 %v4602_v59, 16  ;;  %v805_v9 = vld [vmem:[#allocation2 + $0x30] sm:$0xf]  ;;  %v954_v10 = vrot.slane %v953_v55, 4 }
  0x3a   : > { %v937_v12 = vshrl.u32 %v805_v9, 16  ;;  %v940_v15 = vshll.u32 %v805_v9, 16  ;;  %v1001_v16 = vor.u32 %v1000_v62, %v4604_v61  ;;  %679 = vst [vmem:[#allocation2 + $0x4] sm:$0xf] %v671_v50  ;;  %v4046_v18 = vld [vmem:[%s5505_s3 + $0x30] sm:$0xff]  ;;  %v4045_v42 = vld [vmem:[%s5505_s3 + $0x28] sm:$0xff] }
  0x3b   : > { %v895_v20 = vor.u32 %v894_v6, %v891_v5  ;;  %v910_v23 = vrot.slane %v908_v7, 5  ;;  %v4628_v24 = vld [vmem:[#allocation2 + $0x38] sm:$0x1]  ;;  %682 = vst [vmem:[#allocation2 + $0x8] sm:$0x1] %v681_v0  ;;  %v4078_v25 = vld [vmem:[%s5505_s3 + $0xf0] sm:$0xff]  ;;  %1275 = vmatpush.bf16.msrb.mxu1 %v4046_v18 }
  0x3c   : > { %v939_v28 = vrot.slane %v937_v12, 4  ;;  %v942_v31 = vrot.slane %v940_v15, 5  ;;  %v956_v33 = vshll.u32 %v4628_v24, 16  ;;  %v809_v34 = vld [vmem:[#allocation2 + $0x48] sm:$0xf]  ;;  %v1002_v35 = vrot.slane %v1001_v16, 4  ;;  %1698 = vmatpush.bf16.msrb.mxu3 %v4078_v25  ;;  %1505 = vmatpush.bf16.msrb.mxu2 %v4061_v41 }
  0x3d   : > { %v896_v36 = vrot.slane %v895_v20, 4  ;;  %v911_v37 = vsel %vm4614_vm12, %v906_v45, %v910_v23  ;;  %v985_v38 = vshrl.u32 %v809_v34, 16  ;;  %v988_v39 = vshll.u32 %v809_v34, 16  ;;  %v4086_v40 = vld [vmem:[%s5505_s3 + $0x130] sm:$0xff]  ;;  %v4077_v45 = vld [vmem:[%s5505_s3 + $0xe8] sm:$0xff]  ;;  %v4044_v6 = vld [vmem:[%s5505_s3 + $0x20] sm:$0xff] }
  0x3e   : > { %v1054_v43 = vunpack.c.l.b16 %v911_v37  ;;  %v943_v44 = vor.u32 %v942_v31, %v939_v28  ;;  %v958_v46 = vrot.slane %v956_v33, 5  ;;  %v735_v47 = vld [vmem:[#allocation2] sm:$0x1]  ;;  %v380_v21 = vmax.f32 %v4555_v63, 0.0  ;;  %2076 = vmatpush.bf16.msrb.mxu0 %v4086_v40  ;;  %v4085_v54 = vld [vmem:[%s5505_s3 + $0x128] sm:$0xff] }
  0x3f   : > { %v901_v48 = vsel %vm4614_vm12, %v896_v36, %v4570_v22  ;;  %v835_v49 = vld [vmem:[#allocation2 + $0x50] sm:$0x1]  ;;  %v987_v50 = vrot.slane %v985_v38, 4  ;;  %v990_v51 = vrot.slane %v988_v39, 5  ;;  %v736_v52 = vsel %vm4476_vm5, 0, %v735_v47  ;;  %1276 = vmatpush.bf16.msrb.mxu1 %v4045_v42  ;;  %v4060_v22 = vld [vmem:[%s5505_s3 + $0xa0] sm:$0xff] }
  0x40   : > { %v1053_v55 = vunpack.c.l.b16 %v901_v48  ;;  %v944_v56 = vrot.slane %v943_v44, 4  ;;  %v959_v63 = vsel %vm4614_vm12, %v954_v10, %v958_v46  ;;  %v1004_v57 = vshll.u32 %v835_v49, 16  ;;  %737 = vst [vmem:[#allocation2] sm:$0x1] %v736_v52  ;;  %1699 = vmatpush.bf16.msrb.mxu3 %v4077_v45  ;;  %v4076_v7 = vld [vmem:[%s5505_s3 + $0xe0] sm:$0xff]  ;;  %1506 = vmatpush.bf16.msrb.mxu2 %v4060_v22 }
  0x41   : > { %v1058_v62 = vunpack.c.l.b16 %v959_v63  ;;  %v991_v0 = vor.u32 %v990_v51, %v987_v50  ;;  %v4664_v5 = vld [vmem:[#allocation2 + $0x4] sm:$0xf]  ;;  %v396_v9 = vpack.c.bf16 %v380_v21, %v380_v21  ;;  %v445_v10 = vshrl.u32 %v4591_v14, 16 }
  0x42   : > { %v1067_v12 = vpack.c.b16 %v1054_v43, %v1053_v55  ;;  %v949_v15 = vsel %vm4614_vm12, %v944_v56, %v4587_v29  ;;  %v1006_v16 = vrot.slane %v1004_v57, 5  ;;  %v766_v17 = vld [vmem:[#allocation2 + $0x8] sm:$0x1]  ;;  %v850_v18 = vshll.u32 %v4664_v5, 16  ;;  %2077 = vmatpush.bf16.msrb.mxu0 %v4085_v54  ;;  %v4084_v31 = vld [vmem:[%s5505_s3 + $0x120] sm:$0xff] }
  0x43   : > { %v1057_v20 = vunpack.c.l.b16 %v949_v15  ;;  %v992_v23 = vrot.slane %v991_v0, 4  ;;  %v767_v25 = vsel %vm4550_vm9, 0, %v766_v17  ;;  %v854_v28 = vshrl.u32 %v4664_v5, 16  ;;  %1277 = vmatpush.bf16.msrb.mxu1 %v4044_v6  ;;  %v590_v44 = vld [vmem:[#allocation2 + $0x24] sm:$0xf] }
  0x44   : > { %1147 = vmatmul.bf16.vlgmr.msra.gmra.mxu1 %v1067_v12  ;;  %v1007_v29 = vsel %vm4614_vm12, %v1002_v35, %v1006_v16  ;;  %768 = vst [vmem:[#allocation2 + $0x8] sm:$0x1] %v767_v25  ;;  %v4685_v33 = vrot.slane %v850_v18, 5  ;;  %v447_v34 = vrot.slane %v445_v10, 7  ;;  %v448_v36 = vshll.u32 %v4591_v14, 16  ;;  %1700 = vmatpush.bf16.msrb.mxu3 %v4076_v7 }
  0x45   : > { %v1069_v37 = vpack.c.b16 %v1058_v62, %v1057_v20  ;;  %v997_v38 = vsel %vm4614_vm12, %v992_v23, %v4604_v61  ;;  %v1062_v39 = vunpack.c.l.b16 %v1007_v29  ;;  %v856_v40 = vrot.slane %v854_v28, 4  ;;  %v594_v54 = vld [vmem:[#allocation2 + $0x2c] sm:$0x1]  ;;  %v604_v28 = vld [vmem:[#allocation2 + $0x3c] sm:$0xf] }
  0x46   : > { %v1061_v41 = vunpack.c.l.b16 %v997_v38  ;;  %v450_v42 = vor.u32 %v448_v36, %v447_v34  ;;  %v451_v43 = vrot.slane %v447_v34, 4  ;;  %v453_v35 = vshrl.u32 %v396_v9, 16  ;;  %2078 = vmatpush.bf16.msrb.mxu0 %v4084_v31 }
  0x47   : > { %1157 = vmatmul.bf16.vlgmr.msra.gmra.mxu2 %v1069_v37  ;;  %v797_v46 = vld [vmem:[#allocation2] sm:$0xf]  ;;  %v857_v47 = vor.u32 %v856_v40, %v4685_v33  ;;  %v456_v14 = vshll.u32 %v396_v9, 16  ;;  %v383_v45 = vmax.f32 %v4566_v13, 0.0  ;;  %v384_v21 = vmax.f32 %v4576_v32, 0.0 }
  0x48   : > { %v1071_v61 = vpack.c.b16 %v1062_v39, %v1061_v41  ;;  %v841_v48 = vshrl.u32 %v797_v46, 16  ;;  %v844_v49 = vshll.u32 %v797_v46, 16  ;;  %v455_v50 = vrot.slane %v453_v35, 7  ;;  %v608_v39 = vld [vmem:[#allocation2 + $0x44] sm:$0x1] }
  0x49   : > { %v858_v51 = vrot.slane %v857_v47, 4  ;;  %v591_v52 = vsel %vm4491_vm7, %v450_v42, %v590_v44  ;;  %v399_v55 = vpack.c.bf16 %v383_v45, %v383_v45  ;;  %v400_v56 = vpack.c.bf16 %v384_v21, %v384_v21 }
  0x4a   : > { %1167 = vmatmul.bf16.vlgmr.msra.gmra.mxu3 %v1071_v61  ;;  %v843_v63 = vrot.slane %v841_v48, 4  ;;  %v846_v57 = vrot.slane %v844_v49, 5  ;;  %v458_v22 = vor.u32 %v456_v14, %v455_v50  ;;  %v460_v62 = vrot.slane %v455_v50, 4  ;;  %592 = vst [vmem:[#allocation2 + $0x24] sm:$0xf] %v591_v52 }
  0x4b   : > { %v4696_v13 = vld [vmem:[#allocation2 + $0x8] sm:$0x1]  ;;  %v479_v32 = vshrl.u32 %v399_v55, 16  ;;  %v482_v0 = vshll.u32 %v399_v55, 16  ;;  %v487_v6 = vshrl.u32 %v400_v56, 16  ;;  %v490_v7 = vshll.u32 %v400_v56, 16 }
  0x4c   : > { %v847_v9 = vor.u32 %v846_v57, %v843_v63  ;;  %v860_v10 = vshll.u32 %v4696_v13, 16  ;;  %v459_v12 = vsel %vm4482_vm6, %v451_v43, %v458_v22  ;;  %v595_v15 = vsel %vm4476_vm5, %v460_v62, %v594_v54  ;;  %v618_v14 = vld [vmem:[#allocation2 + $0x54] sm:$0xf]  ;;  %v622_v54 = vld [vmem:[#allocation2 + $0x5c] sm:$0x1] }
  0x4d   : > { %593 = vst [vmem:[#allocation2 + $0x28] sm:$0xf] %v459_v12  ;;  %v481_v16 = vrot.slane %v479_v32, 7  ;;  %v489_v17 = vrot.slane %v487_v6, 7  ;;  %v387_v18 = vmax.f32 %v4609_v2, 0.0  ;;  %v388_v20 = vmax.f32 %v4626_v19, 0.0 }
  0x4e   : > { %v848_v23 = vrot.slane %v847_v9, 4  ;;  %v862_v25 = vrot.slane %v860_v10, 5  ;;  %596 = vst [vmem:[#allocation2 + $0x2c] sm:$0x1] %v595_v15  ;;  %v340_v31 = vmul.f32 %v4429_v3, %v4130_v26  ;;  %v341_v29 = vmul.f32 %v4429_v3, %v4131_v27  ;;  %v4059_v22 = vld [vmem:[%s5505_s3 + $0x98] sm:$0xff] }
  0x4f   : > { %v484_v34 = vor.u32 %v482_v0, %v481_v16  ;;  %v485_v36 = vrot.slane %v481_v16, 4  ;;  %v492_v37 = vor.u32 %v490_v7, %v489_v17  ;;  %v494_v38 = vrot.slane %v489_v17, 4  ;;  %v4075_v62 = vld [vmem:[%s5505_s3 + $0xd8] sm:$0xff]  ;;  %1507 = vmatpush.bf16.msrb.mxu2 %v4059_v22 }
  0x50   : > { %v853_v2 = vsel %vm4614_vm12, %v848_v23, %v4685_v33  ;;  %v863_v19 = vsel %vm4614_vm12, %v858_v51, %v862_v25  ;;  %v403_v40 = vpack.c.bf16 %v387_v18, %v387_v18  ;;  %v404_v41 = vpack.c.bf16 %v388_v20, %v388_v20  ;;  %1701 = vmatpush.bf16.msrb.mxu3 %v4075_v62 }
  0x51   : > { %v1049_v42 = vunpack.c.l.b16 %v853_v2  ;;  %v1050_v26 = vunpack.c.l.b16 %v863_v19  ;;  %v744_v43 = vld [vmem:[#allocation2 + $0x24] sm:$0x1]  ;;  %v493_v3 = vsel %vm4482_vm6, %v485_v36, %v492_v37  ;;  %v605_v30 = vsel %vm4491_vm7, %v484_v34, %v604_v28 }
  0x52   : > { %v745_v27 = vsel %vm4476_vm5, 0, %v744_v43  ;;  %606 = vst [vmem:[#allocation2 + $0x3c] sm:$0xf] %v605_v30  ;;  %v609_v33 = vsel %vm4476_vm5, %v494_v38, %v608_v39  ;;  %v513_v35 = vshrl.u32 %v403_v40, 16  ;;  %v516_v44 = vshll.u32 %v403_v40, 16 }
  0x53   : > { %v1065_v46 = vpack.c.b16 %v1050_v26, %v1049_v42  ;;  %746 = vst [vmem:[#allocation2 + $0x24] sm:$0x1] %v745_v27  ;;  %v521_v47 = vshrl.u32 %v404_v41, 16  ;;  %v359_v45 = vadd.f32 %v4437_v8, %v340_v31  ;;  %v524_v48 = vshll.u32 %v404_v41, 16 }
  0x54   : > { %v4725_v21 = vld [vmem:[#allocation2 + $0x28] sm:$0xf]  ;;  %607 = vst [vmem:[#allocation2 + $0x40] sm:$0xf] %v493_v3  ;;  %v515_v61 = vrot.slane %v513_v35, 7  ;;  %v360_v49 = vadd.f32 %v4437_v8, %v341_v29  ;;  %v4043_v8 = vld [vmem:[%s5505_s3 + $0x18] sm:$0xff] }
  0x55   : > { %1137 = vmatmul.bf16.vlgmr.msra.gmra.mxu0 %v1065_v46  ;;  %v775_v50 = vld [vmem:[#allocation2 + $0x2c] sm:$0x1]  ;;  %v922_v51 = vshll.u32 %v4725_v21, 16  ;;  %v926_v52 = vshrl.u32 %v4725_v21, 16  ;;  %610 = vst [vmem:[#allocation2 + $0x44] sm:$0x1] %v609_v33  ;;  %1278 = vmatpush.bf16.msrb.mxu1 %v4043_v8 }
  0x56   : > { %v776_v55 = vsel %vm4550_vm9, 0, %v775_v50  ;;  %v518_v56 = vor.u32 %v516_v44, %v515_v61  ;;  %v519_v63 = vrot.slane %v515_v61, 4  ;;  %v523_v57 = vrot.slane %v521_v47, 7 }
  0x57   : > { %777 = vst [vmem:[#allocation2 + $0x2c] sm:$0x1] %v776_v55  ;;  %v924_v32 = vrot.slane %v922_v51, 5  ;;  %v928_v0 = vrot.slane %v926_v52, 4  ;;  %v375_v6 = vmax.f32 %v359_v45, 0.0  ;;  %v376_v12 = vmax.f32 %v360_v49, 0.0 }
  0x58   : > { %v526_v7 = vor.u32 %v524_v48, %v523_v57  ;;  %v528_v9 = vrot.slane %v523_v57, 4  ;;  %v619_v10 = vsel %vm4491_vm7, %v518_v56, %v618_v14  ;;  %v574_v57 = vld [vmem:[#allocation2 + $0xc] sm:$0xf] }
  0x59   : > { %v929_v15 = vor.u32 %v928_v0, %v924_v32  ;;  %v750_v16 = vld [vmem:[#allocation2 + $0x3c] sm:$0x1]  ;;  %620 = vst [vmem:[#allocation2 + $0x54] sm:$0xf] %v619_v10  ;;  %v391_v17 = vpack.c.bf16 %v375_v6, %v375_v6  ;;  %v392_v38 = vpack.c.bf16 %v376_v12, %v376_v12 }
  0x5a   : > { %v803_v18 = vld [vmem:[#allocation2 + $0x24] sm:$0xf]  ;;  %v751_v20 = vsel %vm4476_vm5, 0, %v750_v16  ;;  %v527_v23 = vsel %vm4482_vm6, %v519_v63, %v526_v7  ;;  %v623_v25 = vsel %vm4476_vm5, %v528_v9, %v622_v54  ;;  %v580_v7 = vld [vmem:[#allocation2 + $0x14] sm:$0x1] }
  0x5b   : > { %v913_v28 = vshrl.u32 %v803_v18, 16  ;;  %v916_v31 = vshll.u32 %v803_v18, 16  ;;  %v930_v29 = vrot.slane %v929_v15, 4  ;;  %752 = vst [vmem:[#allocation2 + $0x3c] sm:$0x1] %v751_v20  ;;  %v411_v34 = vshrl.u32 %v391_v17, 16 }
  0x5c   : > { %v781_v36 = vld [vmem:[#allocation2 + $0x44] sm:$0x1]  ;;  %v4749_v37 = vld [vmem:[#allocation2 + $0x40] sm:$0xf]  ;;  %621 = vst [vmem:[#allocation2 + $0x58] sm:$0xf] %v527_v23 }
  0x5d   : > { %v915_v39 = vrot.slane %v913_v28, 4  ;;  %v918_v2 = vrot.slane %v916_v31, 5  ;;  %v782_v19 = vsel %vm4550_vm9, 0, %v781_v36  ;;  %v970_v40 = vshll.u32 %v4749_v37, 16  ;;  %624 = vst [vmem:[#allocation2 + $0x5c] sm:$0x1] %v623_v25 }
  0x5e   : > { %v4754_v41 = vld [vmem:[#allocation2 + $0x2c] sm:$0x1]  ;;  %783 = vst [vmem:[#allocation2 + $0x44] sm:$0x1] %v782_v19  ;;  %v974_v42 = vshrl.u32 %v4749_v37, 16  ;;  %v413_v26 = vrot.slane %v411_v34, 7 }
  0x5f   : > { %v919_v43 = vor.u32 %v918_v2, %v915_v39  ;;  %v932_v3 = vshll.u32 %v4754_v41, 16  ;;  %v4758_v30 = vrot.slane %v970_v40, 5  ;;  %v414_v27 = vshll.u32 %v391_v17, 16  ;;  %v4083_v23 = vld [vmem:[%s5505_s3 + $0x118] sm:$0xff]  ;;  %v4058_v25 = vld [vmem:[%s5505_s3 + $0x90] sm:$0xff]  ;;  %v4057_v40 = vld [vmem:[%s5505_s3 + $0x88] sm:$0xff] }
  0x60   : > { %v976_v33 = vrot.slane %v974_v42, 4  ;;  %v756_v35 = vld [vmem:[#allocation2 + $0x54] sm:$0x1]  ;;  %v419_v44 = vshrl.u32 %v392_v38, 16  ;;  %v417_v45 = vrot.slane %v413_v26, 4  ;;  %v422_v51 = vshll.u32 %v392_v38, 16  ;;  %2079 = vmatpush.bf16.msrb.mxu0 %v4083_v23  ;;  %1508 = vmatpush.bf16.msrb.mxu2 %v4058_v25 }
  0x61   : > { %v920_v46 = vrot.slane %v919_v43, 4  ;;  %v934_v47 = vrot.slane %v932_v3, 5  ;;  %v757_v14 = vsel %vm4476_vm5, 0, %v756_v35  ;;  %v416_v49 = vor.u32 %v414_v27, %v413_v26  ;;  %v4042_v36 = vld [vmem:[%s5505_s3 + $0x10] sm:$0xff]  ;;  %v4041_v3 = vld [vmem:[%s5505_s3 + $0x8] sm:$0xff] }
  0x62   : > { %v807_v61 = vld [vmem:[#allocation2 + $0x3c] sm:$0xf]  ;;  %v977_v48 = vor.u32 %v976_v33, %v4758_v30  ;;  %758 = vst [vmem:[#allocation2 + $0x54] sm:$0x1] %v757_v14  ;;  %v421_v50 = vrot.slane %v419_v44, 7  ;;  %v4074_v38 = vld [vmem:[%s5505_s3 + $0xd0] sm:$0xff]  ;;  %1279 = vmatpush.bf16.msrb.mxu1 %v4042_v36 }
  0x63   : > { %v925_v52 = vsel %vm4614_vm12, %v920_v46, %v924_v32  ;;  %v935_v54 = vsel %vm4614_vm12, %v930_v29, %v934_v47  ;;  %v961_v55 = vshrl.u32 %v807_v61, 16  ;;  %v964_v56 = vshll.u32 %v807_v61, 16  ;;  %v4767_v63 = vld [vmem:[#allocation2 + $0x58] sm:$0xf]  ;;  %v4082_v19 = vld [vmem:[%s5505_s3 + $0x110] sm:$0xff]  ;;  %1702 = vmatpush.bf16.msrb.mxu3 %v4074_v38  ;;  %v4073_v46 = vld [vmem:[%s5505_s3 + $0xc8] sm:$0xff] }
  0x64   : > { %v1055_v22 = vunpack.c.l.b16 %v925_v52  ;;  %v1056_v8 = vunpack.c.l.b16 %v935_v54  ;;  %v978_v62 = vrot.slane %v977_v48, 4  ;;  %v787_v0 = vld [vmem:[#allocation2 + $0x5c] sm:$0x1]  ;;  %v1018_v6 = vshll.u32 %v4767_v63, 16  ;;  %2080 = vmatpush.bf16.msrb.mxu0 %v4082_v19  ;;  %1509 = vmatpush.bf16.msrb.mxu2 %v4057_v40  ;;  %v4056_v52 = vld [vmem:[%s5505_s3 + $0x80] sm:$0xff] }
  0x65   : > { %v4770_v9 = vld [vmem:[#allocation2 + $0x44] sm:$0x1]  ;;  %v963_v10 = vrot.slane %v961_v55, 4  ;;  %v966_v12 = vrot.slane %v964_v56, 5  ;;  %v788_v32 = vsel %vm4550_vm9, 0, %v787_v0  ;;  %v1022_v15 = vshrl.u32 %v4767_v63, 16 }
  0x66   : > { %v1068_v16 = vpack.c.b16 %v1056_v8, %v1055_v22  ;;  %v980_v17 = vshll.u32 %v4770_v9, 16  ;;  %789 = vst [vmem:[#allocation2 + $0x5c] sm:$0x1] %v788_v32  ;;  %v4776_v18 = vrot.slane %v1018_v6, 5  ;;  %v424_v20 = vor.u32 %v422_v51, %v421_v50  ;;  %1280 = vmatpush.bf16.msrb.mxu1 %v4041_v3  ;;  %v4072_v8 = vld [vmem:[%s5505_s3 + $0xc0] sm:$0xff]  ;;  %v4111_v0 = vld [vmem:[%s5505_s3 + $0x1b8] sm:$0xff] }
  0x67   : > { %v967_v28 = vor.u32 %v966_v12, %v963_v10  ;;  %v1024_v31 = vrot.slane %v1022_v15, 4  ;;  %v426_v29 = vrot.slane %v421_v50, 4  ;;  %v575_v34 = vsel %vm4491_vm7, %v416_v49, %v574_v57  ;;  %v4081_v49 = vld [vmem:[%s5505_s3 + $0x108] sm:$0xff]  ;;  %v1323_v50 = vld [vmem:[#allocation2] sm:$0xe]  ;;  %1703 = vmatpush.bf16.msrb.mxu3 %v4073_v46 }
  0x68   : > { %1152 = vmatmul.bf16.gmra.mxu1 %v1068_v16  ;;  %v982_v39 = vrot.slane %v980_v17, 5  ;;  %v425_v2 = vsel %vm4482_vm6, %v417_v45, %v424_v20  ;;  %576 = vst [vmem:[#allocation2 + $0xc] sm:$0xf] %v575_v34  ;;  %v1352_v54 = vrot.slane %v4664_v5, 5  ;;  %v3601_v5 = vrot.slane %v1323_v50, 9  ;;  %2081 = vmatpush.bf16.msrb.mxu0 %v4081_v49 }
  0x69   : > { %v968_v42 = vrot.slane %v967_v28, 4  ;;  %v811_v26 = vld [vmem:[#allocation2 + $0x54] sm:$0xf]  ;;  %577 = vst [vmem:[#allocation2 + $0x10] sm:$0xf] %v425_v2  ;;  %v581_v43 = vsel %vm4476_vm5, %v426_v29, %v580_v7  ;;  %v1025_v44 = vor.u32 %v1024_v31, %v4776_v18  ;;  %v1355_v7 = vrot.slane %v4696_v13, 5  ;;  %1510 = vmatpush.bf16.msrb.mxu2 %v4056_v52 }
  0x6a   : > { %v983_v27 = vsel %vm4614_vm12, %v978_v62, %v982_v39  ;;  %v1009_v33 = vshrl.u32 %v811_v26, 16  ;;  %v1012_v35 = vshll.u32 %v811_v26, 16  ;;  %582 = vst [vmem:[#allocation2 + $0x14] sm:$0x1] %v581_v43  ;;  %v4080_v62 = vld [vmem:[%s5505_s3 + $0x100] sm:$0xff]  ;;  %v1354_v16 = vrot.slane %v1352_v54, 4 }
  0x6b   : > { %v973_v47 = vsel %vm4614_vm12, %v968_v42, %v4758_v30  ;;  %v1060_v14 = vunpack.c.l.b16 %v983_v27  ;;  %v4040_v30 = vld [vmem:[%s5505_s3] sm:$0xff]  ;;  %v1026_v57 = vrot.slane %v1025_v44, 4  ;;  %1704 = vmatpush.bf16.msrb.mxu3 %v4072_v8  ;;  %v1353_v2 = vsel %vm4852_vm15, %v3601_v5, %v1352_v54  ;;  %v4119_v42 = vld [vmem:[%s5505_s3 + $0x1f8] sm:$0xff]  ;;  %v4110_v27 = vld [vmem:[%s5505_s3 + $0x1b0] sm:$0xff] }
  0x6c   : > { %v1059_v45 = vunpack.c.l.b16 %v973_v47  ;;  %v1011_v61 = vrot.slane %v1009_v33, 4  ;;  %v1014_v48 = vrot.slane %v1012_v35, 5  ;;  %1281 = vmatpush.bf16.msrb.mxu1 %v4040_v30  ;;  %2082 = vmatpush.bf16.msrb.mxu0 %v4080_v62  ;;  %v1356_v19 = vsel %vm4852_vm15, %v1354_v16, %v1355_v7  ;;  %v4095_v26 = vld [vmem:[%s5505_s3 + $0x178] sm:$0xff] }
  0x6d   : > { %v4817_v51 = vld [vmem:[#allocation2 + $0x5c] sm:$0x1]  ;;  %2520 = vmatpush.bf16.msra.mxu2 %v4111_v0  ;;  %v1423_v35 = vunpack.c.l.b16 %v1353_v2  ;;  %v1424_v44 = vunpack.c.l.b16 %v1356_v19  ;;  %v1765_v19 = vld [vmem:[#allocation2 + $0x18] sm:$0xf] }
  0x6e   : > { %v1070_v55 = vpack.c.b16 %v1060_v14, %v1059_v45  ;;  %v1015_v56 = vor.u32 %v1014_v48, %v1011_v61  ;;  %v1028_v22 = vshll.u32 %v4817_v51, 16  ;;  %v4127_v43 = vld [vmem:[%s5505_s3 + $0x238] sm:$0xff] }
  0x6f   : > { %v738_v6 = vld [vmem:[#allocation2 + $0xc] sm:$0x1]  ;;  %2898 = vmatpush.bf16.msra.mxu3 %v4119_v42  ;;  %v4126_v42 = vld [vmem:[%s5505_s3 + $0x230] sm:$0xff] }
  0x70   : > { %1162 = vmatmul.bf16.gmra.mxu2 %v1070_v55  ;;  %v1016_v10 = vrot.slane %v1015_v56, 4  ;;  %v1030_v12 = vrot.slane %v1028_v22, 5  ;;  %v739_v32 = vsel %vm4476_vm5, 0, %v738_v6  ;;  %v4839_v15 = vld [vmem:[#allocation2 + $0x10] sm:$0xf]  ;;  %2325 = vmatpush.bf16.msra.mxu1 %v4095_v26  ;;  %v1439_v56 = vpack.c.b16 %v1424_v44, %v1423_v35 }
  0x71   : > { %740 = vst [vmem:[#allocation2 + $0xc] sm:$0x1] %v739_v32  ;;  %v769_v17 = vld [vmem:[#allocation2 + $0x14] sm:$0x1]  ;;  %v874_v20 = vshll.u32 %v4839_v15, 16  ;;  %v878_v23 = vshrl.u32 %v4839_v15, 16  ;;  %3148 = vmatpush.bf16.msra.mxu0 %v4127_v43  ;;  %2521 = vmatpush.bf16.msra.mxu2 %v4110_v27 }
  0x72   : > { %v1021_v13 = vsel %vm4614_vm12, %v1016_v10, %v4776_v18  ;;  %v1031_v25 = vsel %vm4614_vm12, %v1026_v57, %v1030_v12  ;;  %v770_v28 = vsel %vm4550_vm9, 0, %v769_v17  ;;  %v4032_v18 = vld [vmem:[#allocation2] sm:$0xff]  ;;  %v4869_v3 = vld [vmem:[#allocation2 + $0x10] sm:$0xf]  ;;  %v1359_v8 = vrot.slane %v4839_v15, 5 }
  0x73   : > { %v1063_v29 = vunpack.c.l.b16 %v1021_v13  ;;  %v1064_v34 = vunpack.c.l.b16 %v1031_v25  ;;  %771 = vst [vmem:[#allocation2 + $0x14] sm:$0x1] %v770_v28  ;;  %v876_v36 = vrot.slane %v874_v20, 5  ;;  %v880_v38 = vrot.slane %v878_v23, 4  ;;  %v1324_v6 = vld [vmem:[#allocation2 + $0xc] sm:$0xe] }
  0x74   : > { %v1796_v49 = vshll.u32 %v4869_v3, 16  ;;  %v1800_v50 = vshrl.u32 %v4869_v3, 16  ;;  %v3602_v20 = vrot.slane %v1324_v6, 9  ;;  %v1361_v23 = vrot.slane %v1359_v8, 4 }
  0x75   : > { %v1072_v39 = vpack.c.b16 %v1064_v34, %v1063_v29  ;;  %v881_v40 = vor.u32 %v880_v38, %v876_v36  ;;  %3149 = vmatpush.bf16.msra.mxu0 %v4126_v42 }
  0x76   : > { %v1798_v62 = vrot.slane %v1796_v49, 5  ;;  %v1802_v0 = vrot.slane %v1800_v50, 4 }
  0x77   : > { %1172 = vmatmul.bf16.gmra.mxu3 %v1072_v39  ;;  %v882_v61 = vrot.slane %v881_v40, 4  ;;  %v1360_v39 = vsel %vm4852_vm15, %v3602_v20, %v1359_v8  ;;  %v4094_v40 = vld [vmem:[%s5505_s3 + $0x170] sm:$0xff]  ;;  %v1325_v8 = vld [vmem:[#allocation2 + $0x18] sm:$0xe] }
  0x78   : > { %v799_v33 = vld [vmem:[#allocation2 + $0xc] sm:$0xf]  ;;  %1282 = vmatmul.bf16.vlgmr.msrb.gmra.mxu1 %v4032_v18  ;;  %v1803_v29 = vor.u32 %v1802_v0, %v1798_v62  ;;  %v1425_v35 = vunpack.c.l.b16 %v1360_v39  ;;  %v4909_v0 = vld [vmem:[#allocation2 + $0x20] sm:$0x1]  ;;  %v4034_v20 = vld [vmem:[#allocation2 + $0x18] sm:$0xff] }
  0x79   : > { %v1762_v46 = vld [vmem:[#allocation2 + $0xc] sm:$0xf]  ;;  %v865_v47 = vshrl.u32 %v799_v33, 16  ;;  %v868_v14 = vshll.u32 %v799_v33, 16  ;;  %v4897_v33 = vld [vmem:[#allocation2 + $0x1c] sm:$0xf]  ;;  %2326 = vmatpush.bf16.msra.mxu1 %v4094_v40 }
  0x7a   : > { %v830_v45 = vld [vmem:[#allocation2 + $0x14] sm:$0x1]  ;;  %v1787_v48 = vshrl.u32 %v1762_v46, 16  ;;  %v1790_v55 = vshll.u32 %v1762_v46, 16  ;;  %v4064_v25 = vld [vmem:[#allocation2 + $0xc] sm:$0xff]  ;;  %v1804_v43 = vrot.slane %v1803_v29, 4 }
  0x7b   : > { %v867_v52 = vrot.slane %v865_v47, 4  ;;  %v870_v30 = vrot.slane %v868_v14, 5  ;;  %v884_v54 = vshll.u32 %v830_v45, 16  ;;  %v4879_v16 = vld [vmem:[#allocation2 + $0x14] sm:$0x1]  ;;  %v1362_v13 = vrot.slane %v830_v45, 5 }
  0x7c   : > { %v1789_v10 = vrot.slane %v1787_v48, 4  ;;  %v1792_v12 = vrot.slane %v1790_v55, 5  ;;  %v1806_v34 = vshll.u32 %v4879_v16, 16  ;;  %v4033_v18 = vld [vmem:[#allocation2 + $0xc] sm:$0xff]  ;;  %v1811_v47 = vshrl.u32 %v1765_v19, 16 }
  0x7d   : > { %v871_v57 = vor.u32 %v870_v30, %v867_v52  ;;  %v886_v22 = vrot.slane %v884_v54, 5  ;;  %v1363_v2 = vsel %vm4852_vm15, %v1361_v23, %v1362_v13  ;;  %v4109_v46 = vld [vmem:[%s5505_s3 + $0x1a8] sm:$0xff]  ;;  %v1814_v14 = vshll.u32 %v1765_v19, 16 }
  0x7e   : > { %v1793_v28 = vor.u32 %v1792_v12, %v1789_v10  ;;  %v1808_v27 = vrot.slane %v1806_v34, 5  ;;  %v1426_v44 = vunpack.c.l.b16 %v1363_v2  ;;  %v1820_v45 = vshll.u32 %v4897_v33, 16  ;;  %2522 = vmatpush.bf16.msra.mxu2 %v4109_v46  ;;  %v4093_v29 = vld [vmem:[%s5505_s3 + $0x168] sm:$0xff]  ;;  %v4108_v2 = vld [vmem:[%s5505_s3 + $0x1a0] sm:$0xff] }
  0x7f   : > { %v872_v5 = vrot.slane %v871_v57, 4  ;;  %v887_v7 = vsel %vm4614_vm12, %v882_v61, %v886_v22  ;;  %v1824_v61 = vshrl.u32 %v4897_v33, 16  ;;  %v1813_v52 = vrot.slane %v1811_v47, 4  ;;  %v4125_v34 = vld [vmem:[%s5505_s3 + $0x228] sm:$0xff]  ;;  %2327 = vmatpush.bf16.msra.mxu1 %v4093_v29 }
  0x80   : > { %v1052_v32 = vunpack.c.l.b16 %v887_v7  ;;  %1511 = vmatmul.bf16.vlgmr.msrb.gmra.mxu2 %v1439_v56  ;;  %v1794_v26 = vrot.slane %v1793_v28, 4  ;;  %v1809_v49 = vsel %vm4614_vm12, %v1804_v43, %v1808_v27  ;;  %v1440_v50 = vpack.c.b16 %v1426_v44, %v1425_v35  ;;  %3150 = vmatpush.bf16.msra.mxu0 %v4125_v34 }
  0x81   : > { %v877_v17 = vsel %vm4614_vm12, %v872_v5, %v876_v36  ;;  %v4118_v36 = vld [vmem:[%s5505_s3 + $0x1f0] sm:$0xff]  ;;  %v1816_v30 = vrot.slane %v1814_v14, 5  ;;  %v1366_v54 = vrot.slane %v4560_v4, 5  ;;  %v1996_v56 = vunpack.c.l.b16 %v1809_v49  ;;  %v4938_v49 = vld [vmem:[#allocation2 + $0x2c] sm:$0x1] }
  0x82   : > { %v1051_v15 = vunpack.c.l.b16 %v877_v17  ;;  %2899 = vmatpush.bf16.msra.mxu3 %v4118_v36  ;;  %v1799_v48 = vsel %vm4614_vm12, %v1794_v26, %v1798_v62  ;;  %v1822_v57 = vrot.slane %v1820_v45, 5  ;;  %v1826_v22 = vrot.slane %v1824_v61, 4  ;;  %v4065_v17 = vld [vmem:[#allocation2 + $0x18] sm:$0xff]  ;;  %2523 = vmatpush.bf16.msra.mxu2 %v4108_v2 }
  0x83   : > { %v1995_v55 = vunpack.c.l.b16 %v1799_v48  ;;  %v1817_v6 = vor.u32 %v1816_v30, %v1813_v52  ;;  %v3603_v5 = vrot.slane %v1325_v8, 9  ;;  %v1368_v7 = vrot.slane %v1366_v54, 4  ;;  %v1326_v48 = vld [vmem:[#allocation2 + $0x24] sm:$0xe] }
  0x84   : > { %v1066_v38 = vpack.c.b16 %v1052_v32, %v1051_v15  ;;  %v1369_v62 = vrot.slane %v4602_v59, 5  ;;  %v1827_v12 = vor.u32 %v1826_v22, %v1822_v57  ;;  %v1830_v32 = vshll.u32 %v4909_v0, 16  ;;  %v1768_v15 = vld [vmem:[#allocation2 + $0x24] sm:$0xf]  ;;  %v4117_v59 = vld [vmem:[%s5505_s3 + $0x1e8] sm:$0xff] }
  0x85   : > { %v2011_v10 = vpack.c.b16 %v1996_v56, %v1995_v55  ;;  %v1818_v4 = vrot.slane %v1817_v6, 4  ;;  %v1367_v23 = vsel %vm4852_vm15, %v3603_v5, %v1366_v54  ;;  %v1835_v36 = vshrl.u32 %v1768_v15, 16  ;;  %v4066_v22 = vld [vmem:[#allocation2 + $0x24] sm:$0xff] }
  0x86   : > { %1142 = vmatmul.bf16.gmra.mxu0 %v1066_v38  ;;  %v1370_v13 = vsel %vm4852_vm15, %v1368_v7, %v1369_v62  ;;  %v1832_v28 = vrot.slane %v1830_v32, 5  ;;  %v4926_v38 = vld [vmem:[#allocation2 + $0x28] sm:$0xf]  ;;  %2900 = vmatpush.bf16.msra.mxu3 %v4117_v59  ;;  %v1838_v42 = vshll.u32 %v1768_v15, 16  ;;  %v1373_v46 = vrot.slane %v4725_v21, 5 }
  0x87   : > { %1705 = vmatmul.bf16.vlgmr.msrb.gmra.mxu3 %v4064_v25  ;;  %v1828_v25 = vrot.slane %v1827_v12, 4  ;;  %v1428_v39 = vunpack.c.l.b16 %v1370_v13  ;;  %v1823_v19 = vsel %vm4614_vm12, %v1818_v4, %v1822_v57  ;;  %v1844_v26 = vshll.u32 %v4926_v38, 16  ;;  %v4035_v8 = vld [vmem:[#allocation2 + $0x24] sm:$0xff]  ;;  %v4955_v4 = vld [vmem:[#allocation2 + $0x34] sm:$0xf] }
  0x88   : > { %1287 = vmatmul.bf16.gmra.mxu1 %v4033_v18  ;;  %v1427_v18 = vunpack.c.l.b16 %v1367_v23  ;;  %v1848_v43 = vshrl.u32 %v4926_v38, 16  ;;  %v1997_v35 = vunpack.c.l.b16 %v1823_v19  ;;  %v1837_v47 = vrot.slane %v1835_v36, 4  ;;  %v4124_v12 = vld [vmem:[%s5505_s3 + $0x220] sm:$0xff]  ;;  %v4107_v23 = vld [vmem:[%s5505_s3 + $0x198] sm:$0xff]  ;;  %v1327_v36 = vld [vmem:[#allocation2 + $0x30] sm:$0xe] }
  0x89   : > { %v1833_v40 = vsel %vm4614_vm12, %v1828_v25, %v1832_v28  ;;  %v1840_v14 = vrot.slane %v1838_v42, 5  ;;  %v1846_v45 = vrot.slane %v1844_v26, 5  ;;  %v1375_v52 = vrot.slane %v1373_v46, 4  ;;  %3151 = vmatpush.bf16.msra.mxu0 %v4124_v12  ;;  %2524 = vmatpush.bf16.msra.mxu2 %v4107_v23 }
  0x8a   : > { %v1441_v27 = vpack.c.b16 %v1428_v39, %v1427_v18  ;;  %v1998_v44 = vunpack.c.l.b16 %v1833_v40  ;;  %v1850_v61 = vrot.slane %v1848_v43, 4  ;;  %v1376_v30 = vrot.slane %v4754_v41, 5  ;;  %v4116_v41 = vld [vmem:[%s5505_s3 + $0x1e0] sm:$0xff]  ;;  %v4289_v18 = vld [vmem:[#allocation2 + $0x34] sm:$0xf] }
  0x8b   : > { %v1841_v55 = vor.u32 %v1840_v14, %v1837_v47  ;;  %v1854_v57 = vshll.u32 %v4938_v49, 16  ;;  %2901 = vmatpush.bf16.msra.mxu3 %v4116_v41  ;;  %v1868_v59 = vshll.u32 %v4955_v4, 16  ;;  %v1872_v29 = vshrl.u32 %v4955_v4, 16  ;;  %v4067_v14 = vld [vmem:[#allocation2 + $0x30] sm:$0xff] }
  0x8c   : > { %v2012_v54 = vpack.c.b16 %v1998_v44, %v1997_v35  ;;  %v1851_v56 = vor.u32 %v1850_v61, %v1846_v45  ;;  %v1377_v6 = vsel %vm4852_vm15, %v1375_v52, %v1376_v30  ;;  %v1380_v39 = vrot.slane %v4289_v18, 5  ;;  %v4106_v41 = vld [vmem:[%s5505_s3 + $0x190] sm:$0xff] }
  0x8d   : > { %v1842_v5 = vrot.slane %v1841_v55, 4  ;;  %v1856_v62 = vrot.slane %v1854_v57, 5  ;;  %v1870_v26 = vrot.slane %v1868_v59, 5  ;;  %v1874_v43 = vrot.slane %v1872_v29, 4  ;;  %v4091_v55 = vld [vmem:[%s5505_s3 + $0x158] sm:$0xff]  ;;  %2525 = vmatpush.bf16.msra.mxu2 %v4106_v41 }
  0x8e   : > { %v1852_v7 = vrot.slane %v1851_v56, 4  ;;  %v3605_v35 = vrot.slane %v1327_v36, 9  ;;  %v1382_v44 = vrot.slane %v1380_v39, 4  ;;  %v4123_v56 = vld [vmem:[%s5505_s3 + $0x218] sm:$0xff]  ;;  %v1387_v59 = vrot.slane %v4749_v37, 5 }
  0x8f   : > { %v1847_v13 = vsel %vm4614_vm12, %v1842_v5, %v1846_v45  ;;  %v1875_v61 = vor.u32 %v1874_v43, %v1870_v26  ;;  %v4983_v5 = vld [vmem:[#allocation2 + $0x40] sm:$0xf]  ;;  %3152 = vmatpush.bf16.msra.mxu0 %v4123_v56 }
  0x90   : > { %1516 = vmatmul.bf16.gmra.mxu2 %v1440_v50  ;;  %v3604_v50 = vrot.slane %v1326_v48, 9  ;;  %v1857_v15 = vsel %vm4614_vm12, %v1852_v7, %v1856_v62  ;;  %v1999_v2 = vunpack.c.l.b16 %v1847_v13  ;;  %v1381_v52 = vsel %vm4852_vm15, %v3605_v35, %v1380_v39  ;;  %v4999_v29 = vld [vmem:[%s5503_s1] ss:$0 sm:$0xff] }
  0x91   : > { %v2000_v19 = vunpack.c.l.b16 %v1857_v15  ;;  %v1896_v23 = vshrl.u32 %v4983_v5, 16 }
  0x92   : > { %v1374_v21 = vsel %vm4852_vm15, %v3604_v50, %v1373_v46  ;;  %v1383_v46 = vrot.slane %v4628_v24, 5  ;;  %v4036_v50 = vld [vmem:[#allocation2 + $0x30] sm:$0xff]  ;;  %v4115_v24 = vld [vmem:[%s5505_s3 + $0x1d8] sm:$0xff] }
  0x93   : > { %v1429_v32 = vunpack.c.l.b16 %v1374_v21  ;;  %v2013_v47 = vpack.c.b16 %v2000_v19, %v1999_v2  ;;  %v1431_v21 = vunpack.c.l.b16 %v1381_v52  ;;  %2902 = vmatpush.bf16.msra.mxu3 %v4115_v24  ;;  %v1328_v2 = vld [vmem:[#allocation2 + $0x3c] sm:$0xe] }
  0x94   : > { %v1384_v30 = vsel %vm4852_vm15, %v1382_v44, %v1383_v46  ;;  %v3606_v44 = vrot.slane %v1328_v2, 9  ;;  %v1389_v46 = vrot.slane %v1387_v59, 4  ;;  %v4037_v24 = vld [vmem:[#allocation2 + $0x3c] sm:$0xff] }
  0x96   : > { %2083 = vmatmul.bf16.vlgmr.msrb.gmra.mxu0 %v2011_v10  ;;  %v4092_v10 = vld [vmem:[%s5505_s3 + $0x160] sm:$0xff]  ;;  %v1388_v56 = vsel %vm4852_vm15, %v3606_v44, %v1387_v59 }
  0x97   : > { %1710 = vmatmul.bf16.gmra.mxu3 %v4065_v17  ;;  %v1430_v17 = vunpack.c.l.b16 %v1377_v6  ;;  %2328 = vmatpush.bf16.msra.mxu1 %v4092_v10  ;;  %v1432_v6 = vunpack.c.l.b16 %v1384_v30  ;;  %v4214_v10 = vld [vmem:[%s4424_s16 + $0x38] sm:$0xff]   ;;  %s3476_s16 = sshll.u32 %s5542_s10, 1 }
  0x98   : > { %1292 = vmatmul.bf16.gmra.mxu1 %v4034_v20  ;;  %v1771_v20 = vld [vmem:[#allocation2 + $0x30] sm:$0xf]  ;;  %v4158_v12 = vunpack.c.l.bf16 %v4214_v10  ;;  %s286_s18 = sadd.s32 %s3477_s14, %s3476_s16 }
  0x99   : > { %v1859_v25 = vshrl.u32 %v1771_v20, 16  ;;  %v1862_v28 = vshll.u32 %v1771_v20, 16  ;;  %v1442_v34 = vpack.c.b16 %v1430_v17, %v1429_v32  ;;  %v1892_v20 = vshll.u32 %v4983_v5, 16  ;;  %s3478_s19 = sshll.u32 %s286_s18, 2 }
  0x9a   : > { %v1443_v13 = vpack.c.b16 %v1432_v6, %v1431_v21  ;;  %v4114_v21 = vld [vmem:[%s5505_s3 + $0x1d0] sm:$0xff]  ;;  %s5443_s28 = scalar_lea.vmem %s5507_s5, %s3478_s19 }
  0x9b   : > { %v1861_v40 = vrot.slane %v1859_v25, 4  ;;  %v1864_v42 = vrot.slane %v1862_v28, 5  ;;  %2329 = vmatpush.bf16.msra.mxu1 %v4091_v55  ;;  %v4159_v28 = vunpack.c.h.bf16 %v4214_v10  ;;  %v1894_v36 = vrot.slane %v1892_v20, 5  ;;  %v4090_v6 = vld [vmem:[%s5505_s3 + $0x150] sm:$0xff]  ;;  %v5027_v20 = vld [vmem:[#allocation2 + $0x4c] sm:$0xf]  ;;  %2903 = vmatpush.bf16.msra.mxu3 %v4114_v21 }
  0x9c   : > { %v1920_v2 = vshrl.u32 %v5027_v20, 16 }
  0x9d   : > { %v1865_v45 = vor.u32 %v1864_v42, %v1861_v40  ;;  %v355_v19 = vmul.f32 %v4999_v29, %v4159_v28  ;;  %v1898_v40 = vrot.slane %v1896_v23, 4  ;;  %v5006_v42 = vld [vmem:[%s5504_s2] ss:$0 sm:$0xff]  ;;  %v4105_v23 = vld [vmem:[%s5505_s3 + $0x188] sm:$0xff] }
  0x9e   : > { %2526 = vmatpush.bf16.msra.mxu2 %v4105_v23  ;;  %v5053_v23 = vld [vmem:[#allocation2 + $0x58] sm:$0xf] }
  0x9f   : > { %v1866_v57 = vrot.slane %v1865_v45, 4  ;;  %v374_v35 = vadd.f32 %v5006_v42, %v355_v19  ;;  %2330 = vmatpush.bf16.msra.mxu1 %v4090_v6 }
  0xa0   : > { %1521 = vmatmul.bf16.gmra.mxu2 %v1441_v27  ;;  %v4966_v27 = vld [vmem:[#allocation2 + $0x38] sm:$0x1] }
  0xa1   : > { %v1878_v48 = vshll.u32 %v4966_v27, 16  ;;  %v1871_v32 = vsel %vm4614_vm12, %v1866_v57, %v1870_v26  ;;  %v5009_v26 = vld [vmem:[#allocation2 + $0x44] sm:$0x1] }
  0xa2   : > { %v2001_v18 = vunpack.c.l.b16 %v1871_v32  ;;  %v1902_v52 = vshll.u32 %v5009_v26, 16  ;;  %v1433_v32 = vunpack.c.l.b16 %v1388_v56 }
  0xa4   : > { %v1904_v10 = vrot.slane %v1902_v52, 5  ;;  %v5040_v52 = vld [vmem:[#allocation2 + $0x50] sm:$0x1] }
  0xa6   : > { %2088 = vmatmul.bf16.gmra.mxu0 %v2012_v54  ;;  %v1774_v54 = vld [vmem:[#allocation2 + $0x3c] sm:$0xf] }
  0xa7   : > { %1715 = vmatmul.bf16.gmra.mxu3 %v4066_v22  ;;  %v1876_v22 = vrot.slane %v1875_v61, 4  ;;  %v1883_v7 = vshrl.u32 %v1774_v54, 16  ;;  %v1886_v62 = vshll.u32 %v1774_v54, 16  ;;  %v390_v61 = vmax.f32 %v374_v35, 0.0  ;;  %v4292_v35 = vld [vmem:[#allocation2 + $0x4c] sm:$0xf] }
  0xa8   : > { %1297 = vmatmul.bf16.gmra.mxu1 %v4035_v8  ;;  %v1880_v8 = vrot.slane %v1878_v48, 5  ;;  %v4068_v48 = vld [vmem:[#allocation2 + $0x3c] sm:$0xff]  ;;  %v1394_v44 = vrot.slane %v4292_v35, 5  ;;  %v1940_v35 = vshll.u32 %v5053_v23, 16 }
  0xa9   : > { %v1885_v15 = vrot.slane %v1883_v7, 4  ;;  %v1888_v25 = vrot.slane %v1886_v62, 5  ;;  %v406_v55 = vpack.c.bf16 %v390_v61, %v390_v61  ;;  %v4122_v7 = vld [vmem:[%s5505_s3 + $0x210] sm:$0xff]  ;;  %v1329_v61 = vld [vmem:[#allocation2 + $0x48] sm:$0xe] }
  0xaa   : > { %v1881_v17 = vsel %vm4614_vm12, %v1876_v22, %v1880_v8  ;;  %v1777_v22 = vld [vmem:[#allocation2 + $0x48] sm:$0xf]  ;;  %3153 = vmatpush.bf16.msra.mxu0 %v4122_v7  ;;  %v1926_v7 = vshll.u32 %v5040_v52, 16 }
  0xab   : > { %v2002_v39 = vunpack.c.l.b16 %v1881_v17  ;;  %v1889_v43 = vor.u32 %v1888_v25, %v1885_v15  ;;  %v538_v62 = vshrl.u32 %v406_v55, 16  ;;  %v1907_v15 = vshrl.u32 %v1777_v22, 16 }
  0xac   : > { %v1910_v59 = vshll.u32 %v1777_v22, 16  ;;  %v1396_v22 = vrot.slane %v1394_v44, 4 }
  0xad   : > { %v2014_v45 = vpack.c.b16 %v2002_v39, %v2001_v18  ;;  %v1890_v54 = vrot.slane %v1889_v43, 4  ;;  %v540_v28 = vrot.slane %v538_v62, 7  ;;  %v1916_v39 = vshll.u32 %v5027_v20, 16  ;;  %v629_v43 = vld [vmem:[#allocation2 + $0x68] sm:$0x1] }
  0xae   : > { %v4069_v62 = vld [vmem:[#allocation2 + $0x48] sm:$0xff] }
  0xb0   : > { %1526 = vmatmul.bf16.gmra.mxu2 %v1442_v34  ;;  %v354_v34 = vmul.f32 %v4999_v29, %v4158_v12 }
  0xb2   : > { %v373_v37 = vadd.f32 %v5006_v42, %v354_v34  ;;  %v625_v34 = vld [vmem:[#allocation2 + $0x60] sm:$0xf] }
  0xb6   : > { %2093 = vmatmul.bf16.gmra.mxu0 %v2013_v47  ;;  %v1390_v47 = vrot.slane %v4770_v9, 5 }
  0xb7   : > { %1720 = vmatmul.bf16.gmra.mxu3 %v4067_v14  ;;  %v389_v14 = vmax.f32 %v373_v37, 0.0  ;;  %v541_v37 = vshll.u32 %v406_v55, 16 }
  0xb8   : > { %1302 = vmatmul.bf16.gmra.mxu1 %v4036_v50  ;;  %v1899_v50 = vor.u32 %v1898_v40, %v1894_v36  ;;  %v1391_v57 = vsel %vm4852_vm15, %v1389_v46, %v1390_v47  ;;  %v545_v46 = vrot.slane %v540_v28, 4 }
  0xb9   : > { %v405_v30 = vpack.c.bf16 %v389_v14, %v389_v14  ;;  %v1434_v17 = vunpack.c.l.b16 %v1391_v57  ;;  %v3607_v57 = vrot.slane %v1329_v61, 9 }
  0xba   : > { %v1900_v41 = vrot.slane %v1899_v50, 4  ;;  %v543_v50 = vor.u32 %v541_v37, %v540_v28  ;;  %v4113_v28 = vld [vmem:[%s5505_s3 + $0x1c8] sm:$0xff] }
  0xbb   : > { %v530_v8 = vshrl.u32 %v405_v30, 16  ;;  %v533_v9 = vshll.u32 %v405_v30, 16  ;;  %v1444_v40 = vpack.c.b16 %v1434_v17, %v1433_v32  ;;  %v1918_v30 = vrot.slane %v1916_v39, 5  ;;  %2904 = vmatpush.bf16.msra.mxu3 %v4113_v28 }
  0xbc   : > { %v1905_v18 = vsel %vm4614_vm12, %v1900_v41, %v1904_v10  ;;  %v4038_v10 = vld [vmem:[#allocation2 + $0x48] sm:$0xff]  ;;  %v1395_v32 = vsel %vm4852_vm15, %v3607_v57, %v1394_v44  ;;  %v1944_v44 = vshrl.u32 %v5053_v23, 16 }
  0xbd   : > { %v532_v12 = vrot.slane %v530_v8, 7  ;;  %v2004_v14 = vunpack.c.l.b16 %v1905_v18  ;;  %v4293_v8 = vld [vmem:[#allocation2 + $0x50] sm:$0x1] }
  0xbf   : > { %v535_v25 = vor.u32 %v533_v9, %v532_v12  ;;  %v1397_v9 = vrot.slane %v4293_v8, 5  ;;  %v1330_v8 = vld [vmem:[#allocation2 + $0x54] sm:$0xe] }
  0xc0   : > { %1531 = vmatmul.bf16.gmra.mxu2 %v1443_v13  ;;  %v1895_v13 = vsel %vm4614_vm12, %v1890_v54, %v1894_v36  ;;  %v1909_v36 = vrot.slane %v1907_v15, 4  ;;  %v1922_v54 = vrot.slane %v1920_v2, 4 }
  0xc1   : > { %v2003_v19 = vunpack.c.l.b16 %v1895_v13  ;;  %v626_v47 = vsel %vm4491_vm7, %v535_v25, %v625_v34  ;;  %v5046_v56 = vpop.f32.mrf.mxu1  ;;  %v1398_v17 = vsel %vm4852_vm15, %v1396_v22, %v1397_v9  ;;  %v1928_v25 = vrot.slane %v1926_v7, 5  ;;  %v4121_v34 = vld [vmem:[%s5505_s3 + $0x208] sm:$0xff] }
  0xc2   : > { %627 = vst [vmem:[#allocation2 + $0x60] sm:$0xf] %v626_v47  ;;  %v1923_v41 = vor.u32 %v1922_v54, %v1918_v30  ;;  %v1436_v37 = vunpack.c.l.b16 %v1398_v17  ;;  %3154 = vmatpush.bf16.msra.mxu0 %v4121_v34  ;;  %v1942_v54 = vrot.slane %v1940_v35, 5  ;;  %v3608_v7 = vrot.slane %v1330_v8, 9  ;;  %v4039_v17 = vld [vmem:[#allocation2 + $0x54] sm:$0xff] }
  0xc3   : > { %v2015_v21 = vpack.c.b16 %v2004_v14, %v2003_v19 }
  0xc4   : > { %v1924_v39 = vrot.slane %v1923_v41, 4  ;;  %v1404_v41 = vrot.slane %v4817_v51, 5 }
  0xc6   : > { %2098 = vmatmul.bf16.gmra.mxu0 %v2014_v45  ;;  %v1912_v45 = vrot.slane %v1910_v59, 5  ;;  %v4089_v59 = vld [vmem:[%s5505_s3 + $0x148] sm:$0xff]  ;;  %v1929_v47 = vsel %vm4614_vm12, %v1924_v39, %v1928_v25  ;;  %v4088_v39 = vld [vmem:[%s5505_s3 + $0x140] sm:$0xff] }
  0xc7   : > { %1725 = vmatmul.bf16.gmra.mxu3 %v4068_v48  ;;  %v536_v48 = vrot.slane %v532_v12, 4  ;;  %v1780_v12 = vld [vmem:[#allocation2 + $0x54] sm:$0xf]  ;;  %2331 = vmatpush.bf16.msra.mxu1 %v4089_v59  ;;  %v2006_v22 = vunpack.c.l.b16 %v1929_v47 }
  0xc8   : > { %1307 = vmatmul.bf16.gmra.mxu1 %v4037_v24  ;;  %v630_v24 = vsel %vm4476_vm5, %v545_v46, %v629_v43  ;;  %v1913_v6 = vor.u32 %v1912_v45, %v1909_v36  ;;  %v1931_v2 = vshrl.u32 %v1780_v12, 16  ;;  %v1934_v43 = vshll.u32 %v1780_v12, 16  ;;  %v4070_v12 = vld [vmem:[#allocation2 + $0x54] sm:$0xff] }
  0xc9   : > { %v544_v55 = vsel %vm4482_vm6, %v536_v48, %v543_v50  ;;  %631 = vst [vmem:[#allocation2 + $0x68] sm:$0x1] %v630_v24  ;;  %v759_v13 = vld [vmem:[#allocation2 + $0x60] sm:$0x1]  ;;  %v5074_v14 = vpop.f32.mrf.mxu1  ;;  %v5076_v50 = vld [vmem:[#allocation2 + $0x5c] sm:$0x1] }
  0xca   : > { %628 = vst [vmem:[#allocation2 + $0x64] sm:$0xf] %v544_v55  ;;  %v1914_v15 = vrot.slane %v1913_v6, 4  ;;  %v760_v18 = vsel %vm4476_vm5, 0, %v759_v13  ;;  %v1933_v61 = vrot.slane %v1931_v2, 4  ;;  %v1936_v48 = vrot.slane %v1934_v43, 5  ;;  %v5079_v9 = vpop.f32.mrf.mxu2 }
  0xcb   : > { %761 = vst [vmem:[#allocation2 + $0x60] sm:$0x1] %v760_v18  ;;  %v1946_v24 = vrot.slane %v1944_v44, 4  ;;  %v1401_v55 = vrot.slane %v4767_v63, 5  ;;  %v4104_v63 = vld [vmem:[%s5505_s3 + $0x180] sm:$0xff]  ;;  %2332 = vmatpush.bf16.msra.mxu1 %v4088_v39 }
  0xcc   : > { %v1919_v46 = vsel %vm4614_vm12, %v1914_v15, %v1918_v30  ;;  %v1937_v30 = vor.u32 %v1936_v48, %v1933_v61  ;;  %2527 = vmatpush.bf16.msra.mxu2 %v4104_v63  ;;  %v4112_v18 = vld [vmem:[%s5505_s3 + $0x1c0] sm:$0xff]  ;;  %v5102_v43 = vld [vmem:[#allocation2 + $0x1c] sm:$0xf] }
  0xcd   : > { %v2005_v57 = vunpack.c.l.b16 %v1919_v46  ;;  %v1947_v6 = vor.u32 %v1946_v24, %v1942_v54  ;;  %v1402_v28 = vsel %vm4852_vm15, %v3608_v7, %v1401_v55  ;;  %v5092_v51 = vpop.f32.mrf.mxu3  ;;  %2905 = vmatpush.bf16.msra.mxu3 %v4112_v18  ;;  %v2623_v8 = vshrl.u32 %v5102_v43, 16  ;;  %v2140_v7 = vld [vmem:[#allocation2 + $0xc] sm:$0xe] }
  0xce   : > { %v1938_v13 = vrot.slane %v1937_v30, 4 }
  0xcf   : > { %v1948_v15 = vrot.slane %v1947_v6, 4  ;;  %v2625_v39 = vrot.slane %v2623_v8, 4 }
  0xd0   : > { %1536 = vmatmul.bf16.gmra.mxu2 %v1444_v40  ;;  %v790_v19 = vld [vmem:[#allocation2 + $0x68] sm:$0x1]  ;;  %v1435_v40 = vunpack.c.l.b16 %v1395_v32 }
  0xd1   : > { %v791_v36 = vsel %vm4550_vm9, 0, %v790_v19  ;;  %v5094_v34 = vld [vmem:[#allocation2 + $0x64] sm:$0xf]  ;;  %v2585_v19 = vld [vmem:[#allocation2 + $0x18] sm:$0xf] }
  0xd2   : > { %792 = vst [vmem:[#allocation2 + $0x68] sm:$0x1] %v791_v36  ;;  %v1445_v45 = vpack.c.b16 %v1436_v37, %v1435_v40  ;;  %v1783_v2 = vld [vmem:[#allocation2 + $0x60] sm:$0xf]  ;;  %v1437_v40 = vunpack.c.l.b16 %v1402_v28  ;;  %v1943_v36 = vsel %vm4614_vm12, %v1938_v13, %v1942_v54  ;;  %v5108_v44 = vpop.f32.mrf.mxu2  ;;  %v1964_v46 = vshll.u32 %v5094_v34, 16  ;;  %v1138_v13 = vpop.f32.mrf.mxu0 }
  0xd3   : > { %v1968_v47 = vshrl.u32 %v5094_v34, 16  ;;  %v1958_v61 = vshll.u32 %v1783_v2, 16  ;;  %v2610_v48 = vshrl.u32 %v2585_v19, 16  ;;  %v2613_v24 = vshll.u32 %v2585_v19, 16  ;;  %v4120_v54 = vld [vmem:[%s5505_s3 + $0x200] sm:$0xff] }
  0xd4   : > { %v2007_v30 = vunpack.c.l.b16 %v1943_v36  ;;  %3155 = vmatpush.bf16.msra.mxu0 %v4120_v54 }
  0xd6   : > { %2103 = vmatmul.bf16.gmra.mxu0 %v2015_v21  ;;  %v1950_v21 = vshll.u32 %v5076_v50, 16 }
  0xd7   : > { %1730 = vmatmul.bf16.gmra.mxu3 %v4069_v62  ;;  %v1403_v62 = vrot.slane %v1401_v55, 4  ;;  %v2177_v55 = vrot.slane %v4879_v16, 5  ;;  %v3785_v16 = vrot.slane %v2140_v7, 9 }
  0xd8   : > { %1312 = vmatmul.bf16.gmra.mxu1 %v4038_v10  ;;  %v2016_v10 = vpack.c.b16 %v2006_v22, %v2005_v57  ;;  %v1952_v32 = vrot.slane %v1950_v21, 5  ;;  %v2174_v57 = vrot.slane %v4869_v3, 5  ;;  %v2619_v22 = vshll.u32 %v5102_v43, 16 }
  0xd9   : > { %v1405_v59 = vsel %vm4852_vm15, %v1403_v62, %v1404_v41  ;;  %v5119_v62 = vrot.slane %v1964_v46, 5  ;;  %v1970_v41 = vrot.slane %v1968_v47, 4  ;;  %v2615_v3 = vrot.slane %v2613_v24, 5 }
  0xda   : > { %v1438_v37 = vunpack.c.l.b16 %v1405_v59  ;;  %v1953_v35 = vsel %vm4614_vm12, %v1948_v15, %v1952_v32  ;;  %v1960_v32 = vrot.slane %v1958_v61, 5  ;;  %v5123_v15 = vld [vmem:[#allocation2 + $0x68] sm:$0x1]  ;;  %v2175_v28 = vsel %vm4852_vm15, %v3785_v16, %v2174_v57  ;;  %v4071_v61 = vld [vmem:[#allocation2 + $0x60] sm:$0xff] }
  0xdb   : > { %v2008_v21 = vunpack.c.l.b16 %v1953_v35  ;;  %v2621_v18 = vrot.slane %v2619_v22, 5  ;;  %v2245_v19 = vunpack.c.l.b16 %v2175_v28  ;;  %v1971_v36 = vor.u32 %v1970_v41, %v5119_v62  ;;  %v2588_v41 = vld [vmem:[#allocation2 + $0x24] sm:$0xf] }
  0xdc   : > { %v1446_v6 = vpack.c.b16 %v1438_v37, %v1437_v40  ;;  %v5131_v37 = vld [vmem:[#allocation2 + $0x20] sm:$0x1]  ;;  %v1974_v47 = vshll.u32 %v5123_v15, 16 }
  0xdd   : > { %v2017_v35 = vpack.c.b16 %v2008_v21, %v2007_v30  ;;  %v2626_v24 = vor.u32 %v2625_v39, %v2621_v18  ;;  %v2181_v39 = vrot.slane %v4897_v33, 5 }
  0xdf   : > { %v2627_v30 = vrot.slane %v2626_v24, 4  ;;  %v2183_v24 = vrot.slane %v2181_v39, 4 }
  0xe0   : > { %1541 = vmatmul.bf16.gmra.mxu2 %v1445_v45  ;;  %v1955_v45 = vshrl.u32 %v1783_v2, 16  ;;  %v5129_v2 = vpop.f32.mrf.mxu3 }
  0xe2   : > { %v1957_v63 = vrot.slane %v1955_v45, 4 }
  0xe4   : > { %v1961_v46 = vor.u32 %v1960_v32, %v1957_v63  ;;  %v5138_v63 = vld [vmem:[#allocation2 + $0x28] sm:$0xf] }
  0xe5   : > { %v5086_v25 = vpop.f32.mrf.mxu1 }
  0xe6   : > { %2108 = vmatmul.bf16.gmra.mxu0 %v2016_v10  ;;  %v1962_v8 = vrot.slane %v1961_v46, 4  ;;  %v2647_v46 = vshrl.u32 %v5138_v63, 16 }
  0xe7   : > { %1735 = vmatmul.bf16.gmra.mxu3 %v4070_v12  ;;  %v2176_v12 = vrot.slane %v2174_v57, 4  ;;  %v1972_v57 = vrot.slane %v1971_v36, 4  ;;  %v4096_v36 = vld [vmem:[#allocation2 + $0x18] sm:$0xff] }
  0xe8   : > { %1317 = vmatmul.bf16.gmra.mxu1 %v4039_v17  ;;  %v2612_v17 = vrot.slane %v2610_v48, 4  ;;  %v1967_v32 = vsel %vm4614_vm12, %v1962_v8, %v5119_v62  ;;  %v2643_v62 = vshll.u32 %v5138_v63, 16 }
  0xe9   : > { %v2178_v59 = vsel %vm4852_vm15, %v2176_v12, %v2177_v55  ;;  %v2629_v55 = vshll.u32 %v5131_v37, 16  ;;  %v1140_v12 = vpop.f32.mrf.mxu0 }
  0xea   : > { %v2246_v40 = vunpack.c.l.b16 %v2178_v59  ;;  %v2616_v45 = vor.u32 %v2615_v3, %v2612_v17 }
  0xeb   : > { %v2631_v21 = vrot.slane %v2629_v55, 5  ;;  %v2009_v55 = vunpack.c.l.b16 %v1967_v32  ;;  %v5162_v32 = vld [vmem:[#allocation2 + $0x2c] sm:$0x1] }
  0xec   : > { %v2261_v54 = vpack.c.b16 %v2246_v40, %v2245_v19  ;;  %v2617_v16 = vrot.slane %v2616_v45, 4  ;;  %v2634_v19 = vshrl.u32 %v2588_v41, 16  ;;  %v2637_v40 = vshll.u32 %v2588_v41, 16 }
  0xed   : > { %v5121_v10 = vpop.f32.mrf.mxu1  ;;  %v2632_v59 = vsel %vm4614_vm12, %v2627_v30, %v2631_v21  ;;  %v2963_v30 = vld [vmem:[#allocation2 + $0x18] sm:$0xe] }
  0xf0   : > { %1546 = vmatmul.bf16.gmra.mxu2 %v1446_v6  ;;  %v1976_v6 = vrot.slane %v1974_v47, 5 }
  0xf2   : > { %v1977_v17 = vsel %vm4614_vm12, %v1972_v57, %v1976_v6  ;;  %v2819_v57 = vunpack.c.l.b16 %v2632_v59  ;;  %v2636_v6 = vrot.slane %v2634_v19, 4 }
  0xf3   : > { %v5135_v48 = vpop.f32.mrf.mxu2  ;;  %v2010_v47 = vunpack.c.l.b16 %v1977_v17  ;;  %v2645_v17 = vrot.slane %v2643_v62, 5  ;;  %v3000_v62 = vrot.slane %v5131_v37, 5 }
  0xf5   : > { %v1283_v22 = vpop.f32.mrf.mxu1 }
  0xf6   : > { %2113 = vmatmul.bf16.gmra.mxu0 %v2017_v35  ;;  %v1284_v7 = vadd.f32 %v1283_v22, %v1138_v13  ;;  %v2622_v13 = vsel %vm4614_vm12, %v2617_v16, %v2621_v18  ;;  %v2141_v35 = vld [vmem:[#allocation2 + $0x18] sm:$0xe]  ;;  %v2184_v18 = vrot.slane %v4909_v0, 5  ;;  %v2639_v16 = vrot.slane %v2637_v40, 5 }
  0xf7   : > { %1740 = vmatmul.bf16.gmra.mxu3 %v4071_v61  ;;  %v3786_v61 = vrot.slane %v2141_v35, 9  ;;  %v2649_v35 = vrot.slane %v2647_v46, 4  ;;  %v2997_v0 = vrot.slane %v5102_v43, 5 }
  0xf8   : > { %2333 = vmatmul.bf16.vlgmr.msra.gmra.mxu1 %v2261_v54  ;;  %v2818_v54 = vunpack.c.l.b16 %v2622_v13  ;;  %v2185_v8 = vsel %vm4852_vm15, %v2183_v24, %v2184_v18  ;;  %v2018_v13 = vpack.c.b16 %v2010_v47, %v2009_v55  ;;  %v2640_v24 = vor.u32 %v2639_v16, %v2636_v6  ;;  %v5168_v47 = vld [vmem:[#allocation2 + $0x34] sm:$0xf] }
  0xf9   : > { %v2182_v33 = vsel %vm4852_vm15, %v3786_v61, %v2181_v39  ;;  %v2248_v41 = vunpack.c.l.b16 %v2185_v8  ;;  %v2653_v18 = vshll.u32 %v5162_v32, 16  ;;  %v2591_v8 = vld [vmem:[#allocation2 + $0x30] sm:$0xf] }
  0xfa   : > { %v5145_v3 = vpop.f32.mrf.mxu3  ;;  %v2247_v21 = vunpack.c.l.b16 %v2182_v33  ;;  %v2834_v39 = vpack.c.b16 %v2819_v57, %v2818_v54  ;;  %v2999_v33 = vrot.slane %v2997_v0, 4  ;;  %v2641_v54 = vrot.slane %v2640_v24, 4  ;;  %v4097_v24 = vld [vmem:[#allocation2 + $0x24] sm:$0xff] }
  0xfb   : > { %v5149_v28 = vpop.f32.mrf.mxu2  ;;  %v2655_v57 = vrot.slane %v2653_v18, 5  ;;  %v2658_v16 = vshrl.u32 %v2591_v8, 16  ;;  %v2661_v37 = vshll.u32 %v2591_v8, 16  ;;  %v2142_v18 = vld [vmem:[#allocation2 + $0x24] sm:$0xe]  ;;  %v2191_v8 = vrot.slane %v4938_v49, 5 }
  0xfc   : > { %v2262_v40 = vpack.c.b16 %v2248_v41, %v2247_v21  ;;  %v3001_v6 = vsel %vm4852_vm15, %v2999_v33, %v3000_v62  ;;  %v2667_v21 = vshll.u32 %v5168_v47, 16  ;;  %v2671_v41 = vshrl.u32 %v5168_v47, 16 }
  0xfd   : > { %v1285_v45 = vpop.f32.mrf.mxu1  ;;  %v3787_v62 = vrot.slane %v2142_v18, 9  ;;  %v3004_v49 = vrot.slane %v5138_v63, 5 }
  0xfe   : > { %v1286_v22 = vadd.f32 %v1285_v45, %v1140_v12  ;;  %v3969_v45 = vrot.slane %v2963_v30, 9 }
 0x100   : > { %2528 = vmatmul.bf16.vlgmr.msra.gmra.mxu2 %v4096_v36  ;;  %v2650_v36 = vor.u32 %v2649_v35, %v2645_v17  ;;  %v2998_v55 = vsel %vm4852_vm15, %v3969_v45, %v2997_v0  ;;  %v2188_v0 = vrot.slane %v4926_v38, 5  ;;  %v3069_v45 = vunpack.c.l.b16 %v3001_v6 }
 0x101   : > { %v2673_v38 = vrot.slane %v2671_v41, 4 }
 0x102   : > { %v5164_v12 = vpop.f32.mrf.mxu3 }
 0x103   : > { %5523 = vst [vmem:[#allocation3_spill] sm:$0xff] %v5164_v12  ;;  %v1143_v59 = vpop.f32.mrf.mxu0  ;;  %v1512_v61 = vpop.f32.mrf.mxu2  ;;  %v2669_v12 = vrot.slane %v2667_v21, 5 }
 0x104   : > { %v1552_v19 = vadd.f32 %v1512_v61, %v1284_v7  ;;  %v2651_v7 = vrot.slane %v2650_v36, 4 }
 0x105   : > { %v1288_v46 = vpop.f32.mrf.mxu1  ;;  %v2674_v41 = vor.u32 %v2673_v38, %v2669_v12  ;;  %v2594_v38 = vld [vmem:[#allocation2 + $0x3c] sm:$0xf] }
 0x106   : > { %2118 = vmatmul.bf16.gmra.mxu0 %v2018_v13  ;;  %v1289_v43 = vadd.f32 %v1288_v46, %v1143_v59  ;;  %v3068_v13 = vunpack.c.l.b16 %v2998_v55  ;;  %v2656_v36 = vsel %vm4614_vm12, %v2651_v7, %v2655_v57  ;;  %v2190_v46 = vrot.slane %v2188_v0, 4 }
 0x107   : > { %2906 = vmatmul.bf16.vlgmr.msra.gmra.mxu3 %v2834_v39  ;;  %v2660_v55 = vrot.slane %v2658_v16, 4 }
 0x108   : > { %2338 = vmatmul.bf16.gmra.mxu1 %v2262_v40  ;;  %v2646_v40 = vsel %vm4614_vm12, %v2641_v54, %v2645_v17  ;;  %v2192_v17 = vsel %vm4852_vm15, %v2190_v46, %v2191_v8  ;;  %v5186_v54 = vld [vmem:[#allocation2 + $0x38] sm:$0x1]  ;;  %v3084_v16 = vpack.c.b16 %v3069_v45, %v3068_v13 }
 0x109   : > { %v2820_v6 = vunpack.c.l.b16 %v2646_v40  ;;  %v2250_v57 = vunpack.c.l.b16 %v2192_v17  ;;  %v2677_v40 = vshll.u32 %v5186_v54, 16  ;;  %v3007_v17 = vrot.slane %v5162_v32, 5 }
 0x10a   : > { %v1706_v30 = vpop.f32.mrf.mxu3 }
 0x10b   : > { %v1145_v35 = vpop.f32.mrf.mxu0  ;;  %v1746_v59 = vadd.f32 %v1706_v30, %v1552_v19  ;;  %v1514_v39 = vpop.f32.mrf.mxu2  ;;  %v2663_v30 = vrot.slane %v2661_v37, 5  ;;  %v2964_v37 = vld [vmem:[#allocation2 + $0x24] sm:$0xe] }
 0x10c   : > { %v1553_v61 = vadd.f32 %v1514_v39, %v1286_v22  ;;  %v2821_v22 = vunpack.c.l.b16 %v2656_v36  ;;  %v2189_v39 = vsel %vm4852_vm15, %v3787_v62, %v2188_v0 }
 0x10d   : > { %v1290_v33 = vpop.f32.mrf.mxu1  ;;  %v2249_v7 = vunpack.c.l.b16 %v2189_v39  ;;  %v2664_v21 = vor.u32 %v2663_v30, %v2660_v55  ;;  %v3006_v39 = vrot.slane %v3004_v49, 4  ;;  %v2675_v55 = vrot.slane %v2674_v41, 4 }
 0x10e   : > { %v1291_v19 = vadd.f32 %v1290_v33, %v1145_v35  ;;  %v2835_v0 = vpack.c.b16 %v2821_v22, %v2820_v6  ;;  %v2679_v30 = vrot.slane %v2677_v40, 5  ;;  %v2682_v22 = vshrl.u32 %v2594_v38, 16 }
 0x10f   : > { %v2263_v46 = vpack.c.b16 %v2250_v57, %v2249_v7  ;;  %v2665_v45 = vrot.slane %v2664_v21, 4  ;;  %v2685_v7 = vshll.u32 %v2594_v38, 16 }
 0x110   : > { %2533 = vmatmul.bf16.gmra.mxu2 %v4097_v24  ;;  %v3970_v24 = vrot.slane %v2964_v37, 9  ;;  %v2195_v37 = vrot.slane %v4955_v4, 5 }
 0x111   : > { %v2670_v32 = vsel %vm4614_vm12, %v2665_v45, %v2669_v12  ;;  %v2684_v45 = vrot.slane %v2682_v22, 4 }
 0x112   : > { %v1708_v35 = vpop.f32.mrf.mxu3 }
 0x113   : > { %v2084_v36 = vpop.f32.mrf.mxu0  ;;  %v1747_v18 = vadd.f32 %v1708_v35, %v1553_v61  ;;  %v1517_v33 = vpop.f32.mrf.mxu2  ;;  %v5194_v61 = vld [vmem:[#allocation2 + $0x40] sm:$0xf] }
 0x114   : > { %v1554_v62 = vadd.f32 %v1517_v33, %v1289_v43  ;;  %v5190_v8 = vadd.f32 %v2084_v36, %v1746_v59  ;;  %v3005_v43 = vsel %vm4852_vm15, %v3970_v24, %v3004_v49  ;;  %v3008_v59 = vsel %vm4852_vm15, %v3006_v39, %v3007_v17  ;;  %v2143_v33 = vld [vmem:[#allocation2 + $0x30] sm:$0xe] }
 0x115   : > { %v1293_v63 = vpop.f32.mrf.mxu1  ;;  %v2691_v21 = vshll.u32 %v5194_v61, 16  ;;  %v2695_v49 = vshrl.u32 %v5194_v61, 16  ;;  %v3070_v41 = vunpack.c.l.b16 %v3005_v43  ;;  %v3071_v40 = vunpack.c.l.b16 %v3008_v59  ;;  %v2965_v43 = vld [vmem:[#allocation2 + $0x30] sm:$0xe] }
 0x116   : > { %3156 = vmatmul.bf16.vlgmr.msra.gmra.mxu0 %v3084_v16  ;;  %v1294_v13 = vadd.f32 %v1293_v63, %v5046_v56  ;;  %v2680_v56 = vsel %vm4614_vm12, %v2675_v55, %v2679_v30  ;;  %v3788_v39 = vrot.slane %v2143_v33, 9  ;;  %v2197_v17 = vrot.slane %v2195_v37, 4 }
 0x117   : > { %2911 = vmatmul.bf16.gmra.mxu3 %v2835_v0  ;;  %v4098_v0 = vld [vmem:[#allocation2 + $0x30] sm:$0xff]  ;;  %v2823_v63 = vunpack.c.l.b16 %v2680_v56  ;;  %v2687_v55 = vrot.slane %v2685_v7, 5  ;;  %v2697_v38 = vrot.slane %v2695_v49, 4 }
 0x118   : > { %2343 = vmatmul.bf16.gmra.mxu1 %v2263_v46  ;;  %v2822_v46 = vunpack.c.l.b16 %v2670_v32  ;;  %v2196_v30 = vsel %vm4852_vm15, %v3788_v39, %v2195_v37  ;;  %v5218_v32 = vld [vmem:[#allocation2 + $0x44] sm:$0x1]  ;;  %v3971_v37 = vrot.slane %v2965_v43, 9 }
 0x119   : > { %v2251_v59 = vunpack.c.l.b16 %v2196_v30  ;;  %v2688_v22 = vor.u32 %v2687_v55, %v2684_v45 }
 0x11a   : > { %v1711_v6 = vpop.f32.mrf.mxu3 }
 0x11b   : > { %v2086_v57 = vpop.f32.mrf.mxu0  ;;  %v1748_v16 = vadd.f32 %v1711_v6, %v1554_v62  ;;  %v1519_v35 = vpop.f32.mrf.mxu2  ;;  %v2198_v62 = vrot.slane %v4966_v27, 5  ;;  %v3011_v27 = vrot.slane %v5168_v47, 5 }
 0x11c   : > { %v1555_v36 = vadd.f32 %v1519_v35, %v1291_v19  ;;  %v5207_v12 = vadd.f32 %v2086_v57, %v1747_v18  ;;  %v5215_v18 = vrot.slane %v2691_v21, 5  ;;  %v2836_v35 = vpack.c.b16 %v2823_v63, %v2822_v46 }
 0x11d   : > { %v1295_v24 = vpop.f32.mrf.mxu1  ;;  %v2199_v19 = vsel %vm4852_vm15, %v2197_v17, %v2198_v62  ;;  %v3013_v39 = vrot.slane %v3011_v27, 4  ;;  %v2689_v46 = vrot.slane %v2688_v22, 4  ;;  %v2597_v17 = vld [vmem:[#allocation2 + $0x48] sm:$0xf]  ;;  %v5232_v62 = vld [vmem:[#allocation2 + $0x4c] sm:$0xf] }
 0x11e   : > { %v1296_v4 = vadd.f32 %v1295_v24, %v5074_v14  ;;  %v2252_v6 = vunpack.c.l.b16 %v2199_v19  ;;  %v3085_v14 = vpack.c.b16 %v3071_v40, %v3070_v41  ;;  %v2698_v49 = vor.u32 %v2697_v38, %v5215_v18 }
 0x11f   : > { %v2701_v24 = vshll.u32 %v5218_v32, 16  ;;  %v3014_v40 = vrot.slane %v5186_v54, 5  ;;  %v2709_v63 = vshll.u32 %v2597_v17, 16  ;;  %v2715_v30 = vshll.u32 %v5232_v62, 16 }
 0x120   : > { %2538 = vmatmul.bf16.gmra.mxu2 %v4098_v0  ;;  %v2264_v33 = vpack.c.b16 %v2252_v6, %v2251_v59  ;;  %v2699_v45 = vrot.slane %v2698_v49, 4  ;;  %v2719_v54 = vshrl.u32 %v5232_v62, 16  ;;  %v2694_v43 = vsel %vm4614_vm12, %v2689_v46, %v5215_v18 }
 0x121   : > { %v2703_v55 = vrot.slane %v2701_v24, 5  ;;  %v2711_v22 = vrot.slane %v2709_v63, 5  ;;  %v5251_v49 = vrot.slane %v2715_v30, 5  ;;  %v3018_v46 = vrot.slane %v5194_v61, 5 }
 0x122   : > { %v1713_v56 = vpop.f32.mrf.mxu3 }
 0x123   : > { %v2089_v7 = vpop.f32.mrf.mxu0  ;;  %v1749_v57 = vadd.f32 %v1713_v56, %v1555_v36  ;;  %v1522_v21 = vpop.f32.mrf.mxu2 }
 0x124   : > { %v1556_v0 = vadd.f32 %v1522_v21, %v1294_v13  ;;  %v5225_v47 = vadd.f32 %v2089_v7, %v1748_v16  ;;  %v3012_v13 = vsel %vm4852_vm15, %v3971_v37, %v3011_v27  ;;  %v2706_v16 = vshrl.u32 %v2597_v17, 16  ;;  %v2144_v21 = vld [vmem:[#allocation2 + $0x3c] sm:$0xe] }
 0x125   : > { %v1298_v41 = vpop.f32.mrf.mxu1  ;;  %v3072_v19 = vunpack.c.l.b16 %v3012_v13  ;;  %v2704_v37 = vsel %vm4614_vm12, %v2699_v45, %v2703_v55  ;;  %v3789_v18 = vrot.slane %v2144_v21, 9  ;;  %v5259_v13 = vld [vmem:[#allocation2 + $0x50] sm:$0x1] }
 0x126   : > { %3161 = vmatmul.bf16.gmra.mxu0 %v3085_v14  ;;  %v5230_v36 = vadd.f32 %v1298_v41, %v5086_v25  ;;  %v3015_v25 = vsel %vm4852_vm15, %v3013_v39, %v3014_v40  ;;  %v2202_v14 = vrot.slane %v4983_v5, 5  ;;  %v2708_v56 = vrot.slane %v2706_v16, 4 }
 0x127   : > { %2916 = vmatmul.bf16.gmra.mxu3 %v2836_v35  ;;  %v4099_v35 = vld [vmem:[#allocation2 + $0x3c] sm:$0xff]  ;;  %v2721_v41 = vrot.slane %v2719_v54, 4  ;;  %v3073_v5 = vunpack.c.l.b16 %v3015_v25  ;;  %v2824_v40 = vunpack.c.l.b16 %v2694_v43  ;;  %v2825_v16 = vunpack.c.l.b16 %v2704_v37 }
 0x128   : > { %2348 = vmatmul.bf16.gmra.mxu1 %v2264_v33  ;;  %v2204_v39 = vrot.slane %v2202_v14, 4  ;;  %v3021_v43 = vrot.slane %v5218_v32, 5 }
 0x129   : > { %v2722_v61 = vor.u32 %v2721_v41, %v5251_v49  ;;  %v3086_v54 = vpack.c.b16 %v3073_v5, %v3072_v19  ;;  %v2600_v41 = vld [vmem:[#allocation2 + $0x54] sm:$0xf]  ;;  %v5279_v5 = vld [vmem:[#allocation2 + $0x58] sm:$0xf] }
 0x12a   : > { %v1716_v38 = vpop.f32.mrf.mxu3 }
 0x12b   : > { %v2091_v59 = vpop.f32.mrf.mxu0  ;;  %v1750_v6 = vadd.f32 %v1716_v38, %v1556_v0  ;;  %v1524_v27 = vpop.f32.mrf.mxu2  ;;  %v2205_v0 = vrot.slane %v5009_v26, 5  ;;  %v2712_v26 = vor.u32 %v2711_v22, %v2708_v56  ;;  %v3020_v38 = vrot.slane %v3018_v46, 4 }
 0x12c   : > { %v1557_v7 = vadd.f32 %v1524_v27, %v1296_v4  ;;  %v5253_v33 = vadd.f32 %v2091_v59, %v1749_v57  ;;  %v2966_v4 = vld [vmem:[#allocation2 + $0x3c] sm:$0xe]  ;;  %v2203_v57 = vsel %vm4852_vm15, %v3789_v18, %v2202_v14  ;;  %v2837_v14 = vpack.c.b16 %v2825_v16, %v2824_v40  ;;  %v2967_v40 = vld [vmem:[#allocation2 + $0x48] sm:$0xe] }
 0x12d   : > { %v1300_v24 = vpop.f32.mrf.mxu1  ;;  %v2206_v63 = vsel %vm4852_vm15, %v2204_v39, %v2205_v0  ;;  %v2253_v45 = vunpack.c.l.b16 %v2203_v57  ;;  %v3972_v30 = vrot.slane %v2966_v4, 9  ;;  %v2713_v22 = vrot.slane %v2712_v26, 4 }
 0x12e   : > { %v1301_v17 = vadd.f32 %v1300_v24, %v5121_v10  ;;  %v2254_v55 = vunpack.c.l.b16 %v2206_v63  ;;  %v2725_v10 = vshll.u32 %v5259_v13, 16  ;;  %v2723_v0 = vrot.slane %v2722_v61, 4 }
 0x12f   : > { %v3019_v19 = vsel %vm4852_vm15, %v3972_v30, %v3018_v46  ;;  %v2730_v4 = vshrl.u32 %v2600_v41, 16  ;;  %v2733_v46 = vshll.u32 %v2600_v41, 16  ;;  %v2739_v57 = vshll.u32 %v5279_v5, 16 }
 0x130   : > { %2543 = vmatmul.bf16.gmra.mxu2 %v4099_v35  ;;  %v4165_v35 = vld [vmem:[%s689_s12] sm:$0xff]   ;;  %v2265_v21 = vpack.c.b16 %v2254_v55, %v2253_v45  ;;  %v2727_v32 = vrot.slane %v2725_v10, 5  ;;  %v3074_v16 = vunpack.c.l.b16 %v3019_v19  ;;  %v3025_v55 = vrot.slane %v5232_v62, 5 }
 0x131   : > { %v4166_v24 = vunpack.c.l.bf16 %v4165_v35  ;;  %v4167_v63 = vunpack.c.h.bf16 %v4165_v35  ;;  %v2743_v30 = vshrl.u32 %v5279_v5, 16  ;;  %v3973_v10 = vrot.slane %v2967_v40, 9  ;;  %v5302_v40 = vld [vmem:[#allocation2 + $0x5c] sm:$0x1] }
 0x132   : > { %v1718_v25 = vpop.f32.mrf.mxu3  ;;  %v2728_v45 = vsel %vm4614_vm12, %v2723_v0, %v2727_v32  ;;  %v5297_v19 = vrot.slane %v2739_v57, 5  ;;  %v701_v0 = vstv %s5288_s13  ;;  %v3035_v1 = vrot.slane %v5302_v40, 5 }
 0x133   : > { %v2094_v59 = vpop.f32.mrf.mxu0  ;;  %v5269_v27 = vadd.f32 %v1718_v25, %v1557_v7  ;;  %v1527_v56 = vpop.f32.mrf.mxu2  ;;  %v3022_v7 = vsel %vm4852_vm15, %v3020_v38, %v3021_v43  ;;  %v2827_v62 = vunpack.c.l.b16 %v2728_v45  ;;  %vm5309_vm0 = vcmp.eq.s32.totalorder %v701_v0, 1 }
 0x134   : > { %v1558_v37 = vadd.f32 %v1527_v56, %v5230_v36  ;;  %v5273_v18 = vadd.f32 %v2094_v59, %v1750_v6  ;;  %v694_v36 = vmul.f32 %v4999_v29, %v4166_v24  ;;  %v2718_v6 = vsel %vm4614_vm12, %v2713_v22, %v5251_v49  ;;  %v2145_v24 = vld [vmem:[#allocation2 + $0x48] sm:$0xe] }
 0x135   : > { %v1303_v39 = vpop.f32.mrf.mxu1  ;;  %v3075_v26 = vunpack.c.l.b16 %v3022_v7  ;;  %v2826_v61 = vunpack.c.l.b16 %v2718_v6  ;;  %v2732_v56 = vrot.slane %v2730_v4, 4  ;;  %v2735_v22 = vrot.slane %v2733_v46, 5 }
 0x136   : > { %3166 = vmatmul.bf16.gmra.mxu0 %v3086_v54  ;;  %v695_v54 = vmul.f32 %v4999_v29, %v4167_v63  ;;  %v696_v25 = vadd.f32 %v5006_v42, %v694_v36  ;;  %v3790_v7 = vrot.slane %v2145_v24, 9  ;;  %v2212_v29 = vrot.slane %v5040_v52, 5 }
 0x137   : > { %2921 = vmatmul.bf16.gmra.mxu3 %v2837_v14  ;;  %v2209_v14 = vrot.slane %v5027_v20, 5  ;;  %v2745_v36 = vrot.slane %v2743_v30, 4  ;;  %v3027_v6 = vrot.slane %v3025_v55, 4  ;;  %v2736_v57 = vor.u32 %v2735_v22, %v2732_v56 }
 0x138   : > { %2353 = vmatmul.bf16.gmra.mxu1 %v2265_v21  ;;  %v4100_v21 = vld [vmem:[#allocation2 + $0x48] sm:$0xff]  ;;  %v697_v20 = vadd.f32 %v5006_v42, %v695_v54  ;;  %v5315_v30 = vsel %vm4852_vm15, %v3973_v10, %v3025_v55 }
 0x139   : > { %v2211_v41 = vrot.slane %v2209_v14, 4  ;;  %v2210_v4 = vsel %vm4852_vm15, %v3790_v7, %v2209_v14  ;;  %v2746_v42 = vor.u32 %v2745_v36, %v5297_v19  ;;  %v2737_v55 = vrot.slane %v2736_v57, 4  ;;  %v5333_v36 = vld [vmem:[#allocation2 + $0x64] sm:$0xf] }
 0x13a   : > { %v1721_v49 = vpop.f32.mrf.mxu3  ;;  %v2255_v52 = vunpack.c.l.b16 %v2210_v4  ;;  %v699_v14 = vmax.f32 %v697_v20, 0.0  ;;  %v2763_v63 = vshll.u32 %v5333_v36, 16 }
 0x13b   : > { %v2096_v38 = vpop.f32.mrf.mxu0  ;;  %v1752_v43 = vadd.f32 %v1721_v49, %v1558_v37  ;;  %v1529_v59 = vpop.f32.mrf.mxu2  ;;  %v3028_v37 = vrot.slane %v5259_v13, 5  ;;  %v2213_v46 = vsel %vm4852_vm15, %v2211_v41, %v2212_v29  ;;  %v3087_v13 = vpack.c.b16 %v3075_v26, %v3074_v16  ;;  %v2603_v29 = vld [vmem:[#allocation2 + $0x60] sm:$0xf] }
 0x13c   : > { %v1559_v35 = vadd.f32 %v1529_v59, %v1301_v17  ;;  %v698_v17 = vmax.f32 %v696_v25, 0.0  ;;  %v2256_v45 = vunpack.c.l.b16 %v2213_v46  ;;  %v2749_v49 = vshll.u32 %v5302_v40, 16 }
 0x13d   : > { %v1305_v32 = vpop.f32.mrf.mxu1  ;;  %v1304_v25 = vadd.f32 %v1303_v39, %v5079_v9  ;;  %v2838_v59 = vpack.c.b16 %v2827_v62, %v2826_v61  ;;  %v3029_v16 = vsel %vm4852_vm15, %v3027_v6, %v3028_v37  ;;  %v704_v7 = vsel %vm5309_vm0, %v699_v14, 0.0  ;;  %v2146_v14 = vld [vmem:[#allocation2 + $0x54] sm:$0xe] }
 0x13e   : > { %v703_v56 = vsel %vm5309_vm0, %v698_v17, 0.0  ;;  %v2266_v0 = vpack.c.b16 %v2256_v45, %v2255_v52  ;;  %v5329_v9 = vadd.f32 %v2096_v38, %v5269_v27  ;;  %v2747_v61 = vrot.slane %v2746_v42, 4 }
 0x13f   : > { %v705_v10 = vpack.c.bf16 %v703_v56, %v703_v56  ;;  %v2751_v62 = vrot.slane %v2749_v49, 5  ;;  %v706_v41 = vpack.c.bf16 %v704_v7, %v704_v7  ;;  %v3076_v37 = vunpack.c.l.b16 %v5315_v30 }
 0x140   : > { %2548 = vmatmul.bf16.gmra.mxu2 %v4100_v21  ;;  %v3077_v20 = vunpack.c.l.b16 %v3029_v16  ;;  %v1306_v27 = vadd.f32 %v1305_v32, %v5108_v44  ;;  %v2742_v38 = vsel %vm4614_vm12, %v2737_v55, %v5297_v19  ;;  %v2754_v4 = vshrl.u32 %v2603_v29, 16  ;;  %v4101_v19 = vld [vmem:[#allocation2 + $0x54] sm:$0xff] }
 0x141   : > { %v708_v6 = vshrl.u32 %v705_v10, 16  ;;  %v716_v17 = vshrl.u32 %v706_v41, 16  ;;  %v2757_v57 = vshll.u32 %v2603_v29, 16  ;;  %v711_v52 = vshll.u32 %v705_v10, 16 }
 0x142   : > { %v1723_v54 = vpop.f32.mrf.mxu3  ;;  %v719_v45 = vshll.u32 %v706_v41, 16  ;;  %v2216_v49 = vrot.slane %v5053_v23, 5  ;;  %v2767_v44 = vshrl.u32 %v5333_v36, 16  ;;  %v3791_v16 = vrot.slane %v2146_v14, 9 }
 0x143   : > { %v2099_v22 = vpop.f32.mrf.mxu0  ;;  %v5322_v21 = vadd.f32 %v1723_v54, %v1559_v35  ;;  %v1532_v26 = vpop.f32.mrf.mxu2  ;;  %v710_v32 = vrot.slane %v708_v6, 7  ;;  %v718_v56 = vrot.slane %v716_v17, 7  ;;  %v2219_v55 = vrot.slane %v5076_v50, 5  ;;  %v728_v50 = vld [vmem:[#allocation2 + $0x6c] sm:$0xf] }
 0x144   : > { %v1560_v24 = vadd.f32 %v1532_v26, %v1304_v25  ;;  %v5331_v35 = vadd.f32 %v2099_v22, %v1752_v43  ;;  %v2752_v43 = vsel %vm4614_vm12, %v2747_v61, %v2751_v62  ;;  %v2828_v25 = vunpack.c.l.b16 %v2742_v38 }
 0x145   : > { %v1308_v39 = vpop.f32.mrf.mxu1  ;;  %v2218_v26 = vrot.slane %v2216_v49, 4  ;;  %v2756_v10 = vrot.slane %v2754_v4, 4  ;;  %v714_v7 = vrot.slane %v710_v32, 4  ;;  %v721_v23 = vor.u32 %v719_v45, %v718_v56 }
 0x146   : > { %3171 = vmatmul.bf16.gmra.mxu0 %v3087_v13  ;;  %v2217_v61 = vsel %vm4852_vm15, %v3791_v16, %v2216_v49  ;;  %v2769_v41 = vrot.slane %v2767_v44, 4  ;;  %v713_v29 = vor.u32 %v711_v52, %v710_v32  ;;  %v3088_v38 = vpack.c.b16 %v3077_v20, %v3076_v37  ;;  %v2968_v32 = vld [vmem:[#allocation2 + $0x54] sm:$0xe] }
 0x147   : > { %2926 = vmatmul.bf16.gmra.mxu3 %v2838_v59  ;;  %v2829_v59 = vunpack.c.l.b16 %v2752_v43  ;;  %v2220_v62 = vsel %vm4852_vm15, %v2218_v26, %v2219_v55  ;;  %v2257_v6 = vunpack.c.l.b16 %v2217_v61  ;;  %v3032_v4 = vrot.slane %v5279_v5, 5 }
 0x148   : > { %2358 = vmatmul.bf16.gmra.mxu1 %v2266_v0  ;;  %v2759_v0 = vrot.slane %v2757_v57, 5  ;;  %v2258_v17 = vunpack.c.l.b16 %v2220_v62  ;;  %v723_v49 = vrot.slane %v718_v56, 4  ;;  %v729_v5 = vsel %vm4491_vm7, %v713_v29, %v728_v50  ;;  %v4102_v62 = vld [vmem:[#allocation2 + $0x60] sm:$0xff] }
 0x149   : > { %v2839_v43 = vpack.c.b16 %v2829_v59, %v2828_v25  ;;  %730 = vst [vmem:[#allocation2 + $0x6c] sm:$0xf] %v729_v5  ;;  %v3974_v59 = vrot.slane %v2968_v32, 9  ;;  %v3034_v56 = vrot.slane %v3032_v4, 4  ;;  %v2223_v29 = vrot.slane %v5094_v34, 5 }
 0x14a   : > { %v1726_v46 = vpop.f32.mrf.mxu3  ;;  %v2760_v45 = vor.u32 %v2759_v0, %v2756_v10  ;;  %v2267_v25 = vpack.c.b16 %v2258_v17, %v2257_v6 }
 0x14b   : > { %v2101_v13 = vpop.f32.mrf.mxu0  ;;  %v1754_v30 = vadd.f32 %v1726_v46, %v1560_v24  ;;  %v1534_v42 = vpop.f32.mrf.mxu2  ;;  %v5346_v24 = vrot.slane %v2763_v63, 5  ;;  %v732_v46 = vld [vmem:[#allocation2 + $0x74] sm:$0x1]  ;;  %v1309_v63 = vadd.f32 %v1308_v39, %v5135_v48  ;;  %v3033_v10 = vsel %vm4852_vm15, %v3974_v59, %v3032_v4  ;;  %v2969_v59 = vld [vmem:[#allocation2 + $0x60] sm:$0xe] }
 0x14c   : > { %v1561_v54 = vadd.f32 %v1534_v42, %v1306_v27  ;;  %v5352_v27 = vld [vmem:[#allocation2 + $0x68] sm:$0x1]  ;;  %v722_v42 = vsel %vm4482_vm6, %v714_v7, %v721_v23  ;;  %v733_v58 = vsel %vm4476_vm5, %v723_v49, %v732_v46  ;;  %v5365_v48 = vadd.f32 %v2101_v13, %v5322_v21 }
 0x14d   : > { %v1310_v22 = vpop.f32.mrf.mxu1  ;;  %v2770_v14 = vor.u32 %v2769_v41, %v5346_v24  ;;  %v2773_v37 = vshll.u32 %v5352_v27, 16  ;;  %731 = vst [vmem:[#allocation2 + $0x70] sm:$0xf] %v722_v42  ;;  %v2761_v16 = vrot.slane %v2760_v45, 4  ;;  %v3036_v21 = vsel %vm4852_vm15, %v3034_v56, %v3035_v1 }
 0x14e   : > { %734 = vst [vmem:[#allocation2 + $0x74] sm:$0x1] %v733_v58  ;;  %v3078_v45 = vunpack.c.l.b16 %v3033_v10  ;;  %v3079_v42 = vunpack.c.l.b16 %v3036_v21  ;;  %v3039_v56 = vrot.slane %v5333_v36, 5 }
 0x14f   : > { %v2771_v26 = vrot.slane %v2770_v14, 4  ;;  %v2775_v55 = vrot.slane %v2773_v37, 5  ;;  %v2766_v0 = vsel %vm4614_vm12, %v2761_v16, %v5346_v24 }
 0x150   : > { %2553 = vmatmul.bf16.gmra.mxu2 %v4101_v19  ;;  %v762_v6 = vld [vmem:[#allocation2 + $0x6c] sm:$0x1]  ;;  %v2830_v49 = vunpack.c.l.b16 %v2766_v0  ;;  %v3089_v37 = vpack.c.b16 %v3079_v42, %v3078_v45 }
 0x151   : > { %v2776_v41 = vsel %vm4614_vm12, %v2771_v26, %v2775_v55 }
 0x152   : > { %v1728_v57 = vpop.f32.mrf.mxu3  ;;  %v2831_v53 = vunpack.c.l.b16 %v2776_v41 }
 0x153   : > { %v2104_v52 = vpop.f32.mrf.mxu0  ;;  %v1755_v44 = vadd.f32 %v1728_v57, %v1561_v54  ;;  %v1537_v19 = vpop.f32.mrf.mxu2  ;;  %v2225_v57 = vrot.slane %v2223_v29, 4 }
 0x154   : > { %v1562_v20 = vadd.f32 %v1537_v19, %v1309_v63  ;;  %v5367_v54 = vadd.f32 %v2104_v52, %v1754_v30  ;;  %v1311_v30 = vadd.f32 %v1310_v22, %v5149_v28  ;;  %v5378_v7 = vld [vmem:[#allocation2 + $0x70] sm:$0xf]  ;;  %v2147_v28 = vld [vmem:[#allocation2 + $0x60] sm:$0xe]  ;;  %v763_v22 = vsel %vm4476_vm5, 0, %v762_v6 }
 0x155   : > { %v1313_v39 = vpop.f32.mrf.mxu1  ;;  %v2787_v17 = vshll.u32 %v5378_v7, 16  ;;  %v793_v24 = vld [vmem:[#allocation2 + $0x74] sm:$0x1]  ;;  %v3792_v46 = vrot.slane %v2147_v28, 9  ;;  %v2226_v63 = vrot.slane %v5123_v15, 5  ;;  %v2840_v58 = vpack.c.b16 %v2831_v53, %v2830_v49 }
 0x156   : > { %3176 = vmatmul.bf16.gmra.mxu0 %v3088_v38  ;;  %v2791_v38 = vshrl.u32 %v5378_v7, 16  ;;  %764 = vst [vmem:[#allocation2 + $0x6c] sm:$0x1] %v763_v22  ;;  %v794_v34 = vsel %vm4550_vm9, 0, %v793_v24  ;;  %v1314_v60 = vadd.f32 %v1313_v39, %v5092_v51  ;;  %v3041_v39 = vrot.slane %v3039_v56, 4 }
 0x157   : > { %2931 = vmatmul.bf16.gmra.mxu3 %v2839_v43  ;;  %795 = vst [vmem:[#allocation2 + $0x74] sm:$0x1] %v794_v34  ;;  %v2224_v52 = vsel %vm4852_vm15, %v3792_v46, %v2223_v29  ;;  %v2789_v14 = vrot.slane %v2787_v17, 5 }
 0x158   : > { %2363 = vmatmul.bf16.gmra.mxu1 %v2267_v25  ;;  %v2259_v32 = vunpack.c.l.b16 %v2224_v52  ;;  %v2793_v15 = vrot.slane %v2791_v38, 4 }
 0x15a   : > { %v1731_v13 = vpop.f32.mrf.mxu3  ;;  %v2794_v10 = vor.u32 %v2793_v15, %v2789_v14 }
 0x15b   : > { %v2106_v40 = vpop.f32.mrf.mxu0  ;;  %v1756_v23 = vadd.f32 %v1731_v13, %v1562_v20  ;;  %v1539_v61 = vpop.f32.mrf.mxu2 }
 0x15c   : > { %v1563_v50 = vadd.f32 %v1539_v61, %v1311_v30  ;;  %v5387_v43 = vadd.f32 %v2106_v40, %v1755_v44  ;;  %v2227_v44 = vsel %vm4852_vm15, %v2225_v57, %v2226_v63  ;;  %v3975_v61 = vrot.slane %v2969_v59, 9 }
 0x15d   : > { %v1315_v4 = vpop.f32.mrf.mxu1  ;;  %v2260_v19 = vunpack.c.l.b16 %v2227_v44  ;;  %v2606_v55 = vld [vmem:[#allocation2 + $0x6c] sm:$0xf]  ;;  %v2795_v29 = vrot.slane %v2794_v10, 4 }
 0x15e   : > { %v2608_v30 = vld [vmem:[#allocation2 + $0x74] sm:$0x1]  ;;  %v2778_v0 = vshrl.u32 %v2606_v55, 16  ;;  %v2781_v40 = vshll.u32 %v2606_v55, 16  ;;  %v3040_v22 = vsel %vm4852_vm15, %v3975_v61, %v3039_v56  ;;  %v4103_v63 = vld [vmem:[#allocation2 + $0x6c] sm:$0xff] }
 0x15f   : > { %v2268_v26 = vpack.c.b16 %v2260_v19, %v2259_v32  ;;  %v2797_v51 = vshll.u32 %v2608_v30, 16  ;;  %v3080_v42 = vunpack.c.l.b16 %v3040_v22 }
 0x160   : > { %2558 = vmatmul.bf16.gmra.mxu2 %v4102_v62  ;;  %v3042_v62 = vrot.slane %v5352_v27, 5  ;;  %v2780_v41 = vrot.slane %v2778_v0, 4  ;;  %v2783_v36 = vrot.slane %v2781_v40, 5 }
 0x161   : > { %v2799_v6 = vrot.slane %v2797_v51, 5 }
 0x162   : > { %v1733_v5 = vpop.f32.mrf.mxu3  ;;  %v2784_v17 = vor.u32 %v2783_v36, %v2780_v41  ;;  %v3043_v24 = vsel %vm4852_vm15, %v3041_v39, %v3042_v62 }
 0x163   : > { %v2109_v20 = vpop.f32.mrf.mxu0  ;;  %v1757_v25 = vadd.f32 %v1733_v5, %v1563_v50  ;;  %v1542_v1 = vpop.f32.mrf.mxu2  ;;  %v2800_v34 = vsel %vm4614_vm12, %v2795_v29, %v2799_v6  ;;  %v3081_v49 = vunpack.c.l.b16 %v3043_v24 }
 0x164   : > { %v1564_v16 = vadd.f32 %v1542_v1, %v1314_v60  ;;  %v5398_v21 = vadd.f32 %v2109_v20, %v1756_v23  ;;  %v1316_v23 = vadd.f32 %v1315_v4, %v5129_v2  ;;  %v2785_v57 = vrot.slane %v2784_v17, 4 }
 0x165   : > { %v1318_v13 = vpop.f32.mrf.mxu1  ;;  %v2833_v52 = vunpack.c.l.b16 %v2800_v34  ;;  %v3090_v44 = vpack.c.b16 %v3081_v49, %v3080_v42  ;;  %v3046_v60 = vrot.slane %v5378_v7, 5  ;;  %v3049_v1 = vrot.slane %v2608_v30, 5 }
 0x166   : > { %3181 = vmatmul.bf16.gmra.mxu0 %v3089_v37  ;;  %v2790_v2 = vsel %vm4614_vm12, %v2785_v57, %v2789_v14  ;;  %v1319_v19 = vadd.f32 %v1318_v13, %v5145_v3 }
 0x167   : > { %2936 = vmatmul.bf16.gmra.mxu3 %v2840_v58  ;;  %v2832_v53 = vunpack.c.l.b16 %v2790_v2  ;;  %v3048_v56 = vrot.slane %v3046_v60, 4 }
 0x168   : > { %2368 = vmatmul.bf16.gmra.mxu1 %v2268_v26  ;;  %v5526_v26 = vld [vmem:[#allocation3_spill] sm:$0xff] }
 0x169   : > { %v2841_v5 = vpack.c.b16 %v2833_v52, %v2832_v53  ;;  %v3050_v7 = vsel %vm4852_vm15, %v3048_v56, %v3049_v1  ;;  %v5435_v53 = vld [vmem:[%s5506_s4] ss:$0 sm:$0xff] }
 0x16a   : > { %v1736_v50 = vpop.f32.mrf.mxu3  ;;  %v3083_v62 = vunpack.c.l.b16 %v3050_v7 }
 0x16b   : > { %v2111_v28 = vpop.f32.mrf.mxu0  ;;  %v1758_v38 = vadd.f32 %v1736_v50, %v1564_v16  ;;  %v1544_v46 = vpop.f32.mrf.mxu2 }
 0x16c   : > { %v1565_v27 = vadd.f32 %v1544_v46, %v1316_v23  ;;  %v5408_v45 = vadd.f32 %v2111_v28, %v1757_v25  ;;  %v2970_v25 = vld [vmem:[#allocation2 + $0x6c] sm:$0xe] }
 0x16d   : > { %v1320_v4 = vpop.f32.mrf.mxu1  ;;  %v3976_v59 = vrot.slane %v2970_v25, 9 }
 0x16e   : > { %v1321_v55 = vadd.f32 %v1320_v4, %v5526_v26 }
 0x16f   : > { %v3047_v10 = vsel %vm4852_vm15, %v3976_v59, %v3046_v60 }
 0x170   : > { %2563 = vmatmul.bf16.gmra.mxu2 %v4103_v63  ;;  %v3082_v39 = vunpack.c.l.b16 %v3047_v10 }
 0x172   : > { %v1738_v32 = vpop.f32.mrf.mxu3  ;;  %v3091_v30 = vpack.c.b16 %v3083_v62, %v3082_v39 }
 0x173   : > { %v2114_v15 = vpop.f32.mrf.mxu0  ;;  %v1759_v37 = vadd.f32 %v1738_v32, %v1565_v27  ;;  %v1547_v20 = vpop.f32.mrf.mxu2 }
 0x174   : > { %v1566_v58 = vadd.f32 %v1547_v20, %v1319_v19  ;;  %v5414_v11 = vadd.f32 %v2114_v15, %v1758_v38 }
 0x175   : > { %v2334_v14 = vpop.f32.mrf.mxu1 }
 0x176   : > { %3186 = vmatmul.bf16.gmra.mxu0 %v3090_v44  ;;  %v2374_v24 = vadd.f32 %v2334_v14, %v5190_v8 }
 0x177   : > { %2941 = vmatmul.bf16.gmra.mxu3 %v2841_v5 }
 0x17a   : > { %v1741_v16 = vpop.f32.mrf.mxu3 }
 0x17b   : > { %v2116_v3 = vpop.f32.mrf.mxu0  ;;  %v1760_v13 = vadd.f32 %v1741_v16, %v1566_v58  ;;  %v1549_v0 = vpop.f32.mrf.mxu2 }
 0x17c   : > { %v1567_v40 = vadd.f32 %v1549_v0, %v1321_v55  ;;  %v5421_v61 = vadd.f32 %v2116_v3, %v1759_v37 }
 0x17d   : > { %v2336_v51 = vpop.f32.mrf.mxu1 }
 0x17e   : > { %v2375_v57 = vadd.f32 %v2336_v51, %v5207_v12 }
 0x182   : > { %v1743_v41 = vpop.f32.mrf.mxu3 }
 0x183   : > { %v2119_v36 = vpop.f32.mrf.mxu0  ;;  %v1761_v29 = vadd.f32 %v1743_v41, %v1567_v40  ;;  %v2529_v6 = vpop.f32.mrf.mxu2 }
 0x184   : > { %v5423_v17 = vadd.f32 %v2119_v36, %v1760_v13  ;;  %v2569_v46 = vadd.f32 %v2529_v6, %v2374_v24 }
 0x185   : > { %v2339_v50 = vpop.f32.mrf.mxu1 }
 0x186   : > { %3191 = vmatmul.bf16.gmra.mxu0 %v3091_v30  ;;  %v2376_v52 = vadd.f32 %v2339_v50, %v5225_v47 }
 0x18a   : > { %v2907_v31 = vpop.f32.mrf.mxu3 }
 0x18b   : > { %v2121_v23 = vpop.f32.mrf.mxu0  ;;  %v2531_v28 = vpop.f32.mrf.mxu2  ;;  %v2947_v34 = vadd.f32 %v2907_v31, %v2569_v46 }
 0x18c   : > { %v5425_v22 = vadd.f32 %v2121_v23, %v1761_v29  ;;  %v2570_v4 = vadd.f32 %v2531_v28, %v2375_v57 }
 0x18d   : > { %v2341_v38 = vpop.f32.mrf.mxu1 }
 0x18e   : > { %v2377_v56 = vadd.f32 %v2341_v38, %v5253_v33 }
 0x192   : > { %v2909_v27 = vpop.f32.mrf.mxu3 }
 0x193   : > { %v3157_v63 = vpop.f32.mrf.mxu0  ;;  %v2534_v2 = vpop.f32.mrf.mxu2  ;;  %v2948_v8 = vadd.f32 %v2909_v27, %v2570_v4 }
 0x194   : > { %v3197_v49 = vadd.f32 %v3157_v63, %v2947_v34  ;;  %v2571_v37 = vadd.f32 %v2534_v2, %v2376_v52 }
 0x195   : > { %v2344_v42 = vpop.f32.mrf.mxu1 }
 0x196   : > { %v3216_v44 = vadd.f32 %v5435_v53, %v3197_v49  ;;  %v2378_v39 = vadd.f32 %v2344_v42, %v5273_v18 }
 0x198   : > { %v3285_v20 = vmul.f32 %v3216_v44, %v3216_v44 }
 0x19a   : > { %v2912_v12 = vpop.f32.mrf.mxu3 }
 0x19b   : > { %v3159_v32 = vpop.f32.mrf.mxu0  ;;  %v2536_v19 = vpop.f32.mrf.mxu2  ;;  %v2949_v14 = vadd.f32 %v2912_v12, %v2571_v37 }
 0x19c   : > { %v3198_v15 = vadd.f32 %v3159_v32, %v2948_v8  ;;  %v2572_v3 = vadd.f32 %v2536_v19, %v2377_v56 }
 0x19d   : > { %v2346_v5 = vpop.f32.mrf.mxu1 }
 0x19e   : > { %v3217_v60 = vadd.f32 %v5435_v53, %v3198_v15  ;;  %v2379_v38 = vadd.f32 %v2346_v5, %v5329_v9 }
 0x1a0   : > { %v4171_v25 = vpack.c.bf16 %v3217_v60, %v3216_v44  ;;  %v3264_v47 = vadd.f32 %v3217_v60, %v3216_v44  ;;  %v3286_v58 = vmul.f32 %v3217_v60, %v3217_v60 }
 0x1a2   : > { %4172 = vst [vmem:[%s5443_s28] sm:$0xff] %v4171_v25   ;;  %v3301_v59 = vadd.f32 %v3286_v58, %v3285_v20  ;;  %v2914_v1 = vpop.f32.mrf.mxu3 }
 0x1a3   : > { %v3162_v16 = vpop.f32.mrf.mxu0  ;;  %v2539_v26 = vpop.f32.mrf.mxu2  ;;  %v2950_v40 = vadd.f32 %v2914_v1, %v2572_v3 }
 0x1a4   : > { %v3199_v55 = vadd.f32 %v3162_v16, %v2949_v14  ;;  %v2573_v33 = vadd.f32 %v2539_v26, %v2378_v39 }
 0x1a5   : > { %v2349_v10 = vpop.f32.mrf.mxu1 }
 0x1a6   : > { %v3218_v7 = vadd.f32 %v5435_v53, %v3199_v55  ;;  %v2380_v52 = vadd.f32 %v2349_v10, %v5331_v35 }
 0x1a8   : > { %v3265_v13 = vadd.f32 %v3264_v47, %v3218_v7  ;;  %v3287_v0 = vmul.f32 %v3218_v7, %v3218_v7 }
 0x1aa   : > { %v3302_v51 = vadd.f32 %v3301_v59, %v3287_v0  ;;  %v2917_v62 = vpop.f32.mrf.mxu3 }
 0x1ab   : > { %v3164_v30 = vpop.f32.mrf.mxu0  ;;  %v2541_v41 = vpop.f32.mrf.mxu2  ;;  %v2951_v28 = vadd.f32 %v2917_v62, %v2573_v33 }
 0x1ac   : > { %v3200_v36 = vadd.f32 %v3164_v30, %v2950_v40  ;;  %v2574_v63 = vadd.f32 %v2541_v41, %v2379_v38 }
 0x1ad   : > { %v2351_v6 = vpop.f32.mrf.mxu1 }
 0x1ae   : > { %v3219_v29 = vadd.f32 %v5435_v53, %v3200_v36  ;;  %v2381_v47 = vadd.f32 %v2351_v6, %v5365_v48 }
 0x1b0   : > { %v4176_v50 = vpack.c.bf16 %v3219_v29, %v3218_v7  ;;  %v3266_v31 = vadd.f32 %v3265_v13, %v3219_v29  ;;  %v3288_v23 = vmul.f32 %v3219_v29, %v3219_v29 }
 0x1b2   : > { %4215 = vst [vmem:[%s5443_s28 + $0x8] sm:$0xff] %v4176_v50   ;;  %v3303_v24 = vadd.f32 %v3302_v51, %v3288_v23  ;;  %v2919_v46 = vpop.f32.mrf.mxu3 }
 0x1b3   : > { %v3167_v57 = vpop.f32.mrf.mxu0  ;;  %v2544_v27 = vpop.f32.mrf.mxu2  ;;  %v2952_v42 = vadd.f32 %v2919_v46, %v2574_v63 }
 0x1b4   : > { %v3201_v18 = vadd.f32 %v3167_v57, %v2951_v28  ;;  %v2575_v9 = vadd.f32 %v2544_v27, %v2380_v52 }
 0x1b5   : > { %v2354_v49 = vpop.f32.mrf.mxu1 }
 0x1b6   : > { %v3220_v34 = vadd.f32 %v5435_v53, %v3201_v18  ;;  %v2382_v7 = vadd.f32 %v2354_v49, %v5367_v54 }
 0x1b8   : > { %v3267_v2 = vadd.f32 %v3266_v31, %v3220_v34  ;;  %v3289_v4 = vmul.f32 %v3220_v34, %v3220_v34 }
 0x1ba   : > { %v3304_v8 = vadd.f32 %v3303_v24, %v3289_v4  ;;  %v2922_v12 = vpop.f32.mrf.mxu3 }
 0x1bb   : > { %v3169_v44 = vpop.f32.mrf.mxu0  ;;  %v2546_v32 = vpop.f32.mrf.mxu2  ;;  %v2953_v20 = vadd.f32 %v2922_v12, %v2575_v9 }
 0x1bc   : > { %v3202_v19 = vadd.f32 %v3169_v44, %v2952_v42  ;;  %v2576_v1 = vadd.f32 %v2546_v32, %v2381_v47 }
 0x1bd   : > { %v2356_v14 = vpop.f32.mrf.mxu1 }
 0x1be   : > { %v3221_v15 = vadd.f32 %v5435_v53, %v3202_v19  ;;  %v2383_v6 = vadd.f32 %v2356_v14, %v5387_v43 }
 0x1c0   : > { %v4181_v37 = vpack.c.bf16 %v3221_v15, %v3220_v34  ;;  %v3268_v5 = vadd.f32 %v3267_v2, %v3221_v15  ;;  %v3290_v60 = vmul.f32 %v3221_v15, %v3221_v15 }
 0x1c2   : > { %4216 = vst [vmem:[%s5443_s28 + $0x10] sm:$0xff] %v4181_v37   ;;  %v3305_v25 = vadd.f32 %v3304_v8, %v3290_v60  ;;  %v2924_v58 = vpop.f32.mrf.mxu3 }
 0x1c3   : > { %v3172_v59 = vpop.f32.mrf.mxu0  ;;  %v2549_v56 = vpop.f32.mrf.mxu2  ;;  %v2954_v3 = vadd.f32 %v2924_v58, %v2576_v1 }
 0x1c4   : > { %v3203_v35 = vadd.f32 %v3172_v59, %v2953_v20  ;;  %v2577_v48 = vadd.f32 %v2549_v56, %v2382_v7 }
 0x1c5   : > { %v2359_v39 = vpop.f32.mrf.mxu1 }
 0x1c6   : > { %v3222_v16 = vadd.f32 %v5435_v53, %v3203_v35  ;;  %v2384_v63 = vadd.f32 %v2359_v39, %v5398_v21 }
 0x1c8   : > { %v3269_v26 = vadd.f32 %v3268_v5, %v3222_v16  ;;  %v3291_v55 = vmul.f32 %v3222_v16, %v3222_v16 }
 0x1ca   : > { %v3306_v10 = vadd.f32 %v3305_v25, %v3291_v55  ;;  %v2927_v13 = vpop.f32.mrf.mxu3 }
 0x1cb   : > { %v3174_v0 = vpop.f32.mrf.mxu0  ;;  %v2551_v40 = vpop.f32.mrf.mxu2  ;;  %v2955_v33 = vadd.f32 %v2927_v13, %v2577_v48 }
 0x1cc   : > { %v3204_v51 = vadd.f32 %v3174_v0, %v2954_v3  ;;  %v2578_v28 = vadd.f32 %v2551_v40, %v2383_v6 }
 0x1cd   : > { %v2361_v38 = vpop.f32.mrf.mxu1 }
 0x1ce   : > { %v3223_v62 = vadd.f32 %v5435_v53, %v3204_v51  ;;  %v2385_v9 = vadd.f32 %v2361_v38, %v5408_v45 }
 0x1d0   : > { %v4186_v30 = vpack.c.bf16 %v3223_v62, %v3222_v16  ;;  %v3270_v41 = vadd.f32 %v3269_v26, %v3223_v62  ;;  %v3292_v36 = vmul.f32 %v3223_v62, %v3223_v62 }
 0x1d2   : > { %4217 = vst [vmem:[%s5443_s28 + $0x18] sm:$0xff] %v4186_v30   ;;  %v3307_v29 = vadd.f32 %v3306_v10, %v3292_v36  ;;  %v2929_v50 = vpop.f32.mrf.mxu3 }
 0x1d3   : > { %v3177_v31 = vpop.f32.mrf.mxu0  ;;  %v2554_v23 = vpop.f32.mrf.mxu2  ;;  %v2956_v27 = vadd.f32 %v2929_v50, %v2578_v28 }
 0x1d4   : > { %v3205_v54 = vadd.f32 %v3177_v31, %v2955_v33  ;;  %v2579_v43 = vadd.f32 %v2554_v23, %v2384_v63 }
 0x1d5   : > { %v2364_v32 = vpop.f32.mrf.mxu1 }
 0x1d6   : > { %v3224_v24 = vadd.f32 %v5435_v53, %v3205_v54  ;;  %v2386_v59 = vadd.f32 %v2364_v32, %v5414_v11 }
 0x1d8   : > { %v3271_v46 = vadd.f32 %v3270_v41, %v3224_v24  ;;  %v3293_v57 = vmul.f32 %v3224_v24, %v3224_v24 }
 0x1da   : > { %v3308_v18 = vadd.f32 %v3307_v29, %v3293_v57  ;;  %v2932_v34 = vpop.f32.mrf.mxu3 }
 0x1db   : > { %v3179_v2 = vpop.f32.mrf.mxu0  ;;  %v2556_v4 = vpop.f32.mrf.mxu2  ;;  %v2957_v44 = vadd.f32 %v2932_v34, %v2579_v43 }
 0x1dc   : > { %v3206_v42 = vadd.f32 %v3179_v2, %v2956_v27  ;;  %v2580_v60 = vadd.f32 %v2556_v4, %v2385_v9 }
 0x1dd   : > { %v2366_v1 = vpop.f32.mrf.mxu1 }
 0x1de   : > { %v3225_v49 = vadd.f32 %v5435_v53, %v3206_v42  ;;  %v2387_v40 = vadd.f32 %v2366_v1, %v5421_v61 }
 0x1e0   : > { %v4191_v8 = vpack.c.bf16 %v3225_v49, %v3224_v24  ;;  %v3272_v52 = vadd.f32 %v3271_v46, %v3225_v49  ;;  %v3294_v12 = vmul.f32 %v3225_v49, %v3225_v49 }
 0x1e2   : > { %4218 = vst [vmem:[%s5443_s28 + $0x20] sm:$0xff] %v4191_v8   ;;  %v3309_v19 = vadd.f32 %v3308_v18, %v3294_v12  ;;  %v2934_v15 = vpop.f32.mrf.mxu3 }
 0x1e3   : > { %v3182_v37 = vpop.f32.mrf.mxu0  ;;  %v2559_v5 = vpop.f32.mrf.mxu2  ;;  %v2958_v58 = vadd.f32 %v2934_v15, %v2580_v60 }
 0x1e4   : > { %v3207_v21 = vadd.f32 %v3182_v37, %v2957_v44  ;;  %v2581_v26 = vadd.f32 %v2559_v5, %v2386_v59 }
 0x1e5   : > { %v2369_v62 = vpop.f32.mrf.mxu1 }
 0x1e6   : > { %v3226_v20 = vadd.f32 %v5435_v53, %v3207_v21  ;;  %v2388_v50 = vadd.f32 %v2369_v62, %v5423_v17 }
 0x1e8   : > { %v3273_v25 = vadd.f32 %v3272_v52, %v3226_v20  ;;  %v3295_v47 = vmul.f32 %v3226_v20, %v3226_v20 }
 0x1ea   : > { %v3310_v14 = vadd.f32 %v3309_v19, %v3295_v47  ;;  %v2937_v56 = vpop.f32.mrf.mxu3 }
 0x1eb   : > { %v3184_v35 = vpop.f32.mrf.mxu0  ;;  %v2561_v45 = vpop.f32.mrf.mxu2  ;;  %v2959_v13 = vadd.f32 %v2937_v56, %v2581_v26 }
 0x1ec   : > { %v3208_v16 = vadd.f32 %v3184_v35, %v2958_v58  ;;  %v2582_v11 = vadd.f32 %v2561_v45, %v2387_v40 }
 0x1ed   : > { %v2371_v24 = vpop.f32.mrf.mxu1 }
 0x1ee   : > { %v3227_v55 = vadd.f32 %v5435_v53, %v3208_v16  ;;  %v2389_v34 = vadd.f32 %v2371_v24, %v5425_v22 }
 0x1f0   : > { %v4196_v3 = vpack.c.bf16 %v3227_v55, %v3226_v20  ;;  %v3274_v10 = vadd.f32 %v3273_v25, %v3227_v55  ;;  %v3296_v7 = vmul.f32 %v3227_v55, %v3227_v55 }
 0x1f2   : > { %4219 = vst [vmem:[%s5443_s28 + $0x28] sm:$0xff] %v4196_v3   ;;  %v3311_v0 = vadd.f32 %v3310_v14, %v3296_v7  ;;  %v2939_v48 = vpop.f32.mrf.mxu3 }
 0x1f3   : > { %v3187_v51 = vpop.f32.mrf.mxu0  ;;  %v2564_v41 = vpop.f32.mrf.mxu2  ;;  %v2960_v29 = vadd.f32 %v2939_v48, %v2582_v11 }
 0x1f4   : > { %v3209_v39 = vadd.f32 %v3187_v51, %v2959_v13  ;;  %v2583_v54 = vadd.f32 %v2564_v41, %v2388_v50 }
 0x1f6   : > { %v3228_v30 = vadd.f32 %v5435_v53, %v3209_v39 }
 0x1f8   : > { %v3275_v36 = vadd.f32 %v3274_v10, %v3228_v30  ;;  %v3297_v33 = vmul.f32 %v3228_v30, %v3228_v30 }
 0x1fa   : > { %v3312_v6 = vadd.f32 %v3311_v0, %v3297_v33  ;;  %v2942_v28 = vpop.f32.mrf.mxu3 }
 0x1fb   : > { %v3189_v31 = vpop.f32.mrf.mxu0  ;;  %v2961_v27 = vadd.f32 %v2942_v28, %v2583_v54  ;;  %v2566_v18 = vpop.f32.mrf.mxu2 }
 0x1fc   : > { %v3210_v23 = vadd.f32 %v3189_v31, %v2960_v29  ;;  %v2584_v4 = vadd.f32 %v2566_v18, %v2389_v34 }
 0x1fe   : > { %v3229_v61 = vadd.f32 %v5435_v53, %v3210_v23 }
 0x200   : > { %v4201_v38 = vpack.c.bf16 %v3229_v61, %v3228_v30  ;;  %v3276_v46 = vadd.f32 %v3275_v36, %v3229_v61  ;;  %v3298_v57 = vmul.f32 %v3229_v61, %v3229_v61 }
 0x202   : > { %4220 = vst [vmem:[%s5443_s28 + $0x30] sm:$0xff] %v4201_v38   ;;  %v3313_v63 = vadd.f32 %v3312_v6, %v3298_v57  ;;  %v2944_v43 = vpop.f32.mrf.mxu3 }
 0x203   : > { %v3192_v2 = vpop.f32.mrf.mxu0  ;;  %v2962_v52 = vadd.f32 %v2944_v43, %v2584_v4 }
 0x204   : > { %v3211_v17 = vadd.f32 %v3192_v2, %v2961_v27 }
 0x206   : > { %v3230_v42 = vadd.f32 %v5435_v53, %v3211_v17 }
 0x208   : > { %v3277_v49 = vadd.f32 %v3276_v46, %v3230_v42  ;;  %v3299_v8 = vmul.f32 %v3230_v42, %v3230_v42 }
 0x20a   : > { %v3314_v12 = vadd.f32 %v3313_v63, %v3299_v8 }
 0x20b   : > { %v3194_v44 = vpop.f32.mrf.mxu0 }
 0x20c   : > { %v3212_v32 = vadd.f32 %v3194_v44, %v2962_v52 }
 0x20e   : > { %v3231_v19 = vadd.f32 %v5435_v53, %v3212_v32 }
 0x210   : > { %v4206_v9 = vpack.c.bf16 %v3231_v19, %v3230_v42  ;;  %v3278_v22 = vadd.f32 %v3277_v49, %v3231_v19  ;;  %v3300_v15 = vmul.f32 %v3231_v19, %v3231_v19 }
 0x212   : > { %4221 = vst [vmem:[%s5443_s28 + $0x38] sm:$0xff] %v4206_v9   ;;  %v3279_v37 = vrot.slane %v3278_v22, 4  ;;  %v3315_v5 = vadd.f32 %v3314_v12, %v3300_v15 }
 0x214   : > { %v3280_v21 = vadd.f32 %v3279_v37, %v3278_v22  ;;  %v3316_v60 = vrot.slane %v3315_v5, 4 }
 0x216   : > { %v3281_v20 = vrot.slane %v3280_v21, 2  ;;  %v3317_v25 = vadd.f32 %v3316_v60, %v3315_v5 }
 0x218   : > { %v3282_v47 = vadd.f32 %v3281_v20, %v3280_v21  ;;  %v3318_v58 = vrot.slane %v3317_v25, 2 }
 0x21a   : > { %v3283_v14 = vrot.slane %v3282_v47, 1  ;;  %v3319_v59 = vadd.f32 %v3318_v58, %v3317_v25 }
 0x21c   : > { %v3320_v53 = vrot.slane %v3319_v59, 1  ;;  %v3284_v56 = vadd.f32 %v3283_v14, %v3282_v47 }
 0x21e   : > { %v3321_v35 = vadd.f32 %v3320_v53, %v3319_v59 }
 0x220   : > { %v3323_v1 = vsel %vm578_vm1, %v3284_v56, %v3321_v35 }
 0x221   : > { %3324 = vst [vmem:[%s297_s11] sm:$0x3] %v3323_v1 }
 0x222 PF: > { %s17_s25 = sadd.s32 1, %s4332_s25   ;;  %s5527_s21 = smov %s4324_s23 }
 0x223   : > { %p14_p12 = scmp.ge.s32.totalorder %s17_s25, 6   ;;  %s5528_s22 = smov %s4328_s24 }
 0x224   : > { %s5529_s23 = smov %s5532_s26  ;;  %s5530_s24 = smov %s5536_s27 }
 0x225   :  { %16 = sbr.rel (!%p14_p12) target bundleno = 3 (0x3), region = 96 }

</bundles_post_ra>
